<compile_context>
chip_gen: v5e
topology: v5e:2x2
jax: 0.10.0
libtpu: 0.0.40
codegen_flags: <defaults>
</compile_context>

<pallas_src>
import functools

import jax
import jax.numpy as jnp
from jax import lax
from jax.experimental import pallas as pl
from jax.experimental.pallas import tpu as pltpu


def _pick_tm(hw):
    """Largest HW tile (multiple of 128, <=512) that divides HW, else HW."""
    for tm in (512, 256, 128):
        if hw % tm == 0:
            return tm
    return hw


def _deform_kernel(patches_ref, xflat_ref, pbase_ref, wpT_ref, wcbig_ref,
                   out_ref, z_ref, *, N, C, Hp, Wp):
    TM = out_ref.shape[2]
    CH = C * Hp

    # ---- p_conv (3x3, pad=1, stride=1): one MXU matmul, HW on lanes ----
    # (2N, C*9) @ (C*9, TM) -> (2N, TM).  pbase already folds in p_0 + p_n + p_conv.bias.
    off = jnp.dot(wpT_ref[...], patches_ref[0], preferred_element_type=jnp.float32)
    p = pbase_ref[...] + off                       # (2N, TM)
    px, py = p[:N], p[N:]

    fx = jnp.floor(px)
    fy = jnp.floor(py)
    qx_lt = jnp.clip(fx, 0.0, Hp - 1.0)
    qx_rb = jnp.clip(fx + 1.0, 0.0, Hp - 1.0)
    qy_lt = jnp.clip(fy, 0.0, Wp - 1.0)
    qy_rb = jnp.clip(fy + 1.0, 0.0, Wp - 1.0)
    pxc = jnp.clip(px, 0.0, Hp - 1.0)
    pyc = jnp.clip(py, 0.0, Wp - 1.0)

    # Separable bilinear weights (PyTorch clamping order preserved):
    #   g_lt = gx_lt*gy_lt, g_rb = gx_rb*gy_rb, g_lb = gx_lt*gy_rb, g_rt = gx_rb*gy_lt
    gx_lt = 1.0 + (qx_lt - pxc)
    gx_rb = 1.0 - (qx_rb - pxc)
    gy_lt = 1.0 + (qy_lt - pyc)
    gy_rb = 1.0 - (qy_rb - pyc)

    qx_lt_i = qx_lt.astype(jnp.int32)
    qx_rb_i = qx_rb.astype(jnp.int32)
    qy_lt_i = qy_lt.astype(jnp.int32)
    qy_rb_i = qy_rb.astype(jnp.int32)

    # Hoisted constants: padded-row / padded-col indices for the separable one-hots.
    row_h = lax.broadcasted_iota(jnp.int32, (CH, TM), 0) % Hp   # row index, repeated per channel
    row_w = lax.broadcasted_iota(jnp.int32, (Wp, TM), 0)        # col index

    xmat = xflat_ref[0]                             # (C*Hp, Wp)

    # Static unroll over the ks*ks kernel points; per-iteration temporaries are
    # only O((C*Hp + Wp) * TM), so vreg/VMEM pressure stays low.
    for n in range(N):
        # Column one-hot weighted by gy: (Wp, TM)
        wy = (jnp.where(row_w == qy_lt_i[n:n + 1], gy_lt[n:n + 1], 0.0)
              + jnp.where(row_w == qy_rb_i[n:n + 1], gy_rb[n:n + 1], 0.0))
        # Stage 1 gather over the padded width (MXU): (C*Hp, Wp) @ (Wp, TM) -> (C*Hp, TM)
        tmp = jnp.dot(xmat, wy, preferred_element_type=jnp.float32)
        # Row one-hot weighted by gx, replicated across channels (VPU): (C*Hp, TM)
        wx = (jnp.where(row_h == qx_lt_i[n:n + 1], gx_lt[n:n + 1], 0.0)
              + jnp.where(row_h == qx_rb_i[n:n + 1], gx_rb[n:n + 1], 0.0))
        z_ref[n * CH:(n + 1) * CH, :] = wx * tmp

    # Fused output conv: one (outc, N*C*Hp) @ (N*C*Hp, TM) matmul, lane-dense store.
    out_ref[0] = jnp.dot(wcbig_ref[...], z_ref[...], preferred_element_type=jnp.float32)


def deform_conv2d_forward(x, wp, bp, wc, *, kernel_size=3, padding=1, stride=1,
                          block_hw=None):
    assert stride == 1, "only stride=1 implemented"
    B, C, H, W = x.shape
    ks = kernel_size
    N = ks * ks
    outc = wc.shape[0]
    x = x.astype(jnp.float32)
    h, w = H, W
    HW = h * w

    # ---- glue: im2col for p_conv, laid out (B, C*9, HW) so HW sits on lanes ----
    xp1 = jnp.pad(x, ((0, 0), (0, 0), (1, 1), (1, 1)))
    pat = jnp.stack([xp1[:, :, ki:ki + h, kj:kj + w]
                     for ki in range(3) for kj in range(3)], axis=2)      # (B, C, 9, h, w)
    patchesT = pat.reshape(B, C * 9, HW)

    # ---- glue: zero-padded input as (B, C*Hp, Wp) (K=Wp on lanes for stage-1 matmul LHS) ----
    xp = jnp.pad(x, ((0, 0), (0, 0), (padding, padding), (padding, padding)))
    Hp, Wp = xp.shape[2], xp.shape[3]
    xflat = xp.reshape(B, C * Hp, Wp)

    # ---- glue: constant grid p_0 + p_n with p_conv bias folded in, laid out (2N, HW) ----
    a = jnp.arange(-(ks - 1) // 2, (ks - 1) // 2 + 1)
    pnx, pny = jnp.meshgrid(a, a, indexing="ij")
    p_n = jnp.concatenate([pnx.reshape(-1), pny.reshape(-1)]).astype(jnp.float32)   # (2N,)
    p0x, p0y = jnp.meshgrid(jnp.arange(1, h * stride + 1, stride),
                            jnp.arange(1, w * stride + 1, stride), indexing="ij")
    p0 = jnp.concatenate([jnp.tile(p0x.reshape(1, h, w), (N, 1, 1)),
                          jnp.tile(p0y.reshape(1, h, w), (N, 1, 1))],
                         axis=0).astype(jnp.float32)                                # (2N, h, w)
    pbase = (p0 + p_n[:, None, None]).reshape(2 * N, HW) \
        + bp.reshape(2 * N, 1).astype(jnp.float32)

    # ---- glue: weight reshapes ----
    wpT = wp.reshape(2 * N, C * 9).astype(jnp.float32)                     # (2N, C*9)
    # wc_big[o, (n*C + c)*Hp + i] = wc[o, c, n//ks, n%ks]  (broadcast over padded row i)
    wc_ncn = wc.reshape(outc, C, N).transpose(0, 2, 1).astype(jnp.float32)  # (outc, N, C)
    wc_big = jnp.broadcast_to(wc_ncn[:, :, :, None],
                              (outc, N, C, Hp)).reshape(outc, N * C * Hp)

    TM = block_hw if block_hw is not None else _pick_tm(HW)
    assert HW % TM == 0

    kernel = functools.partial(_deform_kernel, N=N, C=C, Hp=Hp, Wp=Wp)

    out = pl.pallas_call(
        kernel,
        out_shape=jax.ShapeDtypeStruct((B, outc, HW), jnp.float32),
        grid_spec=pltpu.PrefetchScalarGridSpec(
            num_scalar_prefetch=0,
            grid=(B, HW // TM),
            in_specs=[
                pl.BlockSpec((1, C * 9, TM), lambda b, t: (b, 0, t)),       # patches
                pl.BlockSpec((1, C * Hp, Wp), lambda b, t: (b, 0, 0)),      # padded image
                pl.BlockSpec((2 * N, TM), lambda b, t: (0, t)),             # p_0 + p_n + bias
                pl.BlockSpec((2 * N, C * 9), lambda b, t: (0, 0)),          # p_conv weight
                pl.BlockSpec((outc, N * C * Hp), lambda b, t: (0, 0)),      # expanded conv weight
            ],
            out_specs=pl.BlockSpec((1, outc, TM), lambda b, t: (b, 0, t)),
            scratch_shapes=[pltpu.VMEM((N * C * Hp, TM), jnp.float32)],
        ),
        compiler_params=pltpu.CompilerParams(
            dimension_semantics=("parallel", "parallel")),
    )(patchesT, xflat, pbase, wpT, wc_big)

    return out.reshape(B, outc, H, W)   # already NCHW: no transpose needed


# -------- pure-JAX reference mirroring the PyTorch forward (for validation) --------
def ref_deform_conv(x, wp, bp, wc, *, ks, padding, stride):
    B, C, H, W = x.shape
    N = ks * ks
    offset = lax.conv_general_dilated(
        x, wp, (stride, stride), ((1, 1), (1, 1)),
        dimension_numbers=("NCHW", "OIHW", "NCHW")) + bp[None, :, None, None]
    h, w = offset.shape[2], offset.shape[3]
    xp = jnp.pad(x, ((0, 0), (0, 0), (padding, padding), (padding, padding)))
    Hp, Wp = xp.shape[2], xp.shape[3]
    a = jnp.arange(-(ks - 1) // 2, (ks - 1) // 2 + 1)
    pnx, pny = jnp.meshgrid(a, a, indexing="ij")
    p_n = jnp.concatenate([pnx.reshape(-1), pny.reshape(-1)]).reshape(1, 2 * N, 1, 1).astype(x.dtype)
    p0x, p0y = jnp.meshgrid(jnp.arange(1, h * stride + 1, stride),
                            jnp.arange(1, w * stride + 1, stride), indexing="ij")
    p_0 = jnp.concatenate([jnp.tile(p0x.reshape(1, 1, h, w), (1, N, 1, 1)),
                           jnp.tile(p0y.reshape(1, 1, h, w), (1, N, 1, 1))], 1).astype(x.dtype)
    p = (p_0 + p_n + offset).transpose(0, 2, 3, 1)
    q_lt = jnp.floor(p)
    q_rb = q_lt + 1
    q_lt = jnp.concatenate([jnp.clip(q_lt[..., :N], 0, Hp - 1), jnp.clip(q_lt[..., N:], 0, Wp - 1)], -1)
    q_rb = jnp.concatenate([jnp.clip(q_rb[..., :N], 0, Hp - 1), jnp.clip(q_rb[..., N:], 0, Wp - 1)], -1)
    q_lb = jnp.concatenate([q_lt[..., :N], q_rb[..., N:]], -1)
    q_rt = jnp.concatenate([q_rb[..., :N], q_lt[..., N:]], -1)
    pc = jnp.concatenate([jnp.clip(p[..., :N], 0, Hp - 1), jnp.clip(p[..., N:], 0, Wp - 1)], -1)
    g_lt = (1 + (q_lt[..., :N] - pc[..., :N])) * (1 + (q_lt[..., N:] - pc[..., N:]))
    g_rb = (1 - (q_rb[..., :N] - pc[..., :N])) * (1 - (q_rb[..., N:] - pc[..., N:]))
    g_lb = (1 + (q_lb[..., :N] - pc[..., :N])) * (1 - (q_lb[..., N:] - pc[..., N:]))
    g_rt = (1 - (q_rt[..., :N] - pc[..., :N])) * (1 + (q_rt[..., N:] - pc[..., N:]))

    def get_x_q(q):
        idx = (q[..., :N] * Wp + q[..., N:]).astype(jnp.int32)            # (B,h,w,N)
        xf = xp.reshape(B, C, Hp * Wp)
        idxf = jnp.broadcast_to(idx.reshape(B, 1, -1), (B, C, h * w * N))
        return jnp.take_along_axis(xf, idxf, axis=-1).reshape(B, C, h, w, N)

    x_off = (g_lt[:, None] * get_x_q(q_lt) + g_rb[:, None] * get_x_q(q_rb)
             + g_lb[:, None] * get_x_q(q_lb) + g_rt[:, None] * get_x_q(q_rt))
    xo = jnp.concatenate([x_off[..., s:s + ks].reshape(B, C, h, w * ks)
                          for s in range(0, N, ks)], axis=-1)
    xo = xo.reshape(B, C, h * ks, w * ks)
    return lax.conv_general_dilated(xo, wc, (ks, ks), "VALID",
                                    dimension_numbers=("NCHW", "OIHW", "NCHW"))


if __name__ == "__main__":
    key = jax.random.PRNGKey(0)
    B, C, H, W, outc, ks = 2, 4, 16, 16, 8, 3
    k1, k2, k3 = jax.random.split(key, 3)

    x = jax.random.normal(k1, (B, C, H, W), jnp.float32)
    # Parameters follow the module's __init__ shapes (deterministic synthetic init):
    #   p_conv.weight is zero-initialized exactly as in the PyTorch __init__;
    #   the (randomly-initialized) p_conv.bias gives non-integer offsets, so the
    #   bilinear deformable-sampling path is fully exercised.
    wp = jnp.zeros((2 * ks * ks, C, 3, 3), jnp.float32)                       # p_conv.weight
    bp = jax.random.uniform(k2, (2 * ks * ks,), jnp.float32, -0.5, 0.5)       # p_conv.bias
    wc = 0.1 * jax.random.normal(k3, (outc, C, ks, ks), jnp.float32)          # conv.weight (bias=None)

    out = deform_conv2d_forward(x, wp, bp, wc, kernel_size=ks, padding=1, stride=1)
    out = jax.block_until_ready(out)

    ref = jax.block_until_ready(ref_deform_conv(x, wp, bp, wc, ks=ks, padding=1, stride=1))
    assert out.shape == ref.shape == (B, outc, H, W), (out.shape, ref.shape)
    max_err = float(jnp.max(jnp.abs(out - ref)))
    assert jnp.allclose(out, ref, atol=1e-3, rtol=1e-3), max_err
    print("KERNEL_OK")
</pallas_src>

<mosaic_0001>
module attributes {stable_mosaic.version = 11 : i64} {
  func.func @_deform_kernel(%arg0: i32, %arg1: i32, %arg2: memref<1x36x256xf32, #tpu.memory_space<vmem>>, %arg3: memref<1x72x18xf32, #tpu.memory_space<vmem>>, %arg4: memref<18x256xf32, #tpu.memory_space<vmem>>, %arg5: memref<18x36xf32, #tpu.memory_space<vmem>>, %arg6: memref<8x648xf32, #tpu.memory_space<vmem>>, %arg7: memref<1x8x256xf32, #tpu.memory_space<vmem>>, %arg8: memref<648x256xf32, #tpu.memory_space<vmem>>) attributes {dimension_semantics = [#tpu.dimension_semantics<parallel>, #tpu.dimension_semantics<parallel>], iteration_bounds = array<i64: 2, 1>, scalar_prefetch = 0 : i64, scratch_operands = 1 : i64, tpu.core_type = #tpu.core_type<tc>, window_params = [{transform_indices = @transform_0, window_bounds = array<i64: 1, 36, 256>}, {transform_indices = @transform_1, window_bounds = array<i64: 1, 72, 18>}, {transform_indices = @transform_2, window_bounds = array<i64: 18, 256>}, {pipeline_mode = #tpu.pipeline_mode<synchronous>, transform_indices = @transform_3, window_bounds = array<i64: 18, 36>}, {pipeline_mode = #tpu.pipeline_mode<synchronous>, transform_indices = @transform_4, window_bounds = array<i64: 8, 648>}, {transform_indices = @transform_5, window_bounds = array<i64: 1, 8, 256>}]} {
    %c0 = arith.constant 0 : index
    %c0_0 = arith.constant 0 : index
    %0 = vector.load %arg5[%c0, %c0_0] : memref<18x36xf32, #tpu.memory_space<vmem>>, vector<18x36xf32>
    %c0_1 = arith.constant 0 : index
    %c0_2 = arith.constant 0 : index
    %c0_3 = arith.constant 0 : index
    %1 = vector.load %arg2[%c0_1, %c0_2, %c0_3] : memref<1x36x256xf32, #tpu.memory_space<vmem>>, vector<1x36x256xf32>
    %2 = vector.shape_cast %1 : vector<1x36x256xf32> to vector<36x256xf32>
    %cst = arith.constant dense<0.000000e+00> : vector<18x256xf32>
    %3 = tpu.matmul %0, %2, %cst {dimension_numbers = #tpu.dot_dimension_numbers<[1], [0], [0], [1], [0, 0, 1, 1], [], []>} : vector<18x36xf32>, vector<36x256xf32>, vector<18x256xf32> -> vector<18x256xf32>
    %c0_4 = arith.constant 0 : index
    %c0_5 = arith.constant 0 : index
    %4 = vector.load %arg4[%c0_4, %c0_5] : memref<18x256xf32, #tpu.memory_space<vmem>>, vector<18x256xf32>
    %5 = arith.addf %4, %3 : vector<18x256xf32>
    %6 = vector.extract_strided_slice %5 {offsets = [0, 0], sizes = [9, 256], strides = [1, 1]} : vector<18x256xf32> to vector<9x256xf32>
    %7 = vector.extract_strided_slice %5 {offsets = [9, 0], sizes = [9, 256], strides = [1, 1]} : vector<18x256xf32> to vector<9x256xf32>
    %8 = math.floor %6 : vector<9x256xf32>
    %9 = math.floor %7 : vector<9x256xf32>
    %cst_6 = arith.constant 0.000000e+00 : f32
    %cst_7 = arith.constant 1.700000e+01 : f32
    %10 = vector.broadcast %cst_6 : f32 to vector<9x256xf32>
    %11 = arith.maximumf %10, %8 : vector<9x256xf32>
    %12 = vector.broadcast %cst_7 : f32 to vector<9x256xf32>
    %13 = arith.minimumf %12, %11 : vector<9x256xf32>
    %cst_8 = arith.constant 1.000000e+00 : f32
    %14 = vector.broadcast %cst_8 : f32 to vector<9x256xf32>
    %15 = arith.addf %8, %14 : vector<9x256xf32>
    %cst_9 = arith.constant 0.000000e+00 : f32
    %cst_10 = arith.constant 1.700000e+01 : f32
    %16 = vector.broadcast %cst_9 : f32 to vector<9x256xf32>
    %17 = arith.maximumf %16, %15 : vector<9x256xf32>
    %18 = vector.broadcast %cst_10 : f32 to vector<9x256xf32>
    %19 = arith.minimumf %18, %17 : vector<9x256xf32>
    %cst_11 = arith.constant 0.000000e+00 : f32
    %cst_12 = arith.constant 1.700000e+01 : f32
    %20 = vector.broadcast %cst_11 : f32 to vector<9x256xf32>
    %21 = arith.maximumf %20, %9 : vector<9x256xf32>
    %22 = vector.broadcast %cst_12 : f32 to vector<9x256xf32>
    %23 = arith.minimumf %22, %21 : vector<9x256xf32>
    %cst_13 = arith.constant 1.000000e+00 : f32
    %24 = vector.broadcast %cst_13 : f32 to vector<9x256xf32>
    %25 = arith.addf %9, %24 : vector<9x256xf32>
    %cst_14 = arith.constant 0.000000e+00 : f32
    %cst_15 = arith.constant 1.700000e+01 : f32
    %26 = vector.broadcast %cst_14 : f32 to vector<9x256xf32>
    %27 = arith.maximumf %26, %25 : vector<9x256xf32>
    %28 = vector.broadcast %cst_15 : f32 to vector<9x256xf32>
    %29 = arith.minimumf %28, %27 : vector<9x256xf32>
    %cst_16 = arith.constant 0.000000e+00 : f32
    %cst_17 = arith.constant 1.700000e+01 : f32
    %30 = vector.broadcast %cst_16 : f32 to vector<9x256xf32>
    %31 = arith.maximumf %30, %6 : vector<9x256xf32>
    %32 = vector.broadcast %cst_17 : f32 to vector<9x256xf32>
    %33 = arith.minimumf %32, %31 : vector<9x256xf32>
    %cst_18 = arith.constant 0.000000e+00 : f32
    %cst_19 = arith.constant 1.700000e+01 : f32
    %34 = vector.broadcast %cst_18 : f32 to vector<9x256xf32>
    %35 = arith.maximumf %34, %7 : vector<9x256xf32>
    %36 = vector.broadcast %cst_19 : f32 to vector<9x256xf32>
    %37 = arith.minimumf %36, %35 : vector<9x256xf32>
    %38 = arith.subf %13, %33 : vector<9x256xf32>
    %cst_20 = arith.constant 1.000000e+00 : f32
    %39 = vector.broadcast %cst_20 : f32 to vector<9x256xf32>
    %40 = arith.addf %39, %38 : vector<9x256xf32>
    %41 = arith.subf %19, %33 : vector<9x256xf32>
    %cst_21 = arith.constant 1.000000e+00 : f32
    %42 = vector.broadcast %cst_21 : f32 to vector<9x256xf32>
    %43 = arith.subf %42, %41 : vector<9x256xf32>
    %44 = arith.subf %23, %37 : vector<9x256xf32>
    %cst_22 = arith.constant 1.000000e+00 : f32
    %45 = vector.broadcast %cst_22 : f32 to vector<9x256xf32>
    %46 = arith.addf %45, %44 : vector<9x256xf32>
    %47 = arith.subf %29, %37 : vector<9x256xf32>
    %cst_23 = arith.constant 1.000000e+00 : f32
    %48 = vector.broadcast %cst_23 : f32 to vector<9x256xf32>
    %49 = arith.subf %48, %47 : vector<9x256xf32>
    %50 = arith.fptosi %13 : vector<9x256xf32> to vector<9x256xi32>
    %51 = arith.fptosi %19 : vector<9x256xf32> to vector<9x256xi32>
    %52 = arith.fptosi %23 : vector<9x256xf32> to vector<9x256xi32>
    %53 = arith.fptosi %29 : vector<9x256xf32> to vector<9x256xi32>
    %54 = tpu.iota {dimensions = array<i32: 0>} : vector<72x256xi32>
    %c18_i32 = arith.constant 18 : i32
    %c0_i32 = arith.constant 0 : i32
    %55 = arith.cmpi eq, %c18_i32, %c0_i32 : i32
    %c1_i32 = arith.constant 1 : i32
    %56 = arith.select %55, %c1_i32, %c18_i32 : i32
    %57 = vector.broadcast %56 : i32 to vector<72x256xi32>
    %58 = arith.remsi %54, %57 : vector<72x256xi32>
    %c0_i32_24 = arith.constant 0 : i32
    %59 = vector.broadcast %c0_i32_24 : i32 to vector<72x256xi32>
    %60 = arith.cmpi ne, %58, %59 : vector<72x256xi32>
    %c0_i32_25 = arith.constant 0 : i32
    %61 = vector.broadcast %c0_i32_25 : i32 to vector<72x256xi32>
    %62 = arith.cmpi slt, %58, %61 : vector<72x256xi32>
    %c0_i32_26 = arith.constant 0 : i32
    %63 = arith.cmpi slt, %56, %c0_i32_26 : i32
    %64 = vector.broadcast %63 : i1 to vector<72x256xi1>
    %65 = vector.broadcast %64 : vector<72x256xi1> to vector<72x256xi1>
    %66 = arith.xori %62, %65 : vector<72x256xi1>
    %67 = arith.andi %66, %60 : vector<72x256xi1>
    %68 = vector.broadcast %56 : i32 to vector<72x256xi32>
    %69 = arith.addi %58, %68 : vector<72x256xi32>
    %70 = arith.select %67, %69, %58 : vector<72x256xi1>, vector<72x256xi32>
    %71 = tpu.iota {dimensions = array<i32: 0>} : vector<18x256xi32>
    %c0_27 = arith.constant 0 : index
    %c0_28 = arith.constant 0 : index
    %c0_29 = arith.constant 0 : index
    %72 = vector.load %arg3[%c0_27, %c0_28, %c0_29] : memref<1x72x18xf32, #tpu.memory_space<vmem>>, vector<1x72x18xf32>
    %73 = vector.shape_cast %72 : vector<1x72x18xf32> to vector<72x18xf32>
    %74 = vector.extract_strided_slice %52 {offsets = [0, 0], sizes = [1, 256], strides = [1, 1]} : vector<9x256xi32> to vector<1x256xi32>
    %75 = vector.broadcast %74 : vector<1x256xi32> to vector<18x256xi32>
    %76 = arith.cmpi eq, %71, %75 : vector<18x256xi32>
    %77 = vector.extract_strided_slice %46 {offsets = [0, 0], sizes = [1, 256], strides = [1, 1]} : vector<9x256xf32> to vector<1x256xf32>
    %cst_30 = arith.constant 0.000000e+00 : f32
    %78 = vector.shape_cast %77 : vector<1x256xf32> to vector<1x256xf32>
    %79 = vector.broadcast %78 : vector<1x256xf32> to vector<18x256xf32>
    %80 = vector.broadcast %cst_30 : f32 to vector<18x256xf32>
    %81 = arith.select %76, %79, %80 : vector<18x256xi1>, vector<18x256xf32>
    %82 = vector.extract_strided_slice %53 {offsets = [0, 0], sizes = [1, 256], strides = [1, 1]} : vector<9x256xi32> to vector<1x256xi32>
    %83 = vector.broadcast %82 : vector<1x256xi32> to vector<18x256xi32>
    %84 = arith.cmpi eq, %71, %83 : vector<18x256xi32>
    %85 = vector.extract_strided_slice %49 {offsets = [0, 0], sizes = [1, 256], strides = [1, 1]} : vector<9x256xf32> to vector<1x256xf32>
    %cst_31 = arith.constant 0.000000e+00 : f32
    %86 = vector.shape_cast %85 : vector<1x256xf32> to vector<1x256xf32>
    %87 = vector.broadcast %86 : vector<1x256xf32> to vector<18x256xf32>
    %88 = vector.broadcast %cst_31 : f32 to vector<18x256xf32>
    %89 = arith.select %84, %87, %88 : vector<18x256xi1>, vector<18x256xf32>
    %90 = arith.addf %81, %89 : vector<18x256xf32>
    %cst_32 = arith.constant dense<0.000000e+00> : vector<72x256xf32>
    %91 = tpu.matmul %73, %90, %cst_32 {dimension_numbers = #tpu.dot_dimension_numbers<[1], [0], [0], [1], [0, 0, 1, 1], [], []>} : vector<72x18xf32>, vector<18x256xf32>, vector<72x256xf32> -> vector<72x256xf32>
    %92 = vector.extract_strided_slice %50 {offsets = [0, 0], sizes = [1, 256], strides = [1, 1]} : vector<9x256xi32> to vector<1x256xi32>
    %93 = vector.broadcast %92 : vector<1x256xi32> to vector<72x256xi32>
    %94 = arith.cmpi eq, %70, %93 : vector<72x256xi32>
    %95 = vector.extract_strided_slice %40 {offsets = [0, 0], sizes = [1, 256], strides = [1, 1]} : vector<9x256xf32> to vector<1x256xf32>
    %cst_33 = arith.constant 0.000000e+00 : f32
    %96 = vector.shape_cast %95 : vector<1x256xf32> to vector<1x256xf32>
    %97 = vector.broadcast %96 : vector<1x256xf32> to vector<72x256xf32>
    %98 = vector.broadcast %cst_33 : f32 to vector<72x256xf32>
    %99 = arith.select %94, %97, %98 : vector<72x256xi1>, vector<72x256xf32>
    %100 = vector.extract_strided_slice %51 {offsets = [0, 0], sizes = [1, 256], strides = [1, 1]} : vector<9x256xi32> to vector<1x256xi32>
    %101 = vector.broadcast %100 : vector<1x256xi32> to vector<72x256xi32>
    %102 = arith.cmpi eq, %70, %101 : vector<72x256xi32>
    %103 = vector.extract_strided_slice %43 {offsets = [0, 0], sizes = [1, 256], strides = [1, 1]} : vector<9x256xf32> to vector<1x256xf32>
    %cst_34 = arith.constant 0.000000e+00 : f32
    %104 = vector.shape_cast %103 : vector<1x256xf32> to vector<1x256xf32>
    %105 = vector.broadcast %104 : vector<1x256xf32> to vector<72x256xf32>
    %106 = vector.broadcast %cst_34 : f32 to vector<72x256xf32>
    %107 = arith.select %102, %105, %106 : vector<72x256xi1>, vector<72x256xf32>
    %108 = arith.addf %99, %107 : vector<72x256xf32>
    %109 = arith.mulf %108, %91 : vector<72x256xf32>
    %c0_35 = arith.constant 0 : index
    %c0_36 = arith.constant 0 : index
    %110 = vector.load %arg8[%c0_35, %c0_36] : memref<648x256xf32, #tpu.memory_space<vmem>>, vector<72x256xf32>
    tpu.vector_store %arg8[%c0_35, %c0_36], %109 {strides = array<i32>} : memref<648x256xf32, #tpu.memory_space<vmem>>, vector<72x256xf32>,
    %111 = vector.extract_strided_slice %52 {offsets = [1, 0], sizes = [1, 256], strides = [1, 1]} : vector<9x256xi32> to vector<1x256xi32>
    %112 = vector.broadcast %111 : vector<1x256xi32> to vector<18x256xi32>
    %113 = arith.cmpi eq, %71, %112 : vector<18x256xi32>
    %114 = vector.extract_strided_slice %46 {offsets = [1, 0], sizes = [1, 256], strides = [1, 1]} : vector<9x256xf32> to vector<1x256xf32>
    %cst_37 = arith.constant 0.000000e+00 : f32
    %115 = vector.shape_cast %114 : vector<1x256xf32> to vector<1x256xf32>
    %116 = vector.broadcast %115 : vector<1x256xf32> to vector<18x256xf32>
    %117 = vector.broadcast %cst_37 : f32 to vector<18x256xf32>
    %118 = arith.select %113, %116, %117 : vector<18x256xi1>, vector<18x256xf32>
    %119 = vector.extract_strided_slice %53 {offsets = [1, 0], sizes = [1, 256], strides = [1, 1]} : vector<9x256xi32> to vector<1x256xi32>
    %120 = vector.broadcast %119 : vector<1x256xi32> to vector<18x256xi32>
    %121 = arith.cmpi eq, %71, %120 : vector<18x256xi32>
    %122 = vector.extract_strided_slice %49 {offsets = [1, 0], sizes = [1, 256], strides = [1, 1]} : vector<9x256xf32> to vector<1x256xf32>
    %cst_38 = arith.constant 0.000000e+00 : f32
    %123 = vector.shape_cast %122 : vector<1x256xf32> to vector<1x256xf32>
    %124 = vector.broadcast %123 : vector<1x256xf32> to vector<18x256xf32>
    %125 = vector.broadcast %cst_38 : f32 to vector<18x256xf32>
    %126 = arith.select %121, %124, %125 : vector<18x256xi1>, vector<18x256xf32>
    %127 = arith.addf %118, %126 : vector<18x256xf32>
    %cst_39 = arith.constant dense<0.000000e+00> : vector<72x256xf32>
    %128 = tpu.matmul %73, %127, %cst_39 {dimension_numbers = #tpu.dot_dimension_numbers<[1], [0], [0], [1], [0, 0, 1, 1], [], []>} : vector<72x18xf32>, vector<18x256xf32>, vector<72x256xf32> -> vector<72x256xf32>
    %129 = vector.extract_strided_slice %50 {offsets = [1, 0], sizes = [1, 256], strides = [1, 1]} : vector<9x256xi32> to vector<1x256xi32>
    %130 = vector.broadcast %129 : vector<1x256xi32> to vector<72x256xi32>
    %131 = arith.cmpi eq, %70, %130 : vector<72x256xi32>
    %132 = vector.extract_strided_slice %40 {offsets = [1, 0], sizes = [1, 256], strides = [1, 1]} : vector<9x256xf32> to vector<1x256xf32>
    %cst_40 = arith.constant 0.000000e+00 : f32
    %133 = vector.shape_cast %132 : vector<1x256xf32> to vector<1x256xf32>
    %134 = vector.broadcast %133 : vector<1x256xf32> to vector<72x256xf32>
    %135 = vector.broadcast %cst_40 : f32 to vector<72x256xf32>
    %136 = arith.select %131, %134, %135 : vector<72x256xi1>, vector<72x256xf32>
    %137 = vector.extract_strided_slice %51 {offsets = [1, 0], sizes = [1, 256], strides = [1, 1]} : vector<9x256xi32> to vector<1x256xi32>
    %138 = vector.broadcast %137 : vector<1x256xi32> to vector<72x256xi32>
    %139 = arith.cmpi eq, %70, %138 : vector<72x256xi32>
    %140 = vector.extract_strided_slice %43 {offsets = [1, 0], sizes = [1, 256], strides = [1, 1]} : vector<9x256xf32> to vector<1x256xf32>
    %cst_41 = arith.constant 0.000000e+00 : f32
    %141 = vector.shape_cast %140 : vector<1x256xf32> to vector<1x256xf32>
    %142 = vector.broadcast %141 : vector<1x256xf32> to vector<72x256xf32>
    %143 = vector.broadcast %cst_41 : f32 to vector<72x256xf32>
    %144 = arith.select %139, %142, %143 : vector<72x256xi1>, vector<72x256xf32>
    %145 = arith.addf %136, %144 : vector<72x256xf32>
    %146 = arith.mulf %145, %128 : vector<72x256xf32>
    %c72 = arith.constant 72 : index
    %c0_42 = arith.constant 0 : index
    %147 = vector.load %arg8[%c72, %c0_42] : memref<648x256xf32, #tpu.memory_space<vmem>>, vector<72x256xf32>
    tpu.vector_store %arg8[%c72, %c0_42], %146 {strides = array<i32>} : memref<648x256xf32, #tpu.memory_space<vmem>>, vector<72x256xf32>,
    %148 = vector.extract_strided_slice %52 {offsets = [2, 0], sizes = [1, 256], strides = [1, 1]} : vector<9x256xi32> to vector<1x256xi32>
    %149 = vector.broadcast %148 : vector<1x256xi32> to vector<18x256xi32>
    %150 = arith.cmpi eq, %71, %149 : vector<18x256xi32>
    %151 = vector.extract_strided_slice %46 {offsets = [2, 0], sizes = [1, 256], strides = [1, 1]} : vector<9x256xf32> to vector<1x256xf32>
    %cst_43 = arith.constant 0.000000e+00 : f32
    %152 = vector.shape_cast %151 : vector<1x256xf32> to vector<1x256xf32>
    %153 = vector.broadcast %152 : vector<1x256xf32> to vector<18x256xf32>
    %154 = vector.broadcast %cst_43 : f32 to vector<18x256xf32>
    %155 = arith.select %150, %153, %154 : vector<18x256xi1>, vector<18x256xf32>
    %156 = vector.extract_strided_slice %53 {offsets = [2, 0], sizes = [1, 256], strides = [1, 1]} : vector<9x256xi32> to vector<1x256xi32>
    %157 = vector.broadcast %156 : vector<1x256xi32> to vector<18x256xi32>
    %158 = arith.cmpi eq, %71, %157 : vector<18x256xi32>
    %159 = vector.extract_strided_slice %49 {offsets = [2, 0], sizes = [1, 256], strides = [1, 1]} : vector<9x256xf32> to vector<1x256xf32>
    %cst_44 = arith.constant 0.000000e+00 : f32
    %160 = vector.shape_cast %159 : vector<1x256xf32> to vector<1x256xf32>
    %161 = vector.broadcast %160 : vector<1x256xf32> to vector<18x256xf32>
    %162 = vector.broadcast %cst_44 : f32 to vector<18x256xf32>
    %163 = arith.select %158, %161, %162 : vector<18x256xi1>, vector<18x256xf32>
    %164 = arith.addf %155, %163 : vector<18x256xf32>
    %cst_45 = arith.constant dense<0.000000e+00> : vector<72x256xf32>
    %165 = tpu.matmul %73, %164, %cst_45 {dimension_numbers = #tpu.dot_dimension_numbers<[1], [0], [0], [1], [0, 0, 1, 1], [], []>} : vector<72x18xf32>, vector<18x256xf32>, vector<72x256xf32> -> vector<72x256xf32>
    %166 = vector.extract_strided_slice %50 {offsets = [2, 0], sizes = [1, 256], strides = [1, 1]} : vector<9x256xi32> to vector<1x256xi32>
    %167 = vector.broadcast %166 : vector<1x256xi32> to vector<72x256xi32>
    %168 = arith.cmpi eq, %70, %167 : vector<72x256xi32>
    %169 = vector.extract_strided_slice %40 {offsets = [2, 0], sizes = [1, 256], strides = [1, 1]} : vector<9x256xf32> to vector<1x256xf32>
    %cst_46 = arith.constant 0.000000e+00 : f32
    %170 = vector.shape_cast %169 : vector<1x256xf32> to vector<1x256xf32>
    %171 = vector.broadcast %170 : vector<1x256xf32> to vector<72x256xf32>
    %172 = vector.broadcast %cst_46 : f32 to vector<72x256xf32>
    %173 = arith.select %168, %171, %172 : vector<72x256xi1>, vector<72x256xf32>
    %174 = vector.extract_strided_slice %51 {offsets = [2, 0], sizes = [1, 256], strides = [1, 1]} : vector<9x256xi32> to vector<1x256xi32>
    %175 = vector.broadcast %174 : vector<1x256xi32> to vector<72x256xi32>
    %176 = arith.cmpi eq, %70, %175 : vector<72x256xi32>
    %177 = vector.extract_strided_slice %43 {offsets = [2, 0], sizes = [1, 256], strides = [1, 1]} : vector<9x256xf32> to vector<1x256xf32>
    %cst_47 = arith.constant 0.000000e+00 : f32
    %178 = vector.shape_cast %177 : vector<1x256xf32> to vector<1x256xf32>
    %179 = vector.broadcast %178 : vector<1x256xf32> to vector<72x256xf32>
    %180 = vector.broadcast %cst_47 : f32 to vector<72x256xf32>
    %181 = arith.select %176, %179, %180 : vector<72x256xi1>, vector<72x256xf32>
    %182 = arith.addf %173, %181 : vector<72x256xf32>
    %183 = arith.mulf %182, %165 : vector<72x256xf32>
    %c144 = arith.constant 144 : index
    %c0_48 = arith.constant 0 : index
    %184 = vector.load %arg8[%c144, %c0_48] : memref<648x256xf32, #tpu.memory_space<vmem>>, vector<72x256xf32>
    tpu.vector_store %arg8[%c144, %c0_48], %183 {strides = array<i32>} : memref<648x256xf32, #tpu.memory_space<vmem>>, vector<72x256xf32>,
    %185 = vector.extract_strided_slice %52 {offsets = [3, 0], sizes = [1, 256], strides = [1, 1]} : vector<9x256xi32> to vector<1x256xi32>
    %186 = vector.broadcast %185 : vector<1x256xi32> to vector<18x256xi32>
    %187 = arith.cmpi eq, %71, %186 : vector<18x256xi32>
    %188 = vector.extract_strided_slice %46 {offsets = [3, 0], sizes = [1, 256], strides = [1, 1]} : vector<9x256xf32> to vector<1x256xf32>
    %cst_49 = arith.constant 0.000000e+00 : f32
    %189 = vector.shape_cast %188 : vector<1x256xf32> to vector<1x256xf32>
    %190 = vector.broadcast %189 : vector<1x256xf32> to vector<18x256xf32>
    %191 = vector.broadcast %cst_49 : f32 to vector<18x256xf32>
    %192 = arith.select %187, %190, %191 : vector<18x256xi1>, vector<18x256xf32>
    %193 = vector.extract_strided_slice %53 {offsets = [3, 0], sizes = [1, 256], strides = [1, 1]} : vector<9x256xi32> to vector<1x256xi32>
    %194 = vector.broadcast %193 : vector<1x256xi32> to vector<18x256xi32>
    %195 = arith.cmpi eq, %71, %194 : vector<18x256xi32>
    %196 = vector.extract_strided_slice %49 {offsets = [3, 0], sizes = [1, 256], strides = [1, 1]} : vector<9x256xf32> to vector<1x256xf32>
    %cst_50 = arith.constant 0.000000e+00 : f32
    %197 = vector.shape_cast %196 : vector<1x256xf32> to vector<1x256xf32>
    %198 = vector.broadcast %197 : vector<1x256xf32> to vector<18x256xf32>
    %199 = vector.broadcast %cst_50 : f32 to vector<18x256xf32>
    %200 = arith.select %195, %198, %199 : vector<18x256xi1>, vector<18x256xf32>
    %201 = arith.addf %192, %200 : vector<18x256xf32>
    %cst_51 = arith.constant dense<0.000000e+00> : vector<72x256xf32>
    %202 = tpu.matmul %73, %201, %cst_51 {dimension_numbers = #tpu.dot_dimension_numbers<[1], [0], [0], [1], [0, 0, 1, 1], [], []>} : vector<72x18xf32>, vector<18x256xf32>, vector<72x256xf32> -> vector<72x256xf32>
    %203 = vector.extract_strided_slice %50 {offsets = [3, 0], sizes = [1, 256], strides = [1, 1]} : vector<9x256xi32> to vector<1x256xi32>
    %204 = vector.broadcast %203 : vector<1x256xi32> to vector<72x256xi32>
    %205 = arith.cmpi eq, %70, %204 : vector<72x256xi32>
    %206 = vector.extract_strided_slice %40 {offsets = [3, 0], sizes = [1, 256], strides = [1, 1]} : vector<9x256xf32> to vector<1x256xf32>
    %cst_52 = arith.constant 0.000000e+00 : f32
    %207 = vector.shape_cast %206 : vector<1x256xf32> to vector<1x256xf32>
    %208 = vector.broadcast %207 : vector<1x256xf32> to vector<72x256xf32>
    %209 = vector.broadcast %cst_52 : f32 to vector<72x256xf32>
    %210 = arith.select %205, %208, %209 : vector<72x256xi1>, vector<72x256xf32>
    %211 = vector.extract_strided_slice %51 {offsets = [3, 0], sizes = [1, 256], strides = [1, 1]} : vector<9x256xi32> to vector<1x256xi32>
    %212 = vector.broadcast %211 : vector<1x256xi32> to vector<72x256xi32>
    %213 = arith.cmpi eq, %70, %212 : vector<72x256xi32>
    %214 = vector.extract_strided_slice %43 {offsets = [3, 0], sizes = [1, 256], strides = [1, 1]} : vector<9x256xf32> to vector<1x256xf32>
    %cst_53 = arith.constant 0.000000e+00 : f32
    %215 = vector.shape_cast %214 : vector<1x256xf32> to vector<1x256xf32>
    %216 = vector.broadcast %215 : vector<1x256xf32> to vector<72x256xf32>
    %217 = vector.broadcast %cst_53 : f32 to vector<72x256xf32>
    %218 = arith.select %213, %216, %217 : vector<72x256xi1>, vector<72x256xf32>
    %219 = arith.addf %210, %218 : vector<72x256xf32>
    %220 = arith.mulf %219, %202 : vector<72x256xf32>
    %c216 = arith.constant 216 : index
    %c0_54 = arith.constant 0 : index
    %221 = vector.load %arg8[%c216, %c0_54] : memref<648x256xf32, #tpu.memory_space<vmem>>, vector<72x256xf32>
    tpu.vector_store %arg8[%c216, %c0_54], %220 {strides = array<i32>} : memref<648x256xf32, #tpu.memory_space<vmem>>, vector<72x256xf32>,
    %222 = vector.extract_strided_slice %52 {offsets = [4, 0], sizes = [1, 256], strides = [1, 1]} : vector<9x256xi32> to vector<1x256xi32>
    %223 = vector.broadcast %222 : vector<1x256xi32> to vector<18x256xi32>
    %224 = arith.cmpi eq, %71, %223 : vector<18x256xi32>
    %225 = vector.extract_strided_slice %46 {offsets = [4, 0], sizes = [1, 256], strides = [1, 1]} : vector<9x256xf32> to vector<1x256xf32>
    %cst_55 = arith.constant 0.000000e+00 : f32
    %226 = vector.shape_cast %225 : vector<1x256xf32> to vector<1x256xf32>
    %227 = vector.broadcast %226 : vector<1x256xf32> to vector<18x256xf32>
    %228 = vector.broadcast %cst_55 : f32 to vector<18x256xf32>
    %229 = arith.select %224, %227, %228 : vector<18x256xi1>, vector<18x256xf32>
    %230 = vector.extract_strided_slice %53 {offsets = [4, 0], sizes = [1, 256], strides = [1, 1]} : vector<9x256xi32> to vector<1x256xi32>
    %231 = vector.broadcast %230 : vector<1x256xi32> to vector<18x256xi32>
    %232 = arith.cmpi eq, %71, %231 : vector<18x256xi32>
    %233 = vector.extract_strided_slice %49 {offsets = [4, 0], sizes = [1, 256], strides = [1, 1]} : vector<9x256xf32> to vector<1x256xf32>
    %cst_56 = arith.constant 0.000000e+00 : f32
    %234 = vector.shape_cast %233 : vector<1x256xf32> to vector<1x256xf32>
    %235 = vector.broadcast %234 : vector<1x256xf32> to vector<18x256xf32>
    %236 = vector.broadcast %cst_56 : f32 to vector<18x256xf32>
    %237 = arith.select %232, %235, %236 : vector<18x256xi1>, vector<18x256xf32>
    %238 = arith.addf %229, %237 : vector<18x256xf32>
    %cst_57 = arith.constant dense<0.000000e+00> : vector<72x256xf32>
    %239 = tpu.matmul %73, %238, %cst_57 {dimension_numbers = #tpu.dot_dimension_numbers<[1], [0], [0], [1], [0, 0, 1, 1], [], []>} : vector<72x18xf32>, vector<18x256xf32>, vector<72x256xf32> -> vector<72x256xf32>
    %240 = vector.extract_strided_slice %50 {offsets = [4, 0], sizes = [1, 256], strides = [1, 1]} : vector<9x256xi32> to vector<1x256xi32>
    %241 = vector.broadcast %240 : vector<1x256xi32> to vector<72x256xi32>
    %242 = arith.cmpi eq, %70, %241 : vector<72x256xi32>
    %243 = vector.extract_strided_slice %40 {offsets = [4, 0], sizes = [1, 256], strides = [1, 1]} : vector<9x256xf32> to vector<1x256xf32>
    %cst_58 = arith.constant 0.000000e+00 : f32
    %244 = vector.shape_cast %243 : vector<1x256xf32> to vector<1x256xf32>
    %245 = vector.broadcast %244 : vector<1x256xf32> to vector<72x256xf32>
    %246 = vector.broadcast %cst_58 : f32 to vector<72x256xf32>
    %247 = arith.select %242, %245, %246 : vector<72x256xi1>, vector<72x256xf32>
    %248 = vector.extract_strided_slice %51 {offsets = [4, 0], sizes = [1, 256], strides = [1, 1]} : vector<9x256xi32> to vector<1x256xi32>
    %249 = vector.broadcast %248 : vector<1x256xi32> to vector<72x256xi32>
    %250 = arith.cmpi eq, %70, %249 : vector<72x256xi32>
    %251 = vector.extract_strided_slice %43 {offsets = [4, 0], sizes = [1, 256], strides = [1, 1]} : vector<9x256xf32> to vector<1x256xf32>
    %cst_59 = arith.constant 0.000000e+00 : f32
    %252 = vector.shape_cast %251 : vector<1x256xf32> to vector<1x256xf32>
    %253 = vector.broadcast %252 : vector<1x256xf32> to vector<72x256xf32>
    %254 = vector.broadcast %cst_59 : f32 to vector<72x256xf32>
    %255 = arith.select %250, %253, %254 : vector<72x256xi1>, vector<72x256xf32>
    %256 = arith.addf %247, %255 : vector<72x256xf32>
    %257 = arith.mulf %256, %239 : vector<72x256xf32>
    %c288 = arith.constant 288 : index
    %c0_60 = arith.constant 0 : index
    %258 = vector.load %arg8[%c288, %c0_60] : memref<648x256xf32, #tpu.memory_space<vmem>>, vector<72x256xf32>
    tpu.vector_store %arg8[%c288, %c0_60], %257 {strides = array<i32>} : memref<648x256xf32, #tpu.memory_space<vmem>>, vector<72x256xf32>,
    %259 = vector.extract_strided_slice %52 {offsets = [5, 0], sizes = [1, 256], strides = [1, 1]} : vector<9x256xi32> to vector<1x256xi32>
    %260 = vector.broadcast %259 : vector<1x256xi32> to vector<18x256xi32>
    %261 = arith.cmpi eq, %71, %260 : vector<18x256xi32>
    %262 = vector.extract_strided_slice %46 {offsets = [5, 0], sizes = [1, 256], strides = [1, 1]} : vector<9x256xf32> to vector<1x256xf32>
    %cst_61 = arith.constant 0.000000e+00 : f32
    %263 = vector.shape_cast %262 : vector<1x256xf32> to vector<1x256xf32>
    %264 = vector.broadcast %263 : vector<1x256xf32> to vector<18x256xf32>
    %265 = vector.broadcast %cst_61 : f32 to vector<18x256xf32>
    %266 = arith.select %261, %264, %265 : vector<18x256xi1>, vector<18x256xf32>
    %267 = vector.extract_strided_slice %53 {offsets = [5, 0], sizes = [1, 256], strides = [1, 1]} : vector<9x256xi32> to vector<1x256xi32>
    %268 = vector.broadcast %267 : vector<1x256xi32> to vector<18x256xi32>
    %269 = arith.cmpi eq, %71, %268 : vector<18x256xi32>
    %270 = vector.extract_strided_slice %49 {offsets = [5, 0], sizes = [1, 256], strides = [1, 1]} : vector<9x256xf32> to vector<1x256xf32>
    %cst_62 = arith.constant 0.000000e+00 : f32
    %271 = vector.shape_cast %270 : vector<1x256xf32> to vector<1x256xf32>
    %272 = vector.broadcast %271 : vector<1x256xf32> to vector<18x256xf32>
    %273 = vector.broadcast %cst_62 : f32 to vector<18x256xf32>
    %274 = arith.select %269, %272, %273 : vector<18x256xi1>, vector<18x256xf32>
    %275 = arith.addf %266, %274 : vector<18x256xf32>
    %cst_63 = arith.constant dense<0.000000e+00> : vector<72x256xf32>
    %276 = tpu.matmul %73, %275, %cst_63 {dimension_numbers = #tpu.dot_dimension_numbers<[1], [0], [0], [1], [0, 0, 1, 1], [], []>} : vector<72x18xf32>, vector<18x256xf32>, vector<72x256xf32> -> vector<72x256xf32>
    %277 = vector.extract_strided_slice %50 {offsets = [5, 0], sizes = [1, 256], strides = [1, 1]} : vector<9x256xi32> to vector<1x256xi32>
    %278 = vector.broadcast %277 : vector<1x256xi32> to vector<72x256xi32>
    %279 = arith.cmpi eq, %70, %278 : vector<72x256xi32>
    %280 = vector.extract_strided_slice %40 {offsets = [5, 0], sizes = [1, 256], strides = [1, 1]} : vector<9x256xf32> to vector<1x256xf32>
    %cst_64 = arith.constant 0.000000e+00 : f32
    %281 = vector.shape_cast %280 : vector<1x256xf32> to vector<1x256xf32>
    %282 = vector.broadcast %281 : vector<1x256xf32> to vector<72x256xf32>
    %283 = vector.broadcast %cst_64 : f32 to vector<72x256xf32>
    %284 = arith.select %279, %282, %283 : vector<72x256xi1>, vector<72x256xf32>
    %285 = vector.extract_strided_slice %51 {offsets = [5, 0], sizes = [1, 256], strides = [1, 1]} : vector<9x256xi32> to vector<1x256xi32>
    %286 = vector.broadcast %285 : vector<1x256xi32> to vector<72x256xi32>
    %287 = arith.cmpi eq, %70, %286 : vector<72x256xi32>
    %288 = vector.extract_strided_slice %43 {offsets = [5, 0], sizes = [1, 256], strides = [1, 1]} : vector<9x256xf32> to vector<1x256xf32>
    %cst_65 = arith.constant 0.000000e+00 : f32
    %289 = vector.shape_cast %288 : vector<1x256xf32> to vector<1x256xf32>
    %290 = vector.broadcast %289 : vector<1x256xf32> to vector<72x256xf32>
    %291 = vector.broadcast %cst_65 : f32 to vector<72x256xf32>
    %292 = arith.select %287, %290, %291 : vector<72x256xi1>, vector<72x256xf32>
    %293 = arith.addf %284, %292 : vector<72x256xf32>
    %294 = arith.mulf %293, %276 : vector<72x256xf32>
    %c360 = arith.constant 360 : index
    %c0_66 = arith.constant 0 : index
    %295 = vector.load %arg8[%c360, %c0_66] : memref<648x256xf32, #tpu.memory_space<vmem>>, vector<72x256xf32>
    tpu.vector_store %arg8[%c360, %c0_66], %294 {strides = array<i32>} : memref<648x256xf32, #tpu.memory_space<vmem>>, vector<72x256xf32>,
    %296 = vector.extract_strided_slice %52 {offsets = [6, 0], sizes = [1, 256], strides = [1, 1]} : vector<9x256xi32> to vector<1x256xi32>
    %297 = vector.broadcast %296 : vector<1x256xi32> to vector<18x256xi32>
    %298 = arith.cmpi eq, %71, %297 : vector<18x256xi32>
    %299 = vector.extract_strided_slice %46 {offsets = [6, 0], sizes = [1, 256], strides = [1, 1]} : vector<9x256xf32> to vector<1x256xf32>
    %cst_67 = arith.constant 0.000000e+00 : f32
    %300 = vector.shape_cast %299 : vector<1x256xf32> to vector<1x256xf32>
    %301 = vector.broadcast %300 : vector<1x256xf32> to vector<18x256xf32>
    %302 = vector.broadcast %cst_67 : f32 to vector<18x256xf32>
    %303 = arith.select %298, %301, %302 : vector<18x256xi1>, vector<18x256xf32>
    %304 = vector.extract_strided_slice %53 {offsets = [6, 0], sizes = [1, 256], strides = [1, 1]} : vector<9x256xi32> to vector<1x256xi32>
    %305 = vector.broadcast %304 : vector<1x256xi32> to vector<18x256xi32>
    %306 = arith.cmpi eq, %71, %305 : vector<18x256xi32>
    %307 = vector.extract_strided_slice %49 {offsets = [6, 0], sizes = [1, 256], strides = [1, 1]} : vector<9x256xf32> to vector<1x256xf32>
    %cst_68 = arith.constant 0.000000e+00 : f32
    %308 = vector.shape_cast %307 : vector<1x256xf32> to vector<1x256xf32>
    %309 = vector.broadcast %308 : vector<1x256xf32> to vector<18x256xf32>
    %310 = vector.broadcast %cst_68 : f32 to vector<18x256xf32>
    %311 = arith.select %306, %309, %310 : vector<18x256xi1>, vector<18x256xf32>
    %312 = arith.addf %303, %311 : vector<18x256xf32>
    %cst_69 = arith.constant dense<0.000000e+00> : vector<72x256xf32>
    %313 = tpu.matmul %73, %312, %cst_69 {dimension_numbers = #tpu.dot_dimension_numbers<[1], [0], [0], [1], [0, 0, 1, 1], [], []>} : vector<72x18xf32>, vector<18x256xf32>, vector<72x256xf32> -> vector<72x256xf32>
    %314 = vector.extract_strided_slice %50 {offsets = [6, 0], sizes = [1, 256], strides = [1, 1]} : vector<9x256xi32> to vector<1x256xi32>
    %315 = vector.broadcast %314 : vector<1x256xi32> to vector<72x256xi32>
    %316 = arith.cmpi eq, %70, %315 : vector<72x256xi32>
    %317 = vector.extract_strided_slice %40 {offsets = [6, 0], sizes = [1, 256], strides = [1, 1]} : vector<9x256xf32> to vector<1x256xf32>
    %cst_70 = arith.constant 0.000000e+00 : f32
    %318 = vector.shape_cast %317 : vector<1x256xf32> to vector<1x256xf32>
    %319 = vector.broadcast %318 : vector<1x256xf32> to vector<72x256xf32>
    %320 = vector.broadcast %cst_70 : f32 to vector<72x256xf32>
    %321 = arith.select %316, %319, %320 : vector<72x256xi1>, vector<72x256xf32>
    %322 = vector.extract_strided_slice %51 {offsets = [6, 0], sizes = [1, 256], strides = [1, 1]} : vector<9x256xi32> to vector<1x256xi32>
    %323 = vector.broadcast %322 : vector<1x256xi32> to vector<72x256xi32>
    %324 = arith.cmpi eq, %70, %323 : vector<72x256xi32>
    %325 = vector.extract_strided_slice %43 {offsets = [6, 0], sizes = [1, 256], strides = [1, 1]} : vector<9x256xf32> to vector<1x256xf32>
    %cst_71 = arith.constant 0.000000e+00 : f32
    %326 = vector.shape_cast %325 : vector<1x256xf32> to vector<1x256xf32>
    %327 = vector.broadcast %326 : vector<1x256xf32> to vector<72x256xf32>
    %328 = vector.broadcast %cst_71 : f32 to vector<72x256xf32>
    %329 = arith.select %324, %327, %328 : vector<72x256xi1>, vector<72x256xf32>
    %330 = arith.addf %321, %329 : vector<72x256xf32>
    %331 = arith.mulf %330, %313 : vector<72x256xf32>
    %c432 = arith.constant 432 : index
    %c0_72 = arith.constant 0 : index
    %332 = vector.load %arg8[%c432, %c0_72] : memref<648x256xf32, #tpu.memory_space<vmem>>, vector<72x256xf32>
    tpu.vector_store %arg8[%c432, %c0_72], %331 {strides = array<i32>} : memref<648x256xf32, #tpu.memory_space<vmem>>, vector<72x256xf32>,
    %333 = vector.extract_strided_slice %52 {offsets = [7, 0], sizes = [1, 256], strides = [1, 1]} : vector<9x256xi32> to vector<1x256xi32>
    %334 = vector.broadcast %333 : vector<1x256xi32> to vector<18x256xi32>
    %335 = arith.cmpi eq, %71, %334 : vector<18x256xi32>
    %336 = vector.extract_strided_slice %46 {offsets = [7, 0], sizes = [1, 256], strides = [1, 1]} : vector<9x256xf32> to vector<1x256xf32>
    %cst_73 = arith.constant 0.000000e+00 : f32
    %337 = vector.shape_cast %336 : vector<1x256xf32> to vector<1x256xf32>
    %338 = vector.broadcast %337 : vector<1x256xf32> to vector<18x256xf32>
    %339 = vector.broadcast %cst_73 : f32 to vector<18x256xf32>
    %340 = arith.select %335, %338, %339 : vector<18x256xi1>, vector<18x256xf32>
    %341 = vector.extract_strided_slice %53 {offsets = [7, 0], sizes = [1, 256], strides = [1, 1]} : vector<9x256xi32> to vector<1x256xi32>
    %342 = vector.broadcast %341 : vector<1x256xi32> to vector<18x256xi32>
    %343 = arith.cmpi eq, %71, %342 : vector<18x256xi32>
    %344 = vector.extract_strided_slice %49 {offsets = [7, 0], sizes = [1, 256], strides = [1, 1]} : vector<9x256xf32> to vector<1x256xf32>
    %cst_74 = arith.constant 0.000000e+00 : f32
    %345 = vector.shape_cast %344 : vector<1x256xf32> to vector<1x256xf32>
    %346 = vector.broadcast %345 : vector<1x256xf32> to vector<18x256xf32>
    %347 = vector.broadcast %cst_74 : f32 to vector<18x256xf32>
    %348 = arith.select %343, %346, %347 : vector<18x256xi1>, vector<18x256xf32>
    %349 = arith.addf %340, %348 : vector<18x256xf32>
    %cst_75 = arith.constant dense<0.000000e+00> : vector<72x256xf32>
    %350 = tpu.matmul %73, %349, %cst_75 {dimension_numbers = #tpu.dot_dimension_numbers<[1], [0], [0], [1], [0, 0, 1, 1], [], []>} : vector<72x18xf32>, vector<18x256xf32>, vector<72x256xf32> -> vector<72x256xf32>
    %351 = vector.extract_strided_slice %50 {offsets = [7, 0], sizes = [1, 256], strides = [1, 1]} : vector<9x256xi32> to vector<1x256xi32>
    %352 = vector.broadcast %351 : vector<1x256xi32> to vector<72x256xi32>
    %353 = arith.cmpi eq, %70, %352 : vector<72x256xi32>
    %354 = vector.extract_strided_slice %40 {offsets = [7, 0], sizes = [1, 256], strides = [1, 1]} : vector<9x256xf32> to vector<1x256xf32>
    %cst_76 = arith.constant 0.000000e+00 : f32
    %355 = vector.shape_cast %354 : vector<1x256xf32> to vector<1x256xf32>
    %356 = vector.broadcast %355 : vector<1x256xf32> to vector<72x256xf32>
    %357 = vector.broadcast %cst_76 : f32 to vector<72x256xf32>
    %358 = arith.select %353, %356, %357 : vector<72x256xi1>, vector<72x256xf32>
    %359 = vector.extract_strided_slice %51 {offsets = [7, 0], sizes = [1, 256], strides = [1, 1]} : vector<9x256xi32> to vector<1x256xi32>
    %360 = vector.broadcast %359 : vector<1x256xi32> to vector<72x256xi32>
    %361 = arith.cmpi eq, %70, %360 : vector<72x256xi32>
    %362 = vector.extract_strided_slice %43 {offsets = [7, 0], sizes = [1, 256], strides = [1, 1]} : vector<9x256xf32> to vector<1x256xf32>
    %cst_77 = arith.constant 0.000000e+00 : f32
    %363 = vector.shape_cast %362 : vector<1x256xf32> to vector<1x256xf32>
    %364 = vector.broadcast %363 : vector<1x256xf32> to vector<72x256xf32>
    %365 = vector.broadcast %cst_77 : f32 to vector<72x256xf32>
    %366 = arith.select %361, %364, %365 : vector<72x256xi1>, vector<72x256xf32>
    %367 = arith.addf %358, %366 : vector<72x256xf32>
    %368 = arith.mulf %367, %350 : vector<72x256xf32>
    %c504 = arith.constant 504 : index
    %c0_78 = arith.constant 0 : index
    %369 = vector.load %arg8[%c504, %c0_78] : memref<648x256xf32, #tpu.memory_space<vmem>>, vector<72x256xf32>
    tpu.vector_store %arg8[%c504, %c0_78], %368 {strides = array<i32>} : memref<648x256xf32, #tpu.memory_space<vmem>>, vector<72x256xf32>,
    %370 = vector.extract_strided_slice %52 {offsets = [8, 0], sizes = [1, 256], strides = [1, 1]} : vector<9x256xi32> to vector<1x256xi32>
    %371 = vector.broadcast %370 : vector<1x256xi32> to vector<18x256xi32>
    %372 = arith.cmpi eq, %71, %371 : vector<18x256xi32>
    %373 = vector.extract_strided_slice %46 {offsets = [8, 0], sizes = [1, 256], strides = [1, 1]} : vector<9x256xf32> to vector<1x256xf32>
    %cst_79 = arith.constant 0.000000e+00 : f32
    %374 = vector.shape_cast %373 : vector<1x256xf32> to vector<1x256xf32>
    %375 = vector.broadcast %374 : vector<1x256xf32> to vector<18x256xf32>
    %376 = vector.broadcast %cst_79 : f32 to vector<18x256xf32>
    %377 = arith.select %372, %375, %376 : vector<18x256xi1>, vector<18x256xf32>
    %378 = vector.extract_strided_slice %53 {offsets = [8, 0], sizes = [1, 256], strides = [1, 1]} : vector<9x256xi32> to vector<1x256xi32>
    %379 = vector.broadcast %378 : vector<1x256xi32> to vector<18x256xi32>
    %380 = arith.cmpi eq, %71, %379 : vector<18x256xi32>
    %381 = vector.extract_strided_slice %49 {offsets = [8, 0], sizes = [1, 256], strides = [1, 1]} : vector<9x256xf32> to vector<1x256xf32>
    %cst_80 = arith.constant 0.000000e+00 : f32
    %382 = vector.shape_cast %381 : vector<1x256xf32> to vector<1x256xf32>
    %383 = vector.broadcast %382 : vector<1x256xf32> to vector<18x256xf32>
    %384 = vector.broadcast %cst_80 : f32 to vector<18x256xf32>
    %385 = arith.select %380, %383, %384 : vector<18x256xi1>, vector<18x256xf32>
    %386 = arith.addf %377, %385 : vector<18x256xf32>
    %cst_81 = arith.constant dense<0.000000e+00> : vector<72x256xf32>
    %387 = tpu.matmul %73, %386, %cst_81 {dimension_numbers = #tpu.dot_dimension_numbers<[1], [0], [0], [1], [0, 0, 1, 1], [], []>} : vector<72x18xf32>, vector<18x256xf32>, vector<72x256xf32> -> vector<72x256xf32>
    %388 = vector.extract_strided_slice %50 {offsets = [8, 0], sizes = [1, 256], strides = [1, 1]} : vector<9x256xi32> to vector<1x256xi32>
    %389 = vector.broadcast %388 : vector<1x256xi32> to vector<72x256xi32>
    %390 = arith.cmpi eq, %70, %389 : vector<72x256xi32>
    %391 = vector.extract_strided_slice %40 {offsets = [8, 0], sizes = [1, 256], strides = [1, 1]} : vector<9x256xf32> to vector<1x256xf32>
    %cst_82 = arith.constant 0.000000e+00 : f32
    %392 = vector.shape_cast %391 : vector<1x256xf32> to vector<1x256xf32>
    %393 = vector.broadcast %392 : vector<1x256xf32> to vector<72x256xf32>
    %394 = vector.broadcast %cst_82 : f32 to vector<72x256xf32>
    %395 = arith.select %390, %393, %394 : vector<72x256xi1>, vector<72x256xf32>
    %396 = vector.extract_strided_slice %51 {offsets = [8, 0], sizes = [1, 256], strides = [1, 1]} : vector<9x256xi32> to vector<1x256xi32>
    %397 = vector.broadcast %396 : vector<1x256xi32> to vector<72x256xi32>
    %398 = arith.cmpi eq, %70, %397 : vector<72x256xi32>
    %399 = vector.extract_strided_slice %43 {offsets = [8, 0], sizes = [1, 256], strides = [1, 1]} : vector<9x256xf32> to vector<1x256xf32>
    %cst_83 = arith.constant 0.000000e+00 : f32
    %400 = vector.shape_cast %399 : vector<1x256xf32> to vector<1x256xf32>
    %401 = vector.broadcast %400 : vector<1x256xf32> to vector<72x256xf32>
    %402 = vector.broadcast %cst_83 : f32 to vector<72x256xf32>
    %403 = arith.select %398, %401, %402 : vector<72x256xi1>, vector<72x256xf32>
    %404 = arith.addf %395, %403 : vector<72x256xf32>
    %405 = arith.mulf %404, %387 : vector<72x256xf32>
    %c576 = arith.constant 576 : index
    %c0_84 = arith.constant 0 : index
    %406 = vector.load %arg8[%c576, %c0_84] : memref<648x256xf32, #tpu.memory_space<vmem>>, vector<72x256xf32>
    tpu.vector_store %arg8[%c576, %c0_84], %405 {strides = array<i32>} : memref<648x256xf32, #tpu.memory_space<vmem>>, vector<72x256xf32>,
    %c0_85 = arith.constant 0 : index
    %c0_86 = arith.constant 0 : index
    %407 = vector.load %arg6[%c0_85, %c0_86] : memref<8x648xf32, #tpu.memory_space<vmem>>, vector<8x648xf32>
    %c0_87 = arith.constant 0 : index
    %c0_88 = arith.constant 0 : index
    %408 = vector.load %arg8[%c0_87, %c0_88] : memref<648x256xf32, #tpu.memory_space<vmem>>, vector<648x256xf32>
    %cst_89 = arith.constant dense<0.000000e+00> : vector<8x256xf32>
    %409 = tpu.matmul %407, %408, %cst_89 {dimension_numbers = #tpu.dot_dimension_numbers<[1], [0], [0], [1], [0, 0, 1, 1], [], []>} : vector<8x648xf32>, vector<648x256xf32>, vector<8x256xf32> -> vector<8x256xf32>
    %c0_90 = arith.constant 0 : index
    %c0_91 = arith.constant 0 : index
    %c0_92 = arith.constant 0 : index
    %410 = vector.load %arg7[%c0_90, %c0_91, %c0_92] : memref<1x8x256xf32, #tpu.memory_space<vmem>>, vector<1x8x256xf32>
    %411 = vector.shape_cast %410 : vector<1x8x256xf32> to vector<8x256xf32>
    %412 = vector.shape_cast %409 : vector<8x256xf32> to vector<1x8x256xf32>
    tpu.vector_store %arg7[%c0_90, %c0_91, %c0_92], %412 {strides = array<i32>} : memref<1x8x256xf32, #tpu.memory_space<vmem>>, vector<1x8x256xf32>,
    return
  }
  func.func @transform_0(%arg0: i32, %arg1: i32) -> (i32, i32, i32) {
    %c0_i32 = arith.constant 0 : i32
    %c0_i32_0 = arith.constant 0 : i32
    return %arg0, %c0_i32, %arg1 : i32, i32, i32
  }
  func.func @transform_1(%arg0: i32, %arg1: i32) -> (i32, i32, i32) {
    %c0_i32 = arith.constant 0 : i32
    %c0_i32_0 = arith.constant 0 : i32
    %c0_i32_1 = arith.constant 0 : i32
    return %arg0, %c0_i32, %c0_i32_0 : i32, i32, i32
  }
  func.func @transform_2(%arg0: i32, %arg1: i32) -> (i32, i32) {
    %c0_i32 = arith.constant 0 : i32
    %c0_i32_0 = arith.constant 0 : i32
    return %c0_i32, %arg1 : i32, i32
  }
  func.func @transform_3(%arg0: i32, %arg1: i32) -> (i32, i32) {
    %c0_i32 = arith.constant 0 : i32
    %c0_i32_0 = arith.constant 0 : i32
    %c0_i32_1 = arith.constant 0 : i32
    return %c0_i32, %c0_i32_0 : i32, i32
  }
  func.func @transform_4(%arg0: i32, %arg1: i32) -> (i32, i32) {
    %c0_i32 = arith.constant 0 : i32
    %c0_i32_0 = arith.constant 0 : i32
    %c0_i32_1 = arith.constant 0 : i32
    return %c0_i32, %c0_i32_0 : i32, i32
  }
  func.func @transform_5(%arg0: i32, %arg1: i32) -> (i32, i32, i32) {
    %c0_i32 = arith.constant 0 : i32
    %c0_i32_0 = arith.constant 0 : i32
    return %arg0, %c0_i32, %arg1 : i32, i32, i32
  }
}

</mosaic_0001>

<bundles_post_ra>
// kernel: tpu_custom_call.1
= control target key start
LH: loop header
LB: loop body
LE: loop exit
PB: predicated region body
PF: predicated region fallthrough
CT: control target
= control target key end

     0   :  { %10 = vsyncpa [#allocation4], 0  ;;  %s7659_s0 = inlined_call_operand.vmem [shape: f32[2,36,256], index: 0, kind: input, shape index: {}]   ;;  %s7660_s1 = inlined_call_operand.vmem [shape: f32[2,72,18], index: 1, kind: input, shape index: {}]   ;;  %s7661_s2 = inlined_call_operand.vmem [shape: f32[18,256], index: 2, kind: input, shape index: {}]   ;;  %s7662_s3 = inlined_call_operand.vmem [shape: f32[18,36], index: 3, kind: input, shape index: {}]   ;;  %s7663_s4 = inlined_call_operand.vmem [shape: f32[8,648], index: 4, kind: input, shape index: {}]   ;;  %s7664_s5 = inlined_call_operand.hbm [shape: f32[2,8,256], index: 5, kind: output, shape index: {}]  }
   0x1   :  { %12 = vsyncpa [#allocation4 + $0x1], 0  ;;  %s4192_s18 = smov 0   ;;  %s4194_s19 = smov 0  }
   0x2   :  { %s4196_s20 = smov 0   ;;  %s4198_s21 = smov 0  }
   0x3   :  { %s4200_s22 = smov 0   ;;  %s4202_s23 = smov 0  }
   0x4 LB: > { %s3758_s24 = sadd.s32 4294967295, %s4159_s23   ;;  %s3759_s25 = sadd.s32 4294967294, %s4159_s23   ;;  %s4159_s23 = sphi %s4202_s23, %s18_s23   ;;  %s4155_s22 = sphi %s4200_s22, %s8223_s22   ;;  %s4151_s21 = sphi %s4198_s21, %s8222_s21   ;;  %s4147_s20 = sphi %s4196_s20, %s8221_s20   ;;  %s4143_s19 = sphi %s4194_s19, %s8220_s19   ;;  %s4139_s18 = sphi %s4192_s18, %s8219_s18  }
   0x5   : > { %s30_s26 = sadd.s32 1, %s4155_s22  ;;  %s161_s27 = sadd.s32 1, %s4147_s20 }
   0x6   : > { %p32_p0 = scmp.ge.s32.totalorder %s30_s26, 2  ;;  %p171_p1 = scmp.ne.s32.totalorder %s4147_s20, %s4143_s19 }
   0x7   : > { %p172_p2 = scmp.eq.s32.totalorder %s3758_s24, 1  ;;  %p177_p3 = scmp.ne.s32.totalorder %s4143_s19, %s4139_s18 }
   0x8   : > { %s8225_s26 = smov (%p32_p0, %s30_s26), 0  ;;  %p178_p5 = scmp.eq.s32.totalorder %s3759_s25, 1 }
   0x9   : > { %p4232_p4 = por %p172_p2, %p171_p1  ;;  %s156_s29 = ssub.s32 %s4155_s22, %s8225_s26 }
   0xa   : > { %p3763_p6 = scmp.ge.s32.totalorder %s4159_s23, 1  ;;  %p159_p7 = scmp.eq.s32.totalorder %s156_s29, 0 }
   0xb   : > { %p4239_p8 = por %p178_p5, %p177_p3  ;;  %p232_p9 = scmp.lt.s32.totalorder %s4159_s23, 3 }
   0xc   : > { %s4245_s6 = scalar_select %p159_p7, %s4147_s20, %s161_s27  }
   0xd   : > { %p233_p10 = pnand %p3763_p6, %p232_p9 }
   0xf   : > { %236 = sbr.rel (%p233_p10) target bundleno = 907 (0x38b), region = 40 }
  0x14   : > { %p275_p11 = scmp.lt.s32.totalorder %s4151_s21, 1  ;;  %vm319_vm0 = vcmask 1043456   ;;  %v296_v9 = vld [vmem:[%s7662_s3] sm:$0xff]  ;;  %vm309_vm1 = vcmask 293888   ;;  %v297_v11 = vld [vmem:[%s7662_s3 + $0x8] sm:$0xff]  ;;  %v380_v16 = vld [vmem:[%s7661_s2 + $0x10] sm:$0xff]  ;;  %v474_v22 = vlaneseq }
  0x15   : > { %v298_v13 = vld [vmem:[%s7662_s3 + $0x10] sm:$0x3]  ;;  %v378_v17 = vld [vmem:[%s7661_s2] sm:$0xff]  ;;  %v381_v20 = vld [vmem:[%s7661_s2 + $0x18] sm:$0xff]  ;;  %vm865_vm5 = vcmask 1041408   ;;  %vm837_vm14 = vcmask 146432  }
  0x16   : > { %s4249_s7 = scalar_select %p275_p11, %s4151_s21, 1  ;;  %v379_v26 = vld [vmem:[%s7661_s2 + $0x8] sm:$0xff]  ;;  %v4276_v28 = vshrl.u32 %v474_v22, 7 }
  0x17   : > { %s271_s16 = sand.u32 1, %s4143_s19   ;;  %s3962_s25 = sshll.u32 %s4151_s21, 4 }
  0x18   : > { %s3963_s8 = smul.u32 80, %s4249_s7  ;;  %7788 = vst [vmem:[#allocation6_spill] sm:$0xff] %v4276_v28  ;;  %v4281_v42 = vadd.s32 16, %v4276_v28  ;;  %v4284_v43 = vadd.s32 8, %v4276_v28  ;;  %s3764_s17 = sshll.u32 %s271_s16, 4 }
  0x19   : > { %s3964_s12 = smul.u32 72, %s4249_s7  ;;  %s273_s24 = scalar_lea.vmem [#allocation3], %s3764_s17 }
  0x1a   : > { %s282_s11 = scalar_lea.vmem %s7659_s0, %s3963_s8  ;;  %7789 = vst [vmem:[#allocation7_spill] sm:$0xff] %v4284_v43  ;;  %s3650_s8 = scalar_lea.hbm %s7664_s5, %s3962_s25 }
  0x1b   : > { %v307_v0 = vld [vmem:[%s282_s11 + $0x40] sm:$0xf]  ;;  %v308_v1 = vld [vmem:[%s282_s11 + $0x48] sm:$0xf]  ;;  %v305_v2 = vld [vmem:[%s282_s11 + $0x30] sm:$0xff]  ;;  %s4405_s14 = scalar_lea.vmem %s7660_s1, %s3964_s12  ;;  %s3652_s9 = sshll.u32 %s273_s24, 4  ;;  %s3653_s9 = int_to_ptr.vmem [resolvable:$true] %s3652_s9 }
  0x1c   : > { %3767 = vmatpush.msk.msra.mxu0 %vm319_vm0, %v307_v0  ;;  %3771 = vmatpush.msk.msra.mxu1 %vm319_vm0, %v308_v1  ;;  %v306_v3 = vld [vmem:[%s282_s11 + $0x38] sm:$0xff]  ;;  %v303_v4 = vld [vmem:[%s282_s11 + $0x20] sm:$0xff]  ;;  %v304_v5 = vld [vmem:[%s282_s11 + $0x28] sm:$0xff]  ;;  %s3654_s10 = sshll.u32 %s3650_s8, 4  ;;  %s3655_s10 = int_to_ptr.hbm [resolvable:$true] %s3654_s10 }
  0x1d   : > { %v301_v6 = vld [vmem:[%s282_s11 + $0x10] sm:$0xff]  ;;  %v302_v7 = vld [vmem:[%s282_s11 + $0x18] sm:$0xff]  ;;  %v299_v8 = vld [vmem:[%s282_s11] sm:$0xff]  ;;  %s4095_s12 = sshra.s32 %s3655_s10, 4  ;;  %s4096_s12 = int_to_ptr.hbm [resolvable:$true] %s4095_s12 }
  0x1e   : > { %338 = vmatpush.msra.mxu0 %v305_v2  ;;  %364 = vmatpush.msra.mxu1 %v306_v3  ;;  %v300_v10 = vld [vmem:[%s282_s11 + $0x8] sm:$0xff]  ;;  %s3637_s11 = scalar_lea.sflag [#allocation4], %s271_s16  ;;  %s4097_s21 = scalar_lea.hbm %s4096_s12, 16 }
  0x1f   : > { %p4098_p12 = scmp.ne.s32.totalorder %s4096_s12, %s4097_s21  ;;  %p4102_p1 = scmp.lt.s32.totalorder %s4096_s12, %s7664_s5 }
  0x20   : > { %339 = vmatpush.msra.mxu0 %v303_v4  ;;  %365 = vmatpush.msra.mxu1 %v304_v5 }
  0x21   : > { %p4099_p13 = pnand %p4098_p12, %p4232_p4 }
  0x22   : > { %340 = vmatpush.msra.mxu0 %v301_v6  ;;  %366 = vmatpush.msra.mxu1 %v302_v7 }
  0x23   : > { %p4100_p0 = pneg %p4099_p13 }
  0x24   : > { %341 = vmatpush.msra.mxu0 %v299_v8  ;;  %367 = vmatpush.msra.mxu1 %v300_v10 }
  0x25   : > { %3768 = vmatmul.msk.f32.vlgmr.msra.gmra.mxu0 %vm309_vm1, %v296_v9  ;;  %3772 = vmatmul.msk.f32.vlgmr.msra.gmra.mxu1 %vm309_vm1, %v296_v9 }
  0x2d   : > { %3769 = vmatmul.msk.f32.gmra.mxu0 %vm309_vm1, %v297_v11  ;;  %3773 = vmatmul.msk.f32.gmra.mxu1 %vm309_vm1, %v297_v11 }
  0x35   : > { %3770 = vmatmul.msk.f32.gmra.mxu0 %vm309_vm1, %v298_v13  ;;  %3774 = vmatmul.msk.f32.gmra.mxu1 %vm309_vm1, %v298_v13 }
  0xa2   : > { %v343_v12 = vpop.f32.mrf.mxu0  ;;  %v369_v14 = vpop.f32.mrf.mxu1 }
  0xa3   : > { %v384_v21 = vadd.f32 %v378_v17, %v343_v12  ;;  %v4278_v33 = vadd.f32 %v379_v26, %v369_v14 }
  0xa5   : > { %v390_v27 = vfloor.f32 %v384_v21  ;;  %v426_v32 = vmax.f32 %v384_v21, 0.0  ;;  %v391_v50 = vfloor.f32 %v4278_v33  ;;  %v427_v52 = vmax.f32 %v4278_v33, 0.0 }
  0xa7   : > { %v404_v40 = vadd.f32 1.0, %v390_v27  ;;  %v4288_v48 = vmax.f32 %v390_v27, 0.0  ;;  %v4290_v49 = vmin.f32 %v426_v32, 17.0  ;;  %v4312_v7 = vmax.f32 %v391_v50, 0.0 }
  0xa9   : > { %v408_v55 = vmax.f32 %v404_v40, 0.0  ;;  %v400_v2 = vmin.f32 %v4288_v48, 17.0  ;;  %v516_v48 = vand.u32 65535, %v4284_v43 }
  0xaa   : > { %v346_v15 = vpop.f32.mrf.mxu0  ;;  %v372_v19 = vpop.f32.mrf.mxu1 }
  0xab   : > { %v386_v18 = vadd.f32 %v380_v16, %v346_v15  ;;  %v387_v24 = vadd.f32 %v381_v20, %v372_v19  ;;  %v4308_v6 = vmin.f32 %v408_v55, 17.0 }
  0xad   : > { %v392_v23 = vfloor.f32 %v386_v18  ;;  %v428_v25 = vmax.f32 %v386_v18, 0.0  ;;  %v393_v31 = vfloor.f32 %v387_v24  ;;  %v429_v35 = vmax.f32 %v387_v24, 0.0 }
  0xaf   : > { %v398_v29 = vmax.f32 %v392_v23, 0.0  ;;  %v406_v30 = vadd.f32 1.0, %v392_v23  ;;  %v432_v34 = vmin.f32 %v428_v25, 17.0  ;;  %v399_v38 = vmax.f32 %v393_v31, 0.0 }
  0xb0   : > { %v407_v39 = vadd.f32 1.0, %v393_v31  ;;  %v433_v41 = vmin.f32 %v429_v35, 17.0 }
  0xb1   : > { %v402_v36 = vmin.f32 %v398_v29, 17.0  ;;  %v410_v37 = vmax.f32 %v406_v30, 0.0  ;;  %v403_v47 = vmin.f32 %v399_v38, 17.0 }
  0xb2   : > { %v411_v51 = vmax.f32 %v407_v39, 0.0 }
  0xb3   : > { %v414_v44 = vmin.f32 %v410_v37, 17.0  ;;  %v440_v45 = vsub.f32 %v402_v36, %v432_v34  ;;  %v4286_v46 = vcvt.f32.s32 %v402_v36  ;;  %v441_v58 = vsub.f32 %v403_v47, %v433_v41 }
  0xb4   : > { %v415_v57 = vmin.f32 %v411_v51, 17.0  ;;  %v4298_v61 = vcvt.f32.s32 %v403_v47 }
  0xb5   : > { %v448_v53 = vsub.f32 %v414_v44, %v432_v34  ;;  %vm3983_vm2 = vcmp.lt.s32.totalorder %v414_v44, 0  ;;  %v3984_v54 = vceil.f32 %v414_v44  ;;  %v3985_v56 = vfloor.f32 %v414_v44 }
  0xb6   : > { %v4294_v59 = vadd.f32 1.0, %v440_v45  ;;  %v4301_v62 = vperm.slane %v4286_v46, 1  ;;  %v4303_v0 = vadd.f32 1.0, %v441_v58  ;;  %v449_v1 = vsub.f32 %v415_v57, %v433_v41 }
  0xb7   : > { %v4296_v60 = vsub.f32 1.0, %v448_v53  ;;  %v3986_v63 = vsel %vm3983_vm2, %v3984_v54, %v3985_v56  ;;  %vm3988_vm3 = vcmp.lt.s32.totalorder %v415_v57, 0  ;;  %v3989_v4 = vceil.f32 %v415_v57 }
  0xb8   : > { %v4306_v3 = vcvt.f32.s32 %v3986_v63  ;;  %v3990_v5 = vfloor.f32 %v415_v57  ;;  %v4314_v8 = vsub.f32 1.0, %v449_v1  ;;  %vm805_vm4 = vcmp.eq.s32.totalorder %v4281_v42, %v4301_v62 }
  0xb9   : > { %v4319_v10 = vperm.slane %v4294_v59, 1  ;;  %v4327_v13 = vperm.slane %v4296_v60, 1  ;;  %v4330_v14 = vperm.slane %v4298_v61, 1  ;;  %v4333_v15 = vperm.slane %v4303_v0, 1 }
  0xba   : > { %7790 = vst [vmem:[#allocation8_spill] sm:$0xff] %v4306_v3  ;;  %v3991_v9 = vsel %vm3988_vm3, %v3989_v4, %v3990_v5  ;;  %v4322_v11 = vperm.slane %v4306_v3, 1  ;;  %v4339_v17 = vperm.slane %v4314_v8, 1  ;;  %v4342_v18 = vperm.slane %v4286_v46, 2 }
  0xbb   : > { %7791 = vst [vmem:[#allocation9_spill] sm:$0xff] %v4314_v8  ;;  %v4324_v12 = vcvt.f32.s32 %v3991_v9  ;;  %v813_v16 = vsel %vm805_vm4, %v4319_v10, 0.0  ;;  %vm806_vm7 = vcmp.eq.s32.totalorder %v4281_v42, %v4330_v14  ;;  %v4351_v21 = vperm.slane %v4294_v59, 2 }
  0xbc   : > { %vm821_vm6 = vcmp.eq.s32.totalorder %v4281_v42, %v4322_v11  ;;  %v814_v23 = vsel %vm806_vm7, %v4333_v15, 0.0  ;;  %vm1100_vm8 = vcmp.eq.s32.totalorder %v4281_v42, %v4342_v18  ;;  %v4357_v24 = vperm.slane %v4306_v3, 2 }
  0xbd   : > { %7792 = vst [vmem:[#allocation10_spill] sm:$0xff] %v4324_v12  ;;  %v829_v19 = vsel %vm821_vm6, %v4327_v13, 0.0  ;;  %v4348_v20 = vperm.slane %v4324_v12, 1  ;;  %v1108_v25 = vsel %vm1100_vm8, %v4351_v21, 0.0  ;;  %v1118_v26 = vperm.slane %v4296_v60, 2 }
  0xbe   : > { %v835_v22 = vadd.f32 %v829_v19, %v813_v16  ;;  %v4364_v27 = vperm.slane %v4298_v61, 2  ;;  %vm1116_vm10 = vcmp.eq.s32.totalorder %v4281_v42, %v4357_v24  ;;  %v1103_v30 = vperm.slane %v4303_v0, 2 }
  0xbf   : > { %vm822_vm9 = vcmp.eq.s32.totalorder %v4281_v42, %v4348_v20  ;;  %v4372_v31 = vperm.slane %v4324_v12, 2  ;;  %v1124_v34 = vsel %vm1116_vm10, %v1118_v26, 0.0  ;;  %v1119_v35 = vperm.slane %v4314_v8, 2 }
  0xc0   : > { %3775 = vmatpush.msk.msra.mxu2 %vm865_vm5, %v835_v22  ;;  %v830_v29 = vsel %vm822_vm9, %v4339_v17, 0.0  ;;  %vm1101_vm11 = vcmp.eq.s32.totalorder %v4281_v42, %v4364_v27  ;;  %v1130_v36 = vadd.f32 %v1124_v34, %v1108_v25  ;;  %vm803_vm13 = vcmp.eq.s32.totalorder %v4284_v43, %v4301_v62 }
  0xc1   : > { %v836_v32 = vadd.f32 %v830_v29, %v814_v23  ;;  %v1109_v37 = vsel %vm1101_vm11, %v1103_v30, 0.0  ;;  %vm1117_vm12 = vcmp.eq.s32.totalorder %v4281_v42, %v4372_v31  ;;  %v811_v39 = vsel %vm803_vm13, %v4319_v10, 0.0 }
  0xc2   : > { %v1125_v38 = vsel %vm1117_vm12, %v1119_v35, 0.0  ;;  %vm819_vm15 = vcmp.eq.s32.totalorder %v4284_v43, %v4322_v11  ;;  %vm804_vm0 = vcmp.eq.s32.totalorder %v4284_v43, %v4330_v14  ;;  %3795 = vmatpush.msk.msrb.mxu0 %vm865_vm5, %v1130_v36  ;;  %vm820_vm1 = vcmp.eq.s32.totalorder %v4284_v43, %v4348_v20 }
  0xc3   : > { %3785 = vmatpush.msk.msra.mxu3 %vm865_vm5, %v836_v32  ;;  %v1131_v40 = vadd.f32 %v1125_v38, %v1109_v37  ;;  %v827_v41 = vsel %vm819_vm15, %v4327_v13, 0.0  ;;  %v812_v44 = vsel %vm804_vm0, %v4333_v15, 0.0  ;;  %v828_v47 = vsel %vm820_vm1, %v4339_v17, 0.0 }
  0xc4   : > { %v833_v45 = vadd.f32 %v827_v41, %v811_v39  ;;  %vm1098_vm2 = vcmp.eq.s32.totalorder %v4284_v43, %v4342_v18  ;;  %vm1114_vm3 = vcmp.eq.s32.totalorder %v4284_v43, %v4357_v24  ;;  %v834_v51 = vadd.f32 %v828_v47, %v812_v44 }
  0xc5   : > { %3805 = vmatpush.msk.msrb.mxu1 %vm865_vm5, %v1131_v40  ;;  %v1106_v53 = vsel %vm1098_vm2, %v4351_v21, 0.0  ;;  %v1122_v54 = vsel %vm1114_vm3, %v1118_v26, 0.0  ;;  %vm1099_vm4 = vcmp.eq.s32.totalorder %v4284_v43, %v4364_v27  ;;  %vm1115_vm6 = vcmp.eq.s32.totalorder %v4284_v43, %v4372_v31 }
  0xc6   : > { %886 = vmatpush.msra.mxu2 %v833_v45  ;;  %v1128_v55 = vadd.f32 %v1122_v54, %v1106_v53  ;;  %v1107_v56 = vsel %vm1099_vm4, %v1103_v30, 0.0  ;;  %vm801_vm7 = vcmp.eq.s32.totalorder %v4276_v28, %v4301_v62  ;;  %930 = vmatpush.msra.mxu3 %v834_v51  ;;  %v1123_v57 = vsel %vm1115_vm6, %v1119_v35, 0.0  ;;  %v4421_v62 = vld [vmem:[%s4405_s14] sm:$0xff] }
  0xc7   : > { %v809_v58 = vsel %vm801_vm7, %v4319_v10, 0.0  ;;  %vm817_vm8 = vcmp.eq.s32.totalorder %v4276_v28, %v4322_v11  ;;  %vm802_vm9 = vcmp.eq.s32.totalorder %v4276_v28, %v4330_v14  ;;  %v1129_v63 = vadd.f32 %v1123_v57, %v1107_v56 }
  0xc8   : > { %1152 = vmatpush.msrb.mxu0 %v1128_v55  ;;  %v825_v1 = vsel %vm817_vm8, %v4327_v13, 0.0  ;;  %v810_v4 = vsel %vm802_vm9, %v4333_v15, 0.0  ;;  %vm818_vm10 = vcmp.eq.s32.totalorder %v4276_v28, %v4348_v20  ;;  %vm1096_vm11 = vcmp.eq.s32.totalorder %v4276_v28, %v4342_v18 }
  0xc9   : > { %v831_v5 = vadd.f32 %v825_v1, %v809_v58  ;;  %v826_v9 = vsel %vm818_vm10, %v4339_v17, 0.0  ;;  %vm1112_vm12 = vcmp.eq.s32.totalorder %v4276_v28, %v4357_v24  ;;  %1196 = vmatpush.msrb.mxu1 %v1129_v63  ;;  %v1104_v11 = vsel %vm1096_vm11, %v4351_v21, 0.0 }
  0xca   : > { %v832_v10 = vadd.f32 %v826_v9, %v810_v4  ;;  %v1120_v13 = vsel %vm1112_vm12, %v1118_v26, 0.0  ;;  %vm1097_vm13 = vcmp.eq.s32.totalorder %v4276_v28, %v4364_v27  ;;  %vm1113_vm15 = vcmp.eq.s32.totalorder %v4276_v28, %v4372_v31 }
  0xcb   : > { %887 = vmatpush.msra.mxu2 %v831_v5  ;;  %v1126_v14 = vadd.f32 %v1120_v13, %v1104_v11  ;;  %v1105_v15 = vsel %vm1097_vm13, %v1103_v30, 0.0  ;;  %v1360_v16 = vperm.slane %v4286_v46, 3  ;;  %v1121_v17 = vsel %vm1113_vm15, %v1119_v35, 0.0  ;;  %v4458_v35 = vld [vmem:[%s4405_s14 + $0x8] sm:$0xff]  ;;  %v4488_v13 = vld [vmem:[%s4405_s14 + $0x10] sm:$0xff] }
  0xcc   : > { %931 = vmatpush.msra.mxu3 %v832_v10  ;;  %3776 = vmatmul.msk.f32.vlgmr.msra.gmra.mxu2 %vm837_vm14, %v4421_v62  ;;  %v1368_v18 = vperm.slane %v4294_v59, 3  ;;  %v1376_v19 = vperm.slane %v4306_v3, 3  ;;  %v1384_v20 = vperm.slane %v4296_v60, 3  ;;  %v1127_v21 = vadd.f32 %v1121_v17, %v1105_v15 }
  0xcd   : > { %1153 = vmatpush.msrb.mxu0 %v1126_v14  ;;  %3786 = vmatmul.msk.f32.vlgmr.msra.gmra.mxu3 %vm837_vm14, %v4421_v62  ;;  %vm1366_vm0 = vcmp.eq.s32.totalorder %v4281_v42, %v1360_v16  ;;  %v1626_v22 = vperm.slane %v4286_v46, 4  ;;  %v1634_v23 = vperm.slane %v4294_v59, 4  ;;  %v1642_v25 = vperm.slane %v4306_v3, 4 }
  0xce   : > { %3796 = vmatmul.msk.f32.vlgmr.msrb.gmra.mxu0 %vm837_vm14, %v4421_v62  ;;  %v1374_v24 = vsel %vm1366_vm0, %v1368_v18, 0.0  ;;  %vm1382_vm1 = vcmp.eq.s32.totalorder %v4281_v42, %v1376_v19  ;;  %v1650_v26 = vperm.slane %v4296_v60, 4  ;;  %1197 = vmatpush.msrb.mxu1 %v1127_v21  ;;  %vm1364_vm3 = vcmp.eq.s32.totalorder %v4284_v43, %v1360_v16 }
  0xcf   : > { %v1390_v27 = vsel %vm1382_vm1, %v1384_v20, 0.0  ;;  %vm1632_vm2 = vcmp.eq.s32.totalorder %v4281_v42, %v1626_v22  ;;  %vm1380_vm4 = vcmp.eq.s32.totalorder %v4284_v43, %v1376_v19  ;;  %3806 = vmatmul.msk.f32.vlgmr.msrb.gmra.mxu1 %vm837_vm14, %v4421_v62  ;;  %vm1648_vm6 = vcmp.eq.s32.totalorder %v4281_v42, %v1642_v25 }
  0xd0   : > { %v1396_v29 = vadd.f32 %v1390_v27, %v1374_v24  ;;  %v1640_v30 = vsel %vm1632_vm2, %v1634_v23, 0.0  ;;  %v1372_v31 = vsel %vm1364_vm3, %v1368_v18, 0.0  ;;  %v1656_v32 = vsel %vm1648_vm6, %v1650_v26, 0.0 }
  0xd1   : > { %v1388_v34 = vsel %vm1380_vm4, %v1384_v20, 0.0  ;;  %vm1630_vm7 = vcmp.eq.s32.totalorder %v4284_v43, %v1626_v22  ;;  %vm1646_vm8 = vcmp.eq.s32.totalorder %v4284_v43, %v1642_v25  ;;  %v1662_v36 = vadd.f32 %v1656_v32, %v1640_v30 }
  0xd2   : > { %3815 = vmatpush.msk.msrb.mxu2 %vm865_vm5, %v1396_v29  ;;  %v1394_v37 = vadd.f32 %v1388_v34, %v1372_v31  ;;  %v1638_v38 = vsel %vm1630_vm7, %v1634_v23, 0.0  ;;  %v1654_v39 = vsel %vm1646_vm8, %v1650_v26, 0.0  ;;  %vm1362_vm9 = vcmp.eq.s32.totalorder %v4276_v28, %v1360_v16 }
  0xd3   : > { %v1660_v40 = vadd.f32 %v1654_v39, %v1638_v38  ;;  %vm1378_vm10 = vcmp.eq.s32.totalorder %v4276_v28, %v1376_v19  ;;  %vm1628_vm11 = vcmp.eq.s32.totalorder %v4276_v28, %v1626_v22  ;;  %3835 = vmatpush.msk.msra.mxu0 %vm865_vm5, %v1662_v36  ;;  %v1370_v41 = vsel %vm1362_vm9, %v1368_v18, 0.0 }
  0xd4   : > { %1418 = vmatpush.msrb.mxu2 %v1394_v37  ;;  %v1386_v44 = vsel %vm1378_vm10, %v1384_v20, 0.0  ;;  %v1636_v45 = vsel %vm1628_vm11, %v1634_v23, 0.0  ;;  %vm1644_vm12 = vcmp.eq.s32.totalorder %v4276_v28, %v1642_v25  ;;  %v1892_v53 = vperm.slane %v4286_v46, 5 }
  0xd5   : > { %v1392_v47 = vadd.f32 %v1386_v44, %v1370_v41  ;;  %v1652_v51 = vsel %vm1644_vm12, %v1650_v26, 0.0  ;;  %v1900_v54 = vperm.slane %v4294_v59, 5  ;;  %3777 = vmatmul.msk.f32.gmra.mxu2 %vm837_vm14, %v4458_v35  ;;  %3787 = vmatmul.msk.f32.gmra.mxu3 %vm837_vm14, %v4458_v35  ;;  %v1908_v56 = vperm.slane %v4306_v3, 5 }
  0xd6   : > { %1684 = vmatpush.msra.mxu0 %v1660_v40  ;;  %v1658_v55 = vadd.f32 %v1652_v51, %v1636_v45  ;;  %v1916_v57 = vperm.slane %v4296_v60, 5  ;;  %v2158_v58 = vperm.slane %v4286_v46, 6  ;;  %vm1898_vm13 = vcmp.eq.s32.totalorder %v4281_v42, %v1892_v53  ;;  %v4518_v40 = vld [vmem:[%s4405_s14 + $0x18] sm:$0xff] }
  0xd7   : > { %1419 = vmatpush.msrb.mxu2 %v1392_v47  ;;  %v2166_v63 = vperm.slane %v4294_v59, 6  ;;  %v2174_v1 = vperm.slane %v4306_v3, 6  ;;  %v2182_v4 = vperm.slane %v4296_v60, 6  ;;  %3797 = vmatmul.msk.f32.gmra.mxu0 %vm837_vm14, %v4458_v35  ;;  %v1906_v5 = vsel %vm1898_vm13, %v1900_v54, 0.0 }
  0xd8   : > { %1685 = vmatpush.msra.mxu0 %v1658_v55  ;;  %vm1914_vm15 = vcmp.eq.s32.totalorder %v4281_v42, %v1908_v56  ;;  %vm2164_vm0 = vcmp.eq.s32.totalorder %v4281_v42, %v2158_v58  ;;  %vm1896_vm1 = vcmp.eq.s32.totalorder %v4284_v43, %v1892_v53  ;;  %3807 = vmatmul.msk.f32.gmra.mxu1 %vm837_vm14, %v4458_v35  ;;  %v1361_v26 = vperm.slane %v4298_v61, 3 }
  0xd9   : > { %v1922_v9 = vsel %vm1914_vm15, %v1916_v57, 0.0  ;;  %v2172_v10 = vsel %vm2164_vm0, %v2166_v63, 0.0  ;;  %vm2180_vm2 = vcmp.eq.s32.totalorder %v4281_v42, %v2174_v1  ;;  %v1904_v11 = vsel %vm1896_vm1, %v1900_v54, 0.0 }
  0xda   : > { %v1928_v14 = vadd.f32 %v1922_v9, %v1906_v5  ;;  %v2188_v15 = vsel %vm2180_vm2, %v2182_v4, 0.0  ;;  %vm1912_vm3 = vcmp.eq.s32.totalorder %v4284_v43, %v1908_v56  ;;  %vm2162_vm4 = vcmp.eq.s32.totalorder %v4284_v43, %v2158_v58 }
  0xdb   : > { %v2194_v16 = vadd.f32 %v2188_v15, %v2172_v10  ;;  %v1920_v17 = vsel %vm1912_vm3, %v1916_v57, 0.0  ;;  %v2170_v18 = vsel %vm2162_vm4, %v2166_v63, 0.0  ;;  %vm2178_vm6 = vcmp.eq.s32.totalorder %v4284_v43, %v2174_v1 }
  0xdc   : > { %3855 = vmatpush.msk.msra.mxu2 %vm865_vm5, %v1928_v14  ;;  %v1926_v19 = vadd.f32 %v1920_v17, %v1904_v11  ;;  %v2186_v20 = vsel %vm2178_vm6, %v2182_v4, 0.0  ;;  %vm1894_vm7 = vcmp.eq.s32.totalorder %v4276_v28, %v1892_v53  ;;  %vm1910_vm8 = vcmp.eq.s32.totalorder %v4276_v28, %v1908_v56 }
  0xdd   : > { %3875 = vmatpush.msk.msrb.mxu0 %vm865_vm5, %v2194_v16  ;;  %v2192_v21 = vadd.f32 %v2186_v20, %v2170_v18  ;;  %v1902_v22 = vsel %vm1894_vm7, %v1900_v54, 0.0  ;;  %v1918_v23 = vsel %vm1910_vm8, %v1916_v57, 0.0  ;;  %vm2160_vm9 = vcmp.eq.s32.totalorder %v4276_v28, %v2158_v58  ;;  %3778 = vmatmul.msk.f32.gmra.mxu2 %vm837_vm14, %v4488_v13  ;;  %v4546_v18 = vld [vmem:[%s4405_s14 + $0x20] sm:$0xff] }
  0xde   : > { %1950 = vmatpush.msra.mxu2 %v1926_v19  ;;  %v1924_v24 = vadd.f32 %v1918_v23, %v1902_v22  ;;  %v2168_v25 = vsel %vm2160_vm9, %v2166_v63, 0.0  ;;  %vm2176_vm10 = vcmp.eq.s32.totalorder %v4276_v28, %v2174_v1  ;;  %3788 = vmatmul.msk.f32.gmra.mxu3 %vm837_vm14, %v4488_v13  ;;  %v1369_v29 = vperm.slane %v4303_v0, 3 }
  0xdf   : > { %2216 = vmatpush.msrb.mxu0 %v2192_v21  ;;  %v2184_v27 = vsel %vm2176_vm10, %v2182_v4, 0.0  ;;  %v1377_v30 = vperm.slane %v4324_v12, 3  ;;  %v1385_v31 = vperm.slane %v4314_v8, 3  ;;  %vm1367_vm11 = vcmp.eq.s32.totalorder %v4281_v42, %v1361_v26 }
  0xe0   : > { %1951 = vmatpush.msra.mxu2 %v1924_v24  ;;  %v2190_v32 = vadd.f32 %v2184_v27, %v2168_v25  ;;  %3798 = vmatmul.msk.f32.gmra.mxu0 %vm837_vm14, %v4488_v13  ;;  %v1627_v34 = vperm.slane %v4298_v61, 4  ;;  %v1635_v36 = vperm.slane %v4303_v0, 4  ;;  %v1375_v37 = vsel %vm1367_vm11, %v1369_v29, 0.0 }
  0xe1   : > { %3808 = vmatmul.msk.f32.gmra.mxu1 %vm837_vm14, %v4488_v13  ;;  %vm1383_vm12 = vcmp.eq.s32.totalorder %v4281_v42, %v1377_v30  ;;  %v1643_v38 = vperm.slane %v4324_v12, 4  ;;  %v1651_v39 = vperm.slane %v4314_v8, 4  ;;  %vm1365_vm15 = vcmp.eq.s32.totalorder %v4284_v43, %v1361_v26 }
  0xe2   : > { %2217 = vmatpush.msrb.mxu0 %v2190_v32  ;;  %v1391_v41 = vsel %vm1383_vm12, %v1385_v31, 0.0  ;;  %vm1633_vm13 = vcmp.eq.s32.totalorder %v4281_v42, %v1627_v34  ;;  %vm1381_vm0 = vcmp.eq.s32.totalorder %v4284_v43, %v1377_v30  ;;  %v1373_v47 = vsel %vm1365_vm15, %v1369_v29, 0.0 }
  0xe3   : > { %v1397_v44 = vadd.f32 %v1391_v41, %v1375_v37  ;;  %v1641_v45 = vsel %vm1633_vm13, %v1635_v36, 0.0  ;;  %vm1649_vm1 = vcmp.eq.s32.totalorder %v4281_v42, %v1643_v38  ;;  %v1389_v53 = vsel %vm1381_vm0, %v1385_v31, 0.0 }
  0xe4   : > { %v1657_v51 = vsel %vm1649_vm1, %v1651_v39, 0.0  ;;  %vm1631_vm2 = vcmp.eq.s32.totalorder %v4284_v43, %v1627_v34  ;;  %vm1647_vm3 = vcmp.eq.s32.totalorder %v4284_v43, %v1643_v38  ;;  %v1395_v55 = vadd.f32 %v1389_v53, %v1373_v47 }
  0xe5   : > { %3779 = vmatmul.msk.f32.gmra.mxu2 %vm837_vm14, %v4518_v40  ;;  %3825 = vmatpush.msk.msrb.mxu3 %vm865_vm5, %v1397_v44  ;;  %v1663_v54 = vadd.f32 %v1657_v51, %v1641_v45  ;;  %v1639_v56 = vsel %vm1631_vm2, %v1635_v36, 0.0  ;;  %v1655_v57 = vsel %vm1647_vm3, %v1651_v39, 0.0  ;;  %vm1363_vm4 = vcmp.eq.s32.totalorder %v4276_v28, %v1361_v26  ;;  %v4575_v45 = vld [vmem:[%s4405_s14 + $0x28] sm:$0xff] }
  0xe6   : > { %3789 = vmatmul.msk.f32.gmra.mxu3 %vm837_vm14, %v4518_v40  ;;  %v1661_v58 = vadd.f32 %v1655_v57, %v1639_v56  ;;  %vm1379_vm6 = vcmp.eq.s32.totalorder %v4276_v28, %v1377_v30  ;;  %vm1629_vm7 = vcmp.eq.s32.totalorder %v4276_v28, %v1627_v34  ;;  %v1371_v63 = vsel %vm1363_vm4, %v1369_v29, 0.0 }
  0xe7   : > { %3845 = vmatpush.msk.msra.mxu1 %vm865_vm5, %v1663_v54  ;;  %1462 = vmatpush.msrb.mxu3 %v1395_v55  ;;  %v1387_v1 = vsel %vm1379_vm6, %v1385_v31, 0.0  ;;  %v1637_v4 = vsel %vm1629_vm7, %v1635_v36, 0.0  ;;  %vm1645_vm8 = vcmp.eq.s32.totalorder %v4276_v28, %v1643_v38  ;;  %v1893_v10 = vperm.slane %v4298_v61, 5 }
  0xe8   : > { %3799 = vmatmul.msk.f32.gmra.mxu0 %vm837_vm14, %v4518_v40  ;;  %v1393_v5 = vadd.f32 %v1387_v1, %v1371_v63  ;;  %v1653_v9 = vsel %vm1645_vm8, %v1651_v39, 0.0  ;;  %v1901_v11 = vperm.slane %v4303_v0, 5  ;;  %v1909_v15 = vperm.slane %v4324_v12, 5 }
  0xe9   : > { %3809 = vmatmul.msk.f32.gmra.mxu1 %vm837_vm14, %v4518_v40  ;;  %v1659_v14 = vadd.f32 %v1653_v9, %v1637_v4  ;;  %v1917_v16 = vperm.slane %v4314_v8, 5  ;;  %v2159_v17 = vperm.slane %v4298_v61, 6  ;;  %vm1899_vm9 = vcmp.eq.s32.totalorder %v4281_v42, %v1893_v10 }
  0xea   : > { %1728 = vmatpush.msra.mxu1 %v1661_v58  ;;  %1463 = vmatpush.msrb.mxu3 %v1393_v5  ;;  %v2167_v19 = vperm.slane %v4303_v0, 6  ;;  %v2175_v20 = vperm.slane %v4324_v12, 6  ;;  %v2183_v21 = vperm.slane %v4314_v8, 6  ;;  %v1907_v22 = vsel %vm1899_vm9, %v1901_v11, 0.0 }
  0xeb   : > { %vm1915_vm10 = vcmp.eq.s32.totalorder %v4281_v42, %v1909_v15  ;;  %vm2165_vm11 = vcmp.eq.s32.totalorder %v4281_v42, %v2159_v17  ;;  %vm1897_vm12 = vcmp.eq.s32.totalorder %v4284_v43, %v1893_v10  ;;  %vm1913_vm15 = vcmp.eq.s32.totalorder %v4284_v43, %v1909_v15 }
  0xec   : > { %1729 = vmatpush.msra.mxu1 %v1659_v14  ;;  %v1923_v23 = vsel %vm1915_vm10, %v1917_v16, 0.0  ;;  %v2173_v24 = vsel %vm2165_vm11, %v2167_v19, 0.0  ;;  %vm2181_vm13 = vcmp.eq.s32.totalorder %v4281_v42, %v2175_v20  ;;  %v1905_v25 = vsel %vm1897_vm12, %v1901_v11, 0.0 }
  0xed   : > { %3780 = vmatmul.msk.f32.gmra.mxu2 %vm837_vm14, %v4546_v18  ;;  %v1929_v26 = vadd.f32 %v1923_v23, %v1907_v22  ;;  %v2189_v27 = vsel %vm2181_vm13, %v2183_v21, 0.0  ;;  %vm2163_vm0 = vcmp.eq.s32.totalorder %v4284_v43, %v2159_v17  ;;  %v1921_v30 = vsel %vm1913_vm15, %v1917_v16, 0.0 }
  0xee   : > { %3790 = vmatmul.msk.f32.gmra.mxu3 %vm837_vm14, %v4546_v18  ;;  %v2195_v29 = vadd.f32 %v2189_v27, %v2173_v24  ;;  %v2171_v31 = vsel %vm2163_vm0, %v2167_v19, 0.0  ;;  %vm2179_vm1 = vcmp.eq.s32.totalorder %v4284_v43, %v2175_v20  ;;  %v1927_v32 = vadd.f32 %v1921_v30, %v1905_v25 }
  0xef   : > { %3865 = vmatpush.msk.msra.mxu3 %vm865_vm5, %v1929_v26  ;;  %v2187_v34 = vsel %vm2179_vm1, %v2183_v21, 0.0  ;;  %vm1895_vm2 = vcmp.eq.s32.totalorder %v4276_v28, %v1893_v10  ;;  %vm1911_vm3 = vcmp.eq.s32.totalorder %v4276_v28, %v1909_v15  ;;  %vm2161_vm4 = vcmp.eq.s32.totalorder %v4276_v28, %v2159_v17 }
  0xf0   : > { %3800 = vmatmul.msk.f32.gmra.mxu0 %vm837_vm14, %v4546_v18  ;;  %3885 = vmatpush.msk.msrb.mxu1 %vm865_vm5, %v2195_v29  ;;  %v2193_v36 = vadd.f32 %v2187_v34, %v2171_v31  ;;  %v1903_v37 = vsel %vm1895_vm2, %v1901_v11, 0.0  ;;  %v1919_v38 = vsel %vm1911_vm3, %v1917_v16, 0.0  ;;  %v2169_v41 = vsel %vm2161_vm4, %v2167_v19, 0.0 }
  0xf1   : > { %3810 = vmatmul.msk.f32.gmra.mxu1 %vm837_vm14, %v4546_v18  ;;  %1994 = vmatpush.msra.mxu3 %v1927_v32  ;;  %v1925_v39 = vadd.f32 %v1919_v38, %v1903_v37  ;;  %vm2177_vm6 = vcmp.eq.s32.totalorder %v4276_v28, %v2175_v20  ;;  %v2424_v44 = vperm.slane %v4286_v46, 7  ;;  %v2432_v51 = vperm.slane %v4294_v59, 7 }
  0xf2   : > { %2260 = vmatpush.msrb.mxu1 %v2193_v36  ;;  %v2185_v47 = vsel %vm2177_vm6, %v2183_v21, 0.0  ;;  %v2440_v53 = vperm.slane %v4306_v3, 7  ;;  %v2448_v54 = vperm.slane %v4296_v60, 7  ;;  %v2425_v56 = vperm.slane %v4298_v61, 7  ;;  %v4612_v21 = vld [vmem:[%s4405_s14 + $0x30] sm:$0xff] }
  0xf3   : > { %1995 = vmatpush.msra.mxu3 %v1925_v39  ;;  %v2191_v55 = vadd.f32 %v2185_v47, %v2169_v41  ;;  %vm2430_vm7 = vcmp.eq.s32.totalorder %v4281_v42, %v2424_v44  ;;  %v2433_v57 = vperm.slane %v4303_v0, 7  ;;  %v2441_v63 = vperm.slane %v4324_v12, 7 }
  0xf4   : > { %v2438_v58 = vsel %vm2430_vm7, %v2432_v51, 0.0  ;;  %vm2446_vm8 = vcmp.eq.s32.totalorder %v4281_v42, %v2440_v53  ;;  %v2449_v1 = vperm.slane %v4314_v8, 7  ;;  %vm2431_vm9 = vcmp.eq.s32.totalorder %v4281_v42, %v2425_v56 }
  0xf5   : > { %3781 = vmatmul.msk.f32.gmra.mxu2 %vm837_vm14, %v4575_v45  ;;  %2261 = vmatpush.msrb.mxu1 %v2191_v55  ;;  %v2454_v4 = vsel %vm2446_vm8, %v2448_v54, 0.0  ;;  %vm2428_vm10 = vcmp.eq.s32.totalorder %v4284_v43, %v2424_v44  ;;  %vm2444_vm11 = vcmp.eq.s32.totalorder %v4284_v43, %v2440_v53  ;;  %v2439_v9 = vsel %vm2431_vm9, %v2433_v57, 0.0 }
  0xf6   : > { %3791 = vmatmul.msk.f32.gmra.mxu3 %vm837_vm14, %v4575_v45  ;;  %v4593_v5 = vadd.f32 %v2454_v4, %v2438_v58  ;;  %vm2447_vm12 = vcmp.eq.s32.totalorder %v4281_v42, %v2441_v63  ;;  %v2436_v10 = vsel %vm2428_vm10, %v2432_v51, 0.0  ;;  %v2452_v14 = vsel %vm2444_vm11, %v2448_v54, 0.0  ;;  %v4658_v58 = vld [vmem:[%s4405_s14 + $0x38] sm:$0xff] }
  0xf7   : > { %v2455_v11 = vsel %vm2447_vm12, %v2449_v1, 0.0  ;;  %vm2429_vm13 = vcmp.eq.s32.totalorder %v4284_v43, %v2425_v56  ;;  %vm2445_vm15 = vcmp.eq.s32.totalorder %v4284_v43, %v2441_v63  ;;  %v4602_v16 = vadd.f32 %v2452_v14, %v2436_v10 }
  0xf8   : > { %3801 = vmatmul.msk.f32.gmra.mxu0 %vm837_vm14, %v4575_v45  ;;  %v4600_v15 = vadd.f32 %v2455_v11, %v2439_v9  ;;  %v2437_v17 = vsel %vm2429_vm13, %v2433_v57, 0.0  ;;  %v2453_v19 = vsel %vm2445_vm15, %v2449_v1, 0.0  ;;  %vm2426_vm0 = vcmp.eq.s32.totalorder %v4276_v28, %v2424_v44 }
  0xf9   : > { %3811 = vmatmul.msk.f32.gmra.mxu1 %vm837_vm14, %v4575_v45  ;;  %v4606_v20 = vadd.f32 %v2453_v19, %v2437_v17  ;;  %vm2442_vm1 = vcmp.eq.s32.totalorder %v4276_v28, %v2440_v53  ;;  %vm2427_vm2 = vcmp.eq.s32.totalorder %v4276_v28, %v2425_v56  ;;  %v2434_v22 = vsel %vm2426_vm0, %v2432_v51, 0.0 }
  0xfa   : > { %v2450_v23 = vsel %vm2442_vm1, %v2448_v54, 0.0  ;;  %v2435_v24 = vsel %vm2427_vm2, %v2433_v57, 0.0  ;;  %vm2443_vm3 = vcmp.eq.s32.totalorder %v4276_v28, %v2441_v63  ;;  %v487_v27 = vand.u32 65535, %v4276_v28 }
  0xfb   : > { %v4615_v25 = vadd.f32 %v2450_v23, %v2434_v22  ;;  %v2451_v26 = vsel %vm2443_vm3, %v2449_v1, 0.0  ;;  %v488_v29 = vshrl.u32 %v4276_v28, 16  ;;  %v438_v30 = vsub.f32 %v400_v2, %v4290_v49 }
  0xfc   : > { %v4624_v31 = vcvt.f32.s32 %v400_v2  ;;  %v4628_v32 = vadd.f32 1.0, %v391_v50  ;;  %v4630_v34 = vadd.f32 %v2451_v26, %v2435_v24  ;;  %v446_v36 = vsub.f32 %v4308_v6, %v4290_v49 }
  0xfd   : > { %3782 = vmatmul.msk.f32.gmra.mxu2 %vm837_vm14, %v4612_v21  ;;  %v490_v37 = vmul.u32 14564, %v487_v27  ;;  %v491_v38 = vmul.u32 58254, %v487_v27  ;;  %v4636_v39 = vmul.u32 14564, %v488_v29  ;;  %vm3973_vm4 = vcmp.lt.s32.totalorder %v4308_v6, 0 }
  0xfe   : > { %3792 = vmatmul.msk.f32.gmra.mxu3 %vm837_vm14, %v4612_v21  ;;  %v517_v50 = vshrl.u32 %v4284_v43, 16  ;;  %v545_v2 = vand.u32 65535, %v4281_v42  ;;  %v493_v49 = vmul.u32 58254, %v488_v29  ;;  %v3974_v47 = vceil.f32 %v4308_v6 }
  0xff   : > { %v494_v41 = vshll.u32 %v491_v38, 16  ;;  %v496_v44 = vshll.u32 %v4636_v39, 16  ;;  %v519_v51 = vmul.u32 14564, %v516_v48  ;;  %v4648_v53 = vmul.u32 58254, %v516_v48 }
 0x100   : > { %3802 = vmatmul.msk.f32.gmra.mxu0 %vm837_vm14, %v4612_v21  ;;  %v4650_v54 = vmul.u32 14564, %v517_v50  ;;  %v546_v56 = vshrl.u32 %v4281_v42, 16  ;;  %v4655_v57 = vmul.u32 58254, %v545_v2  ;;  %v3975_v63 = vfloor.f32 %v4308_v6 }
 0x101   : > { %3812 = vmatmul.msk.f32.gmra.mxu1 %vm837_vm14, %v4612_v21  ;;  %vm498_vm6 = vc.u32 %v490_v37, %v494_v41  ;;  %v500_v55 = vadd.s32 %v494_v41, %v490_v37  ;;  %v495_v1 = vshrl.u32 %v491_v38, 16  ;;  %v7665_v4 = vmov 0  }
 0x102   : > { %v499_v9 = vsel %vm498_vm6, 1, %v7665_v4  ;;  %v523_v10 = vshll.u32 %v4648_v53, 16  ;;  %v522_v14 = vmul.u32 58254, %v517_v50  ;;  %v525_v17 = vshll.u32 %v4650_v54, 16 }
 0x103   : > { %v501_v11 = vadd.s32 %v499_v9, %v493_v49  ;;  %vm502_vm7 = vc.u32 %v500_v55, %v496_v44  ;;  %v548_v23 = vmul.u32 14564, %v545_v2  ;;  %v4668_v27 = vmul.u32 14564, %v546_v56  ;;  %v4699_v55 = vld [vmem:[%s4405_s14 + $0x40] sm:$0xff] }
 0x104   : > { %v503_v19 = vsel %vm502_vm7, 1, %v7665_v4  ;;  %vm527_vm8 = vc.u32 %v519_v51, %v523_v10  ;;  %v529_v22 = vadd.s32 %v523_v10, %v519_v51  ;;  %v552_v29 = vshll.u32 %v4655_v57, 16 }
 0x105   : > { %3783 = vmatmul.msk.f32.gmra.mxu2 %vm837_vm14, %v4658_v58  ;;  %v505_v24 = vadd.s32 %v503_v19, %v501_v11  ;;  %v528_v26 = vsel %vm527_vm8, 1, %v7665_v4  ;;  %v4671_v37 = vadd.f32 1.0, %v438_v30  ;;  %v401_v38 = vmin.f32 %v4312_v7, 17.0 }
 0x106   : > { %v409_v48 = vmax.f32 %v4628_v32, 0.0  ;;  %v4677_v50 = vmin.f32 %v427_v52, 17.0  ;;  %3793 = vmatmul.msk.f32.gmra.mxu3 %vm837_vm14, %v4658_v58  ;;  %v4682_v2 = vperm.slane %v4624_v31, 0  ;;  %v4685_v49 = vperm.slane %v4624_v31, 1 }
 0x107   : > { %v4688_v30 = vperm.slane %v4624_v31, 2  ;;  %vm531_vm9 = vc.u32 %v529_v22, %v525_v17  ;;  %v450_v7 = vsub.f32 1.0, %v446_v36  ;;  %v3976_v33 = vsel %vm3973_vm4, %v3974_v47, %v3975_v63 }
 0x108   : > { %3803 = vmatmul.msk.f32.gmra.mxu0 %vm837_vm14, %v4658_v58  ;;  %v497_v52 = vshrl.u32 %v4636_v39, 16  ;;  %v530_v32 = vadd.s32 %v528_v26, %v522_v14  ;;  %v506_v41 = vadd.s32 %v505_v24, %v495_v1  ;;  %v554_v44 = vshll.u32 %v4668_v27, 16 }
 0x109   : > { %3813 = vmatmul.msk.f32.gmra.mxu1 %vm837_vm14, %v4658_v58  ;;  %vm556_vm10 = vc.u32 %v548_v23, %v552_v29  ;;  %v558_v51 = vadd.s32 %v552_v29, %v548_v23  ;;  %v4702_v36 = vperm.slane %v4671_v37, 0  ;;  %v4705_v6 = vperm.slane %v4671_v37, 1 }
 0x10a   : > { %v4708_v47 = vperm.slane %v4671_v37, 2  ;;  %v532_v39 = vsel %vm531_vm9, 1, %v7665_v4  ;;  %v4712_v63 = vperm.slane %v4624_v31, 3  ;;  %v4715_v1 = vperm.slane %v4671_v37, 3 }
 0x10b   : > { %v4718_v9 = vperm.slane %v4624_v31, 4  ;;  %v551_v10 = vmul.u32 58254, %v546_v56  ;;  %v4720_v11 = vcvt.f32.s32 %v3976_v33  ;;  %v4722_v14 = vperm.slane %v450_v7, 0 }
 0x10c   : > { %7793 = vst [vmem:[#allocation11_spill] sm:$0xff] %v4708_v47  ;;  %v4724_v17 = vperm.slane %v450_v7, 1  ;;  %v557_v19 = vsel %vm556_vm10, 1, %v7665_v4  ;;  %v507_v22 = vadd.s32 %v506_v41, %v497_v52  ;;  %v524_v23 = vshrl.u32 %v4648_v53, 16 }
 0x10d   : > { %7794 = vst [vmem:[#allocation12_spill] sm:$0xff] %v4712_v63  ;;  %3784 = vmatmul.msk.f32.gmra.mxu2 %vm837_vm14, %v4699_v55  ;;  %v534_v24 = vadd.s32 %v532_v39, %v530_v32  ;;  %vm560_vm11 = vc.u32 %v558_v51, %v554_v44  ;;  %v4730_v26 = vperm.slane %v450_v7, 2  ;;  %v4732_v29 = vperm.slane %v450_v7, 3 }
 0x10e   : > { %7795 = vst [vmem:[#allocation13_spill] sm:$0xff] %v4715_v1  ;;  %v4735_v56 = vperm.slane %v4671_v37, 4  ;;  %v413_v33 = vmin.f32 %v409_v48, 17.0  ;;  %3794 = vmatmul.msk.f32.gmra.mxu3 %vm837_vm14, %v4699_v55  ;;  %v4739_v4 = vperm.slane %v450_v7, 4  ;;  %v4742_v12 = vperm.slane %v4624_v31, 5 }
 0x10f   : > { %7796 = vst [vmem:[#allocation14_spill] sm:$0xff] %v4718_v9  ;;  %v439_v53 = vsub.f32 %v401_v38, %v4677_v50  ;;  %v559_v52 = vadd.s32 %v557_v19, %v551_v10  ;;  %v4746_v32 = vperm.slane %v4671_v37, 5  ;;  %v4748_v41 = vperm.slane %v450_v7, 5 }
 0x110   : > { %7797 = vst [vmem:[#allocation15_spill] sm:$0xff] %v4720_v11  ;;  %v4751_v44 = vperm.slane %v4624_v31, 6  ;;  %3804 = vmatmul.msk.f32.gmra.mxu0 %vm837_vm14, %v4699_v55  ;;  %v7807_v48 = vmov 0   ;;  %v508_v39 = vshrl.u32 %v507_v22, 4  ;;  %v526_v3 = vshrl.u32 %v4650_v54, 16 }
 0x111   : > { %7798 = vst [vmem:[#allocation16_spill] sm:$0xff] %v4724_v17  ;;  %v561_v51 = vsel %vm560_vm11, 1, %v7807_v48  ;;  %3814 = vmatmul.msk.f32.gmra.mxu1 %vm837_vm14, %v4699_v55  ;;  %v535_v10 = vadd.s32 %v534_v24, %v524_v23  ;;  %v4760_v19 = vadd.s32 24, %v4276_v28  ;;  %v3980_v9 = vfloor.f32 %v413_v33 }
 0x112   : > { %7799 = vst [vmem:[#allocation17_spill] sm:$0xff] %v4730_v26  ;;  %vm3978_vm12 = vcmp.lt.s32.totalorder %v413_v33, 0  ;;  %v4769_v22 = vperm.slane %v4671_v37, 6  ;;  %v4771_v54 = vperm.slane %v450_v7, 6  ;;  %v4774_v23 = vperm.slane %v4624_v31, 7 }
 0x113   : > { %7800 = vst [vmem:[#allocation18_spill] sm:$0xff] %v4732_v29  ;;  %v509_v24 = vmul.u32 18, %v508_v39  ;;  %v575_v39 = vshrl.u32 %v4760_v19, 16 }
 0x114   : > { %7801 = vst [vmem:[#allocation19_spill] sm:$0xff] %v4735_v56  ;;  %v4763_v56 = vcvt.f32.s32 %v401_v38  ;;  %v4779_v38 = vperm.slane %v450_v7, 7 }
 0x115   : > { %7802 = vst [vmem:[#allocation20_spill] sm:$0xff] %v4739_v4  ;;  %v447_v4 = vsub.f32 %v413_v33, %v4677_v50  ;;  %v4777_v50 = vperm.slane %v4671_v37, 7  ;;  %3816 = vmatmul.msk.f32.vlgmr.msrb.gmra.mxu2 %vm837_vm14, %v4421_v62 }
 0x116   : > { %7803 = vst [vmem:[#allocation21_spill] sm:$0xff] %v4742_v12  ;;  %v563_v12 = vadd.s32 %v561_v51, %v559_v52  ;;  %v4787_v51 = vperm.slane %v4763_v56, 0  ;;  %v4790_v31 = vperm.slane %v4763_v56, 1  ;;  %3826 = vmatmul.msk.f32.vlgmr.msrb.gmra.mxu3 %vm837_vm14, %v4421_v62  ;;  %3895 = vmatpush.msk.msrb.mxu2 %vm865_vm5, %v4593_v5  ;;  %v4812_v5 = vperm.slane %v4763_v56, 4 }
 0x117   : > { %7804 = vst [vmem:[#allocation22_spill] sm:$0xff] %v4746_v32  ;;  %v553_v32 = vshrl.u32 %v4655_v57, 16  ;;  %v574_v57 = vand.u32 65535, %v4760_v19  ;;  %3905 = vmatpush.msk.msrb.mxu3 %vm865_vm5, %v4600_v15 }
 0x118   : > { %7805 = vst [vmem:[#allocation23_spill] sm:$0xff] %v4748_v41  ;;  %v4765_v41 = vadd.f32 1.0, %v439_v53  ;;  %v4784_v53 = vsub.f32 1.0, %v447_v4  ;;  %v555_v4 = vshrl.u32 %v4668_v27, 16  ;;  %3836 = vmatmul.msk.f32.vlgmr.msra.gmra.mxu0 %vm837_vm14, %v4421_v62  ;;  %2482 = vmatpush.msrb.mxu2 %v4602_v16 }
 0x119   : > { %7806 = vst [vmem:[#allocation24_spill] sm:$0xff] %v4751_v44  ;;  %v3979_v44 = vceil.f32 %v413_v33  ;;  %v536_v33 = vadd.s32 %v535_v10, %v526_v3  ;;  %v4800_v3 = vperm.slane %v4763_v56, 2  ;;  %v564_v7 = vadd.s32 %v563_v12, %v553_v32  ;;  %3846 = vmatmul.msk.f32.vlgmr.msra.gmra.mxu1 %vm837_vm14, %v4421_v62  ;;  %2526 = vmatpush.msrb.mxu3 %v4606_v20 }
 0x11a   : > { %7808 = vst [vmem:[#allocation25_spill] sm:$0xff] %v4763_v56  ;;  %v4797_v37 = vperm.slane %v4765_v41, 0  ;;  %v510_v12 = vsub.s32 %v4276_v28, %v509_v24  ;;  %v4824_v32 = vmul.u32 58254, %v574_v57  ;;  %v4827_v10 = vperm.slane %v4784_v53, 0  ;;  %2483 = vmatpush.msrb.mxu2 %v4615_v25 }
 0x11b   : > { %7809 = vst [vmem:[#allocation26_spill] sm:$0xff] %v4765_v41  ;;  %v3981_v52 = vsel %vm3978_vm12, %v3979_v44, %v3980_v9  ;;  %v4806_v9 = vperm.slane %v4765_v41, 1  ;;  %v4809_v44 = vperm.slane %v4765_v41, 2  ;;  %v537_v27 = vshrl.u32 %v536_v33, 4  ;;  %2527 = vmatpush.msrb.mxu3 %v4630_v34 }
 0x11c   : > { %7810 = vst [vmem:[#allocation27_spill] sm:$0xff] %v4769_v22  ;;  %v4818_v15 = vcvt.f32.s32 %v3981_v52  ;;  %v4833_v16 = vperm.slane %v4784_v53, 2  ;;  %v4836_v52 = vperm.slane %v4765_v41, 4  ;;  %v4840_v62 = vperm.slane %v4784_v53, 4 }
 0x11d   : > { %7811 = vst [vmem:[#allocation28_spill] sm:$0xff] %v4771_v54  ;;  %v4830_v54 = vperm.slane %v4784_v53, 1  ;;  %v4843_v20 = vperm.slane %v4763_v56, 5  ;;  %v4846_v24 = vperm.slane %v4765_v41, 5  ;;  %v565_v33 = vadd.s32 %v564_v7, %v555_v4  ;;  %3817 = vmatmul.msk.f32.gmra.mxu2 %vm837_vm14, %v4458_v35 }
 0x11e   : > { %7812 = vst [vmem:[#allocation29_spill] sm:$0xff] %v4774_v23  ;;  %v4850_v22 = vperm.slane %v4784_v53, 5  ;;  %v4855_v25 = vmul.u32 14564, %v575_v39  ;;  %vm745_vm13 = vcmp.ne.s32.totalorder %v510_v12, 0  ;;  %vm754_vm15 = vcmp.lt.s32.totalorder %v510_v12, 0  ;;  %3827 = vmatmul.msk.f32.gmra.mxu3 %vm837_vm14, %v4458_v35 }
 0x11f   : > { %7813 = vst [vmem:[#allocation30_spill] sm:$0xff] %v4777_v50  ;;  %v577_v50 = vmul.u32 14564, %v574_v57  ;;  %v538_v23 = vmul.u32 18, %v537_v27  ;;  %v4861_v34 = vperm.slane %v4765_v41, 6  ;;  %v4864_v4 = vperm.slane %v4784_v53, 6  ;;  %vm763_vm0 = vmand %vm754_vm15, %vm745_vm13 }
 0x120   : > { %7814 = vst [vmem:[#allocation31_spill] sm:$0xff] %v4779_v38  ;;  %v4853_v38 = vperm.slane %v4763_v56, 6  ;;  %v4867_v7 = vperm.slane %v4763_v56, 7  ;;  %v4872_v57 = vadd.s32 32, %v4276_v28  ;;  %v4878_v27 = vperm.slane %v4784_v53, 7  ;;  %3837 = vmatmul.msk.f32.gmra.mxu0 %vm837_vm14, %v4458_v35 }
 0x121   : > { %7815 = vst [vmem:[#allocation32_spill] sm:$0xff] %v4784_v53  ;;  %v4884_v56 = vperm.slane %v4294_v59, 0  ;;  %3847 = vmatmul.msk.f32.gmra.mxu1 %vm837_vm14, %v4458_v35  ;;  %v583_v59 = vshll.u32 %v4855_v25, 16  ;;  %v4907_v53 = vperm.slane %v4818_v15, 1 }
 0x122   : > { %7816 = vst [vmem:[#allocation33_spill] sm:$0xff] %v4790_v31 }
 0x123   : > { %7817 = vst [vmem:[#allocation34_spill] sm:$0xff] %v4800_v3 }
 0x124   : > { %7818 = vst [vmem:[#allocation35_spill] sm:$0xff] %v4806_v9 }
 0x125   : > { %7819 = vst [vmem:[#allocation36_spill] sm:$0xff] %v4809_v44  ;;  %3818 = vmatmul.msk.f32.gmra.mxu2 %vm837_vm14, %v4488_v13 }
 0x126   : > { %7820 = vst [vmem:[#allocation37_spill] sm:$0xff] %v4812_v5  ;;  %v4881_v5 = vperm.slane %v4286_v46, 0  ;;  %v539_v46 = vsub.s32 %v4284_v43, %v538_v23  ;;  %3828 = vmatmul.msk.f32.gmra.mxu3 %vm837_vm14, %v4488_v13 }
 0x127   : > { %7821 = vst [vmem:[#allocation38_spill] sm:$0xff] %v4818_v15 }
 0x128   : > { %7822 = vst [vmem:[#allocation39_spill] sm:$0xff] %v4830_v54  ;;  %vm746_vm2 = vcmp.ne.s32.totalorder %v539_v46, 0  ;;  %vm755_vm3 = vcmp.lt.s32.totalorder %v539_v46, 0  ;;  %3838 = vmatmul.msk.f32.gmra.mxu0 %vm837_vm14, %v4488_v13 }
 0x129   : > { %7823 = vst [vmem:[#allocation40_spill] sm:$0xff] %v4833_v16  ;;  %vm764_vm13 = vmand %vm755_vm3, %vm746_vm2  ;;  %3848 = vmatmul.msk.f32.gmra.mxu1 %vm837_vm14, %v4488_v13 }
 0x12a   : > { %7824 = vst [vmem:[#allocation41_spill] sm:$0xff] %v4836_v52  ;;  %v772_v52 = vadd.s32 18, %v510_v12 }
 0x12b   : > { %7825 = vst [vmem:[#allocation42_spill] sm:$0xff] %v4840_v62  ;;  %v581_v62 = vshll.u32 %v4824_v32, 16 }
 0x12c   : > { %7826 = vst [vmem:[#allocation43_spill] sm:$0xff] %v4843_v20  ;;  %v383_v20 = vld [vmem:[%s7661_s2 + $0x28] sm:$0x3] }
 0x12d   : > { %7827 = vst [vmem:[#allocation44_spill] sm:$0xff] %v4846_v24  ;;  %vm585_vm1 = vc.u32 %v577_v50, %v581_v62  ;;  %3819 = vmatmul.msk.f32.gmra.mxu2 %vm837_vm14, %v4518_v40  ;;  %v349_v24 = vpop.f32.mrf.mxu0 }
 0x12e   : > { %7828 = vst [vmem:[#allocation45_spill] sm:$0xff] %v4850_v22  ;;  %3829 = vmatmul.msk.f32.gmra.mxu3 %vm837_vm14, %v4518_v40 }
 0x12f   : > { %7829 = vst [vmem:[#allocation46_spill] sm:$0xff] %v4853_v38  ;;  %v4875_v38 = vperm.slane %v4765_v41, 7  ;;  %v603_v41 = vand.u32 65535, %v4872_v57 }
 0x130   : > { %7830 = vst [vmem:[#allocation47_spill] sm:$0xff] %v4861_v34  ;;  %v566_v34 = vshrl.u32 %v565_v33, 4  ;;  %v4897_v33 = vperm.slane %v4303_v0, 0  ;;  %v4913_v0 = vperm.slane %v4720_v11, 0  ;;  %3839 = vmatmul.msk.f32.gmra.mxu0 %vm837_vm14, %v4518_v40 }
 0x131   : > { %7831 = vst [vmem:[#allocation48_spill] sm:$0xff] %v4864_v4  ;;  %v4887_v4 = vperm.slane %v4296_v60, 0  ;;  %v587_v60 = vadd.s32 %v581_v62, %v577_v50  ;;  %v586_v50 = vsel %vm585_vm1, 1, %v7807_v48  ;;  %3849 = vmatmul.msk.f32.gmra.mxu1 %vm837_vm14, %v4518_v40 }
 0x132   : > { %7832 = vst [vmem:[#allocation49_spill] sm:$0xff] %v4867_v7  ;;  %v4890_v7 = vperm.slane %v4298_v61, 0  ;;  %v4904_v61 = vperm.slane %v4720_v11, 1  ;;  %v567_v35 = vmul.u32 18, %v566_v34 }
 0x133   : > { %7833 = vst [vmem:[#allocation50_spill] sm:$0xff] %v4875_v38  ;;  %vm4925_vm4 = vc.u32 %v587_v60, %v583_v59  ;;  %v4950_v59 = vmul.u32 58254, %v603_v41  ;;  %v7845_v38 = vshrl.u32 %v4872_v57, 16 }
 0x134   : > { %7834 = vst [vmem:[#allocation51_spill] sm:$0xff] %v4878_v27  ;;  %v590_v23 = vsel %vm4925_vm4, 1, %v7807_v48 }
 0x135   : > { %7835 = vst [vmem:[#allocation52_spill] sm:$0xff] %v4881_v5  ;;  %v4920_v5 = vmul.u32 14564, %v603_v41  ;;  %v4985_v22 = vmul.u32 14564, %v7845_v38  ;;  %v610_v1 = vshll.u32 %v4950_v59, 16  ;;  %3820 = vmatmul.msk.f32.gmra.mxu2 %vm837_vm14, %v4546_v18 }
 0x136   : > { %7836 = vst [vmem:[#allocation53_spill] sm:$0xff] %v4884_v56  ;;  %3830 = vmatmul.msk.f32.gmra.mxu3 %vm837_vm14, %v4546_v18 }
 0x137   : > { %7837 = vst [vmem:[#allocation54_spill] sm:$0xff] %v4887_v4  ;;  %v580_v4 = vmul.u32 58254, %v575_v39  ;;  %v773_v39 = vadd.s32 18, %v539_v46 }
 0x138   : > { %7838 = vst [vmem:[#allocation55_spill] sm:$0xff] %v4890_v7  ;;  %v4910_v7 = vsel %vm763_vm0, %v772_v52, %v510_v12  ;;  %v568_v52 = vsub.s32 %v4281_v42, %v567_v35  ;;  %3840 = vmatmul.msk.f32.gmra.mxu0 %vm837_vm14, %v4546_v18 }
 0x139   : > { %7839 = vst [vmem:[#allocation56_spill] sm:$0xff] %v4897_v33  ;;  %v4917_v33 = vperm.slane %v4818_v15, 0  ;;  %vm1228_vm6 = vcmp.eq.s32.totalorder %v4910_v7, %v4685_v49  ;;  %vm1268_vm7 = vcmp.eq.s32.totalorder %v4910_v7, %v4904_v61  ;;  %vm1229_vm8 = vcmp.eq.s32.totalorder %v4910_v7, %v4790_v31  ;;  %3850 = vmatmul.msk.f32.gmra.mxu1 %vm837_vm14, %v4546_v18 }
 0x13a   : > { %7840 = vst [vmem:[#allocation57_spill] sm:$0xff] %v4907_v53  ;;  %vm1269_vm9 = vcmp.eq.s32.totalorder %v4910_v7, %v4907_v53  ;;  %vm1002_vm10 = vcmp.eq.s32.totalorder %v4910_v7, %v4913_v0  ;;  %vm963_vm11 = vcmp.eq.s32.totalorder %v4910_v7, %v4787_v51  ;;  %v588_v34 = vadd.s32 %v586_v50, %v580_v4 }
 0x13b   : > { %7841 = vst [vmem:[#allocation58_spill] sm:$0xff] %v4910_v7  ;;  %vm1003_vm12 = vcmp.eq.s32.totalorder %v4910_v7, %v4917_v33  ;;  %v1288_v60 = vsel %vm1268_vm7, %v4724_v17, 0.0  ;;  %v1249_v35 = vsel %vm1229_vm8, %v4806_v9, 0.0  ;;  %v1289_v56 = vsel %vm1269_vm9, %v4830_v54, 0.0 }
 0x13c   : > { %v1248_v4 = vsel %vm1228_vm6, %v4705_v6, 0.0  ;;  %vm962_vm15 = vcmp.eq.s32.totalorder %v4910_v7, %v4682_v2  ;;  %v1022_v13 = vsel %vm1002_vm10, %v4722_v14, 0.0  ;;  %v983_v41 = vsel %vm963_vm11, %v4797_v37, 0.0 }
 0x13d   : > { %v1023_v50 = vsel %vm1003_vm12, %v4827_v10, 0.0  ;;  %v4975_v12 = vsel %vm764_vm13, %v773_v39, %v539_v46  ;;  %vm747_vm0 = vcmp.ne.s32.totalorder %v568_v52, 0  ;;  %vm756_vm1 = vcmp.lt.s32.totalorder %v568_v52, 0  ;;  %v382_v46 = vld [vmem:[%s7661_s2 + $0x20] sm:$0x3]  ;;  %3821 = vmatmul.msk.f32.gmra.mxu2 %vm837_vm14, %v4575_v45 }
 0x13e   : > { %7844 = vst [vmem:[#allocation59_spill] sm:$0xff] %v4975_v12  ;;  %v4977_v62 = vadd.f32 %v1288_v60, %v1248_v4  ;;  %v4979_v27 = vadd.f32 %v1289_v56, %v1249_v35  ;;  %vm1270_vm2 = vcmp.eq.s32.totalorder %v4975_v12, %v4904_v61  ;;  %v982_v39 = vsel %vm962_vm15, %v4702_v36, 0.0  ;;  %vm5007_vm7 = vmand %vm756_vm1, %vm747_vm0  ;;  %3831 = vmatmul.msk.f32.gmra.mxu3 %vm837_vm14, %v4575_v45 }
 0x13f   : > { %vm1231_vm3 = vcmp.eq.s32.totalorder %v4975_v12, %v4790_v31  ;;  %vm1271_vm4 = vcmp.eq.s32.totalorder %v4975_v12, %v4907_v53  ;;  %v774_v56 = vadd.s32 18, %v568_v52  ;;  %v4999_v38 = vadd.f32 %v1022_v13, %v982_v39 }
 0x140   : > { %v5001_v60 = vadd.f32 %v1023_v50, %v983_v41  ;;  %vm1004_vm6 = vcmp.eq.s32.totalorder %v4975_v12, %v4913_v0  ;;  %v592_v4 = vadd.s32 %v590_v23, %v588_v34  ;;  %vm1230_vm8 = vcmp.eq.s32.totalorder %v4975_v12, %v4685_v49  ;;  %v375_v50 = vpop.f32.mrf.mxu1  ;;  %3841 = vmatmul.msk.f32.gmra.mxu0 %vm837_vm14, %v4575_v45 }
 0x141   : > { %7846 = vst [vmem:[#allocation60_spill] sm:$0xff] %v4999_v38  ;;  %v1290_v13 = vsel %vm1270_vm2, %v4724_v17, 0.0  ;;  %vm965_vm9 = vcmp.eq.s32.totalorder %v4975_v12, %v4787_v51  ;;  %vm1005_vm10 = vcmp.eq.s32.totalorder %v4975_v12, %v4917_v33  ;;  %v388_v23 = vadd.f32 %v382_v46, %v349_v24  ;;  %3851 = vmatmul.msk.f32.gmra.mxu1 %vm837_vm14, %v4575_v45 }
 0x142   : > { %7847 = vst [vmem:[#allocation61_spill] sm:$0xff] %v5001_v60  ;;  %v1251_v34 = vsel %vm1231_vm3, %v4806_v9, 0.0  ;;  %v1291_v41 = vsel %vm1271_vm4, %v4830_v54, 0.0  ;;  %vm964_vm11 = vcmp.eq.s32.totalorder %v4975_v12, %v4682_v2  ;;  %v1024_v24 = vsel %vm1004_vm6, %v4722_v14, 0.0 }
 0x143   : > { %v5044_v46 = vsel %vm5007_vm7, %v774_v56, %v568_v52  ;;  %v7851_v39 = vshrl.u32 %v4872_v57, 16  ;;  %v389_v29 = vadd.f32 %v383_v20, %v375_v50  ;;  %v1250_v40 = vsel %vm1230_vm8, %v4705_v6, 0.0 }
 0x144   : > { %7850 = vst [vmem:[#allocation62_spill] sm:$0xff] %v5044_v46  ;;  %v985_v63 = vsel %vm965_vm9, %v4797_v37, 0.0  ;;  %v1025_v16 = vsel %vm1005_vm10, %v4827_v10, 0.0  ;;  %v5055_v15 = vadd.f32 %v1290_v13, %v1250_v40  ;;  %v5057_v35 = vadd.f32 %v1291_v41, %v1251_v34 }
 0x145   : > { %v609_v8 = vmul.u32 58254, %v7851_v39  ;;  %v984_v52 = vsel %vm964_vm11, %v4702_v36, 0.0  ;;  %vm1272_vm12 = vcmp.eq.s32.totalorder %v5044_v46, %v4904_v61  ;;  %v394_v56 = vfloor.f32 %v388_v23  ;;  %3822 = vmatmul.msk.f32.gmra.mxu2 %vm837_vm14, %v4612_v21 }
 0x146   : > { %7852 = vst [vmem:[#allocation63_spill] sm:$0xff] %v5055_v15  ;;  %v5062_v20 = vadd.f32 %v1024_v24, %v984_v52  ;;  %vm1232_vm13 = vcmp.eq.s32.totalorder %v5044_v46, %v4685_v49  ;;  %v7855_v50 = vshrl.u32 %v4824_v32, 16  ;;  %v5070_v13 = vadd.f32 %v1025_v16, %v985_v63  ;;  %3832 = vmatmul.msk.f32.gmra.mxu3 %vm837_vm14, %v4612_v21 }
 0x147   : > { %7853 = vst [vmem:[#allocation64_spill] sm:$0xff] %v5057_v35  ;;  %v612_v34 = vshll.u32 %v4985_v22, 16  ;;  %vm614_vm15 = vc.u32 %v4920_v5, %v610_v1  ;;  %v616_v41 = vadd.s32 %v610_v1, %v4920_v5  ;;  %v395_v24 = vfloor.f32 %v389_v29 }
 0x148   : > { %7854 = vst [vmem:[#allocation65_spill] sm:$0xff] %v5062_v20  ;;  %v593_v39 = vadd.s32 %v592_v4, %v7855_v50  ;;  %v1292_v40 = vsel %vm1272_vm12, %v4724_v17, 0.0  ;;  %vm1233_vm0 = vcmp.eq.s32.totalorder %v5044_v46, %v4790_v31  ;;  %v5081_v32 = vadd.s32 40, %v4276_v28  ;;  %3842 = vmatmul.msk.f32.gmra.mxu0 %vm837_vm14, %v4612_v21 }
 0x149   : > { %7856 = vst [vmem:[#allocation66_spill] sm:$0xff] %v5070_v13  ;;  %v434_v63 = vmax.f32 %v388_v23, 0.0  ;;  %v1252_v16 = vsel %vm1232_vm13, %v4705_v6, 0.0  ;;  %vm1273_vm1 = vcmp.eq.s32.totalorder %v5044_v46, %v4907_v53  ;;  %vm1006_vm2 = vcmp.eq.s32.totalorder %v5044_v46, %v4913_v0  ;;  %3852 = vmatmul.msk.f32.gmra.mxu1 %vm837_vm14, %v4612_v21 }
 0x14a   : > { %v416_v1 = vmax.f32 %v394_v56, 0.0  ;;  %v420_v5 = vadd.f32 1.0, %v394_v56  ;;  %v7857_v4 = vshrl.u32 %v4855_v25, 16  ;;  %v615_v50 = vsel %vm614_vm15, 1, %v7807_v48 }
 0x14b   : > { %v417_v23 = vmax.f32 %v395_v24, 0.0  ;;  %v435_v12 = vmax.f32 %v389_v29, 0.0  ;;  %v5095_v44 = vadd.f32 %v1292_v40, %v1252_v16  ;;  %vm618_vm3 = vc.u32 %v616_v41, %v612_v34 }
 0x14c   : > { %v594_v52 = vadd.s32 %v593_v39, %v7857_v4  ;;  %v421_v3 = vadd.f32 1.0, %v395_v24  ;;  %v1253_v13 = vsel %vm1233_vm0, %v4806_v9, 0.0  ;;  %vm966_vm4 = vcmp.eq.s32.totalorder %v5044_v46, %v4682_v2  ;;  %v5190_v11 = vpop.f32.mrf.mxu1 }
 0x14d   : > { %7858 = vst [vmem:[#allocation67_spill] sm:$0xff] %v5095_v44  ;;  %v632_v25 = vand.u32 65535, %v5081_v32  ;;  %v5104_v56 = vmin.f32 %v434_v63, 17.0  ;;  %v1293_v18 = vsel %vm1273_vm1, %v4830_v54, 0.0  ;;  %v1026_v29 = vsel %vm1006_vm2, %v4722_v14, 0.0  ;;  %3823 = vmatmul.msk.f32.gmra.mxu2 %vm837_vm14, %v4658_v58 }
 0x14e   : > { %v617_v39 = vadd.s32 %v615_v50, %v609_v8  ;;  %v418_v34 = vmin.f32 %v416_v1, 17.0  ;;  %v422_v41 = vmax.f32 %v420_v5, 0.0  ;;  %v595_v24 = vshrl.u32 %v594_v52, 4  ;;  %3833 = vmatmul.msk.f32.gmra.mxu3 %vm837_vm14, %v4658_v58 }
 0x14f   : > { %v619_v40 = vsel %vm618_vm3, 1, %v7807_v48  ;;  %v419_v63 = vmin.f32 %v417_v23, 17.0  ;;  %v5117_v16 = vmin.f32 %v435_v12, 17.0  ;;  %v986_v4 = vsel %vm966_vm4, %v4702_v36, 0.0  ;;  %v5215_v47 = vpop.f32.mrf.mxu2 }
 0x150   : > { %v5121_v44 = vadd.s32 48, %v4276_v28  ;;  %v423_v8 = vmax.f32 %v421_v3, 0.0  ;;  %vm967_vm6 = vcmp.eq.s32.totalorder %v5044_v46, %v4787_v51  ;;  %v633_v1 = vshrl.u32 %v5081_v32, 16  ;;  %3843 = vmatmul.msk.f32.gmra.mxu0 %vm837_vm14, %v4658_v58 }
 0x151   : > { %v5128_v5 = vmul.u32 58254, %v632_v25  ;;  %v5130_v52 = vadd.f32 %v1293_v18, %v1253_v13  ;;  %v5132_v12 = vadd.f32 %v1026_v29, %v986_v4  ;;  %v611_v50 = vshrl.u32 %v4950_v59, 16  ;;  %3853 = vmatmul.msk.f32.gmra.mxu1 %vm837_vm14, %v4658_v58 }
 0x152   : > { %v621_v23 = vadd.s32 %v619_v40, %v617_v39  ;;  %v424_v26 = vmin.f32 %v422_v41, 17.0  ;;  %v454_v3 = vsub.f32 %v418_v34, %v5104_v56  ;;  %vm1007_vm7 = vcmp.eq.s32.totalorder %v5044_v46, %v4917_v33 }
 0x153   : > { %7859 = vst [vmem:[#allocation68_spill] sm:$0xff] %v5130_v52  ;;  %v596_v20 = vmul.u32 18, %v595_v24  ;;  %v3994_v13 = vcvt.f32.s32 %v418_v34  ;;  %v455_v18 = vsub.f32 %v419_v63, %v5117_v16  ;;  %v5144_v29 = vsel %vm967_vm6, %v4797_v37, 0.0 }
 0x154   : > { %7860 = vst [vmem:[#allocation69_spill] sm:$0xff] %v5132_v12  ;;  %v661_v59 = vand.u32 65535, %v5121_v44  ;;  %v425_v39 = vmin.f32 %v423_v8, 17.0  ;;  %v635_v40 = vmul.u32 14564, %v632_v25  ;;  %v5147_v41 = vmul.u32 14564, %v633_v1 }
 0x155   : > { %v639_v4 = vshll.u32 %v5128_v5, 16  ;;  %v3996_v12 = vcvt.f32.s32 %v419_v63  ;;  %v5151_v24 = vsel %vm1007_vm7, %v4827_v10, 0.0  ;;  %v613_v45 = vshrl.u32 %v4985_v22, 16  ;;  %3824 = vmatmul.msk.f32.gmra.mxu2 %vm837_vm14, %v4699_v55 }
 0x156   : > { %v622_v34 = vadd.s32 %v621_v23, %v611_v50  ;;  %v456_v46 = vadd.f32 1.0, %v454_v3  ;;  %v3998_v52 = vceil.f32 %v424_v26  ;;  %v3999_v35 = vfloor.f32 %v424_v26  ;;  %3834 = vmatmul.msk.f32.gmra.mxu3 %vm837_vm14, %v4699_v55 }
 0x157   : > { %v597_v15 = vsub.s32 %v4760_v19, %v596_v20  ;;  %v458_v60 = vsub.f32 %v424_v26, %v5104_v56  ;;  %vm3997_vm8 = vcmp.lt.s32.totalorder %v424_v26, 0  ;;  %v662_v25 = vshrl.u32 %v5121_v44, 16 }
 0x158   : > { %v5159_v63 = vmul.u32 58254, %v661_v59  ;;  %v5161_v8 = vperm.slane %v3994_v13, 0  ;;  %v641_v22 = vshll.u32 %v5147_v41, 16  ;;  %vm643_vm9 = vc.u32 %v635_v40, %v639_v4  ;;  %3844 = vmatmul.msk.f32.gmra.mxu0 %vm837_vm14, %v4699_v55 }
 0x159   : > { %v645_v50 = vadd.s32 %v639_v4, %v635_v40  ;;  %v5166_v19 = vperm.slane %v3994_v13, 1  ;;  %v457_v20 = vadd.f32 1.0, %v455_v18  ;;  %v459_v26 = vsub.f32 %v425_v39, %v5117_v16  ;;  %3854 = vmatmul.msk.f32.gmra.mxu1 %vm837_vm14, %v4699_v55 }
 0x15a   : > { %v623_v56 = vadd.s32 %v622_v34, %v613_v45  ;;  %v5169_v23 = vsel %vm3997_vm8, %v3998_v52, %v3999_v35  ;;  %vm748_vm10 = vcmp.ne.s32.totalorder %v597_v15, 0  ;;  %vm757_vm11 = vcmp.lt.s32.totalorder %v597_v15, 0  ;;  %v5183_v45 = vpop.f32.mrf.mxu0 }
 0x15b   : > { %7861 = vst [vmem:[#allocation70_spill] sm:$0xff] %v5166_v19  ;;  %v638_v3 = vmul.u32 58254, %v633_v1  ;;  %v644_v38 = vsel %vm643_vm9, 1, %v7807_v48  ;;  %v664_v40 = vmul.u32 14564, %v661_v59  ;;  %v5176_v13 = vmul.u32 14564, %v662_v25  ;;  %vm766_vm15 = vmand %vm757_vm11, %vm748_vm10 }
 0x15c   : > { %7862 = vst [vmem:[#allocation71_spill] sm:$0xff] %v5169_v23  ;;  %v668_v18 = vshll.u32 %v5159_v63, 16  ;;  %v5179_v16 = vsub.f32 1.0, %v458_v60  ;;  %v4003_v35 = vceil.f32 %v425_v39  ;;  %v4004_v52 = vfloor.f32 %v425_v39 }
 0x15d   : > { %vm647_vm12 = vc.u32 %v645_v50, %v641_v22  ;;  %v5181_v4 = vperm.slane %v456_v46, 0  ;;  %vm4002_vm13 = vcmp.lt.s32.totalorder %v425_v39, 0  ;;  %v775_v1 = vadd.s32 18, %v597_v15  ;;  %v5223_v39 = vpop.f32.mrf.mxu3 }
 0x15e   : > { %7863 = vst [vmem:[#allocation72_spill] sm:$0xff] %v5179_v16  ;;  %v624_v34 = vshrl.u32 %v623_v56, 4  ;;  %v5186_v19 = vperm.slane %v456_v46, 1  ;;  %v461_v59 = vsub.f32 1.0, %v459_v26  ;;  %v646_v60 = vadd.s32 %v644_v38, %v638_v3  ;;  %v5256_v56 = vpop.f32.mrf.mxu1 }
 0x15f   : > { %v648_v22 = vsel %vm647_vm12, 1, %v7807_v48  ;;  %v670_v50 = vshll.u32 %v5176_v13, 16  ;;  %vm5196_vm0 = vc.u32 %v664_v40, %v668_v18  ;;  %v674_v46 = vadd.s32 %v668_v18, %v664_v40 }
 0x160   : > { %7864 = vst [vmem:[#allocation73_spill] sm:$0xff] %v5186_v19  ;;  %v5201_v26 = vperm.slane %v5179_v16, 0  ;;  %v5204_v21 = vsel %vm4002_vm13, %v4003_v35, %v4004_v52  ;;  %v5206_v38 = vperm.slane %v3996_v12, 0  ;;  %v5211_v3 = vadd.s32 56, %v4276_v28 }
 0x161   : > { %7867 = vst [vmem:[#allocation74_spill] sm:$0xff] %v5204_v21  ;;  %v5213_v19 = vperm.slane %v457_v20, 0  ;;  %v5217_v7 = vsel %vm766_vm15, %v775_v1, %v597_v15  ;;  %v625_v40 = vmul.u32 18, %v624_v34  ;;  %v667_v18 = vmul.u32 58254, %v662_v25 }
 0x162   : > { %7868 = vst [vmem:[#allocation75_spill] sm:$0xff] %v5206_v38  ;;  %v5219_v16 = vperm.slane %v3996_v12, 1  ;;  %v640_v35 = vshrl.u32 %v5128_v5, 16  ;;  %v650_v52 = vadd.s32 %v648_v22, %v646_v60  ;;  %v5230_v15 = vperm.slane %v461_v59, 0  ;;  %v5250_v34 = vpop.f32.mrf.mxu0 }
 0x163   : > { %7869 = vst [vmem:[#allocation76_spill] sm:$0xff] %v5211_v3  ;;  %v5232_v1 = vperm.slane %v457_v20, 1  ;;  %vm676_vm1 = vc.u32 %v674_v46, %v670_v50  ;;  %vm1234_vm2 = vcmp.eq.s32.totalorder %v5217_v7, %v4685_v49  ;;  %vm1274_vm3 = vcmp.eq.s32.totalorder %v5217_v7, %v4904_v61 }
 0x164   : > { %7870 = vst [vmem:[#allocation77_spill] sm:$0xff] %v5213_v19  ;;  %v673_v19 = vsel %vm5196_vm0, 1, %v7807_v48  ;;  %vm1235_vm4 = vcmp.eq.s32.totalorder %v5217_v7, %v4790_v31  ;;  %v690_v5 = vand.u32 65535, %v5211_v3  ;;  %v5243_v12 = vperm.slane %v461_v59, 1 }
 0x165   : > { %7871 = vst [vmem:[#allocation78_spill] sm:$0xff] %v5217_v7  ;;  %v5247_v25 = vadd.f32 %v5151_v24, %v5144_v29  ;;  %v626_v58 = vsub.s32 %v4872_v57, %v625_v40  ;;  %v675_v20 = vadd.s32 %v673_v19, %v667_v18  ;;  %vm1275_vm6 = vcmp.eq.s32.totalorder %v5217_v7, %v4907_v53  ;;  %v5277_v40 = vpop.f32.mrf.mxu2  ;;  %v5279_v18 = vpop.f32.mrf.mxu3 }
 0x166   : > { %7872 = vst [vmem:[#allocation79_spill] sm:$0xff] %v5219_v16  ;;  %v642_v60 = vshrl.u32 %v5147_v41, 16  ;;  %v651_v22 = vadd.s32 %v650_v52, %v640_v35  ;;  %v677_v50 = vsel %vm676_vm1, 1, %v7807_v48  ;;  %v1254_v29 = vsel %vm1234_vm2, %v4705_v6, 0.0 }
 0x167   : > { %7873 = vst [vmem:[#allocation80_spill] sm:$0xff] %v5230_v15  ;;  %v1294_v57 = vsel %vm1274_vm3, %v4724_v17, 0.0  ;;  %v1255_v24 = vsel %vm1235_vm4, %v4806_v9, 0.0  ;;  %vm1008_vm7 = vcmp.eq.s32.totalorder %v5217_v7, %v4913_v0  ;;  %vm969_vm8 = vcmp.eq.s32.totalorder %v5217_v7, %v4787_v51 }
 0x168   : > { %7874 = vst [vmem:[#allocation81_spill] sm:$0xff] %v5232_v1  ;;  %vm1009_vm9 = vcmp.eq.s32.totalorder %v5217_v7, %v4917_v33  ;;  %v691_v41 = vshrl.u32 %v5211_v3, 16  ;;  %v5272_v19 = vmul.u32 58254, %v690_v5  ;;  %vm749_vm10 = vcmp.ne.s32.totalorder %v626_v58, 0 }
 0x169   : > { %7875 = vst [vmem:[#allocation82_spill] sm:$0xff] %v5243_v12  ;;  %vm758_vm11 = vcmp.lt.s32.totalorder %v626_v58, 0  ;;  %v669_v59 = vshrl.u32 %v5159_v63, 16  ;;  %v679_v46 = vadd.s32 %v677_v50, %v675_v20  ;;  %v1295_v35 = vsel %vm1275_vm6, %v4830_v54, 0.0 }
 0x16a   : > { %7876 = vst [vmem:[#allocation83_spill] sm:$0xff] %v5247_v25  ;;  %vm968_vm12 = vcmp.eq.s32.totalorder %v5217_v7, %v4682_v2  ;;  %v1028_v52 = vsel %vm1008_vm7, %v4722_v14, 0.0  ;;  %v652_v38 = vadd.s32 %v651_v22, %v642_v60  ;;  %v989_v63 = vsel %vm969_vm8, %v4797_v37, 0.0  ;;  %vm767_vm13 = vmand %vm758_vm11, %vm749_vm10 }
 0x16b   : > { %v1029_v20 = vsel %vm1009_vm9, %v4827_v10, 0.0  ;;  %v776_v50 = vadd.s32 18, %v626_v58  ;;  %v5299_v12 = vadd.s32 64, %v4276_v28  ;;  %v5301_v1 = vadd.f32 %v1294_v57, %v1254_v29  ;;  %v5321_v57 = vld [vmem:[%s4405_s14] sm:$0xff] }
 0x16c   : > { %v693_v55 = vmul.u32 14564, %v690_v5  ;;  %v5305_v60 = vmul.u32 14564, %v691_v41  ;;  %v697_v22 = vshll.u32 %v5272_v19, 16  ;;  %v5308_v15 = vadd.f32 %v1295_v35, %v1255_v24  ;;  %v5318_v5 = vpop.f32.mrf.mxu0  ;;  %7878 = vst [vmem:[#allocation85_spill] sm:$0xff] %v5321_v57  ;;  %3856 = vmatmul.msk.f32.vlgmr.msra.gmra.mxu2 %vm837_vm14, %v5321_v57  ;;  %v5330_v35 = vpop.f32.mrf.mxu1  ;;  %3866 = vmatmul.msk.f32.vlgmr.msra.gmra.mxu3 %vm837_vm14, %v5321_v57 }
 0x16d   : > { %v988_v7 = vsel %vm968_vm12, %v4702_v36, 0.0  ;;  %v671_v16 = vshrl.u32 %v5176_v13, 16  ;;  %v680_v21 = vadd.s32 %v679_v46, %v669_v59  ;;  %v5314_v3 = vadd.f32 %v1029_v20, %v989_v63  ;;  %3876 = vmatmul.msk.f32.vlgmr.msrb.gmra.mxu0 %vm837_vm14, %v5321_v57  ;;  %3886 = vmatmul.msk.f32.vlgmr.msrb.gmra.mxu1 %vm837_vm14, %v5321_v57 }
 0x16e   : > { %v5312_v25 = vadd.f32 %v1028_v52, %v988_v7  ;;  %v653_v29 = vshrl.u32 %v652_v38, 4  ;;  %vm2696_vm15 = vcmp.eq.s32.totalorder %v4281_v42, %v5161_v8  ;;  %v5325_v24 = vsel %vm767_vm13, %v776_v50, %v626_v58 }
 0x16f   : > { %7877 = vst [vmem:[#allocation84_spill] sm:$0xff] %v5314_v3  ;;  %v7880_v13 = vcvt.f32.s32 %v5169_v23  ;;  %v696_v7 = vmul.u32 58254, %v691_v41  ;;  %v719_v46 = vand.u32 65535, %v5299_v12  ;;  %v2704_v38 = vsel %vm2696_vm15, %v5181_v4, 0.0  ;;  %v5346_v41 = vpop.f32.mrf.mxu2 }
 0x170   : > { %7879 = vst [vmem:[#allocation86_spill] sm:$0xff] %v5325_v24  ;;  %v699_v52 = vshll.u32 %v5305_v60, 16  ;;  %vm5336_vm0 = vc.u32 %v693_v55, %v697_v22  ;;  %v703_v58 = vadd.s32 %v697_v22, %v693_v55  ;;  %v681_v20 = vadd.s32 %v680_v21, %v671_v16  ;;  %v5354_v16 = vpop.f32.mrf.mxu3 }
 0x171   : > { %v2706_v59 = vperm.slane %v7880_v13, 0  ;;  %vm2694_vm2 = vcmp.eq.s32.totalorder %v4284_v43, %v5161_v8  ;;  %vm1276_vm4 = vcmp.eq.s32.totalorder %v5325_v24, %v4904_v61  ;;  %v654_v50 = vmul.u32 18, %v653_v29 }
 0x172   : > { %v698_v55 = vshrl.u32 %v5272_v19, 16  ;;  %v2702_v22 = vsel %vm2694_vm2, %v5181_v4, 0.0  ;;  %vm2692_vm6 = vcmp.eq.s32.totalorder %v4276_v28, %v5161_v8  ;;  %vm5363_vm7 = vc.u32 %v703_v58, %v699_v52 }
 0x173   : > { %vm2712_vm1 = vcmp.eq.s32.totalorder %v4281_v42, %v2706_v59  ;;  %vm2710_vm3 = vcmp.eq.s32.totalorder %v4284_v43, %v2706_v59  ;;  %v702_v43 = vsel %vm5336_vm0, 1, %v7807_v48  ;;  %v720_v57 = vshrl.u32 %v5299_v12, 16 }
 0x174   : > { %v2720_v13 = vsel %vm2712_vm1, %v5201_v26, 0.0  ;;  %v2718_v23 = vsel %vm2710_vm3, %v5201_v26, 0.0  ;;  %vm1236_vm8 = vcmp.eq.s32.totalorder %v5325_v24, %v4685_v49  ;;  %vm1237_vm9 = vcmp.eq.s32.totalorder %v5325_v24, %v4790_v31 }
 0x175   : > { %v2726_v21 = vadd.f32 %v2720_v13, %v2704_v38  ;;  %v2724_v29 = vadd.f32 %v2718_v23, %v2702_v22  ;;  %v682_v38 = vshrl.u32 %v681_v20, 4  ;;  %v5373_v63 = vmul.u32 58254, %v719_v46  ;;  %v5382_v13 = vpop.f32.mrf.mxu0  ;;  %v5385_v22 = vld [vmem:[%s4405_s14 + $0x8] sm:$0xff] }
 0x176   : > { %v5377_v23 = vmul.f32 %v4977_v62, %v5183_v45  ;;  %vm1277_vm10 = vcmp.eq.s32.totalorder %v5325_v24, %v4907_v53  ;;  %v655_v52 = vsub.s32 %v5081_v32, %v654_v50  ;;  %v704_v58 = vadd.s32 %v702_v43, %v696_v7  ;;  %7886 = vst [vmem:[#allocation88_spill] sm:$0xff] %v5385_v22  ;;  %v5401_v32 = vpop.f32.mrf.mxu1 }
 0x177   : > { %3915 = vmatpush.msk.msra.mxu0 %vm865_vm5, %v2726_v21  ;;  %3857 = vmatmul.msk.f32.gmra.mxu2 %vm837_vm14, %v5385_v22  ;;  %v1296_v20 = vsel %vm1276_vm4, %v4724_v17, 0.0  ;;  %v2700_v62 = vsel %vm2692_vm6, %v5181_v4, 0.0  ;;  %vm2708_vm11 = vcmp.eq.s32.totalorder %v4276_v28, %v2706_v59  ;;  %v706_v43 = vsel %vm5363_vm7, 1, %v7807_v48  ;;  %v5419_v19 = vpop.f32.mrf.mxu2 }
 0x178   : > { %7885 = vst [vmem:[#allocation87_spill] sm:$0xff] %v5377_v23  ;;  %3867 = vmatmul.msk.f32.gmra.mxu3 %vm837_vm14, %v5385_v22  ;;  %v1256_v45 = vsel %vm1236_vm8, %v4705_v6, 0.0  ;;  %v1257_v8 = vsel %vm1237_vm9, %v4806_v9, 0.0  ;;  %v2716_v4 = vsel %vm2708_vm11, %v5201_v26, 0.0  ;;  %v5414_v59 = vmul.u32 14564, %v720_v57  ;;  %3877 = vmatmul.msk.f32.gmra.mxu0 %vm837_vm14, %v5385_v22  ;;  %v5425_v26 = vpop.f32.mrf.mxu3 }
 0x179   : > { %2748 = vmatpush.msra.mxu0 %v2724_v29  ;;  %v683_v7 = vmul.u32 18, %v682_v38  ;;  %v2722_v50 = vadd.f32 %v2716_v4, %v2700_v62  ;;  %v722_v21 = vmul.u32 14564, %v719_v46  ;;  %v726_v29 = vshll.u32 %v5373_v63, 16  ;;  %3887 = vmatmul.msk.f32.gmra.mxu1 %vm837_vm14, %v5385_v22  ;;  %7887 = vst [vmem:[#allocation89_spill] sm:$0xff] %v5425_v26  ;;  %v5457_v22 = vld [vmem:[%s4405_s14 + $0x10] sm:$0xff] }
 0x17a   : > { %v5421_v28 = vadd.f32 %v1296_v20, %v1256_v45  ;;  %vm750_vm12 = vcmp.ne.s32.totalorder %v655_v52, 0  ;;  %vm759_vm13 = vcmp.lt.s32.totalorder %v655_v52, 0  ;;  %v708_v23 = vadd.s32 %v706_v43, %v704_v58  ;;  %7892 = vst [vmem:[#allocation92_spill] sm:$0xff] %v5457_v22 }
 0x17b   : > { %v1297_v46 = vsel %vm1277_vm10, %v4830_v54, 0.0  ;;  %vm970_vm15 = vcmp.eq.s32.totalorder %v5325_v24, %v4682_v2  ;;  %vm1010_vm0 = vcmp.eq.s32.totalorder %v5325_v24, %v4913_v0  ;;  %2749 = vmatpush.msra.mxu0 %v2722_v50  ;;  %v725_v38 = vmul.u32 58254, %v720_v57  ;;  %vm5445_vm3 = vmand %vm759_vm13, %vm750_vm12 }
 0x17c   : > { %v5437_v58 = vmul.f32 %v4979_v27, %v5190_v11  ;;  %vm971_vm1 = vcmp.eq.s32.totalorder %v5325_v24, %v4787_v51  ;;  %v777_v20 = vadd.s32 18, %v655_v52  ;;  %v728_v62 = vshll.u32 %v5414_v59, 16 }
 0x17d   : > { %vm1011_vm2 = vcmp.eq.s32.totalorder %v5325_v24, %v4917_v33  ;;  %v684_v57 = vsub.s32 %v5121_v44, %v683_v7  ;;  %vm730_vm4 = vc.u32 %v722_v21, %v726_v29  ;;  %v732_v45 = vadd.s32 %v726_v29, %v722_v21 }
 0x17e   : > { %7888 = vst [vmem:[#allocation90_spill] sm:$0xff] %v5437_v58  ;;  %v5450_v11 = vadd.f32 %v1297_v46, %v1257_v8  ;;  %v700_v27 = vshrl.u32 %v5305_v60, 16  ;;  %v709_v4 = vadd.s32 %v708_v23, %v698_v55  ;;  %v731_v50 = vsel %vm730_vm4, 1, %v7807_v48  ;;  %v5454_v58 = vpop.f32.mrf.mxu0  ;;  %v7893_v8 = vld [vmem:[#allocation58_spill] sm:$0xff]  ;;  %v5467_v60 = vpop.f32.mrf.mxu1  ;;  %v7896_v46 = vld [vmem:[#allocation11_spill] sm:$0xff] }
 0x17f   : > { %3858 = vmatmul.msk.f32.gmra.mxu2 %vm837_vm14, %v5457_v22  ;;  %v1030_v44 = vsel %vm1010_vm0, %v4722_v14, 0.0  ;;  %v733_v7 = vadd.s32 %v731_v50, %v725_v38  ;;  %vm734_vm6 = vc.u32 %v732_v45, %v728_v62  ;;  %vm1494_vm7 = vcmp.eq.s32.totalorder %v7893_v8, %v4688_v30  ;;  %7894 = vst [vmem:[#allocation58_spill] sm:$0xff] %v5467_v60  ;;  %v7897_v62 = vld [vmem:[#allocation15_spill] sm:$0xff]  ;;  %v5490_v50 = vpop.f32.mrf.mxu2 }
 0x180   : > { %7891 = vst [vmem:[#allocation91_spill] sm:$0xff] %v5450_v11  ;;  %3868 = vmatmul.msk.f32.gmra.mxu3 %vm837_vm14, %v5457_v22  ;;  %v991_v55 = vsel %vm971_vm1, %v4797_v37, 0.0  ;;  %v1031_v23 = vsel %vm1011_vm2, %v4827_v10, 0.0  ;;  %v5481_v21 = vsel %vm5445_vm3, %v777_v20, %v655_v52  ;;  %v735_v29 = vsel %vm734_vm6, 1, %v7807_v48  ;;  %3878 = vmatmul.msk.f32.gmra.mxu0 %vm837_vm14, %v5457_v22  ;;  %v7898_v11 = vld [vmem:[#allocation60_spill] sm:$0xff]  ;;  %v5505_v26 = vpop.f32.mrf.mxu3 }
 0x181   : > { %7895 = vst [vmem:[#allocation93_spill] sm:$0xff] %v5481_v21  ;;  %vm751_vm8 = vcmp.ne.s32.totalorder %v684_v57, 0  ;;  %vm760_vm9 = vcmp.lt.s32.totalorder %v684_v57, 0  ;;  %v1514_v38 = vsel %vm1494_vm7, %v7896_v46, 0.0  ;;  %v5486_v45 = vperm.slane %v7897_v62, 2  ;;  %3888 = vmatmul.msk.f32.gmra.mxu1 %vm837_vm14, %v5457_v22 }
 0x182   : > { %v990_v52 = vsel %vm970_vm15, %v4702_v36, 0.0  ;;  %v710_v20 = vadd.s32 %v709_v4, %v700_v27  ;;  %v727_v48 = vshrl.u32 %v5373_v63, 16  ;;  %v737_v43 = vadd.s32 %v735_v29, %v733_v7  ;;  %7900 = vst [vmem:[#allocation60_spill] sm:$0xff] %v5505_v26  ;;  %v7901_v27 = vld [vmem:[#allocation61_spill] sm:$0xff]  ;;  %vm769_vm13 = vmand %vm760_vm9, %vm751_vm8 }
 0x183   : > { %v5499_v60 = vmul.f32 %v7898_v11, %v5215_v47  ;;  %v5503_v3 = vadd.f32 %v1030_v44, %v990_v52  ;;  %vm1278_vm10 = vcmp.eq.s32.totalorder %v5481_v21, %v4904_v61  ;;  %v778_v24 = vadd.s32 18, %v684_v57  ;;  %v7904_v47 = vld [vmem:[#allocation63_spill] sm:$0xff]  ;;  %v7905_v44 = vld [vmem:[#allocation64_spill] sm:$0xff]  ;;  %v7907_v52 = vld [vmem:[#allocation65_spill] sm:$0xff] }
 0x184   : > { %v5511_v4 = vmul.f32 %v7901_v27, %v5223_v39  ;;  %v5513_v63 = vadd.f32 %v1031_v23, %v991_v55  ;;  %vm1238_vm11 = vcmp.eq.s32.totalorder %v5481_v21, %v4685_v49  ;;  %vm1239_vm12 = vcmp.eq.s32.totalorder %v5481_v21, %v4790_v31 }
 0x185   : > { %7899 = vst [vmem:[#allocation11_spill] sm:$0xff] %v5499_v60  ;;  %v5523_v11 = vmul.f32 %v7904_v47, %v5250_v34  ;;  %v5527_v39 = vmul.f32 %v7905_v44, %v5256_v56  ;;  %vm1279_vm15 = vcmp.eq.s32.totalorder %v5481_v21, %v4907_v53  ;;  %vm1534_vm0 = vcmp.eq.s32.totalorder %v7893_v8, %v5486_v45  ;;  %v5544_v44 = vld [vmem:[%s4405_s14 + $0x18] sm:$0xff]  ;;  %v7919_v60 = vld [vmem:[#allocation38_spill] sm:$0xff] }
 0x186   : > { %7902 = vst [vmem:[#allocation61_spill] sm:$0xff] %v5511_v4  ;;  %v1298_v7 = vsel %vm1278_vm10, %v4724_v17, 0.0  ;;  %v711_v55 = vshrl.u32 %v710_v20, 4  ;;  %v729_v23 = vshrl.u32 %v5414_v59, 16  ;;  %v738_v29 = vadd.s32 %v737_v43, %v727_v48  ;;  %v5539_v27 = vpop.f32.mrf.mxu0  ;;  %v5550_v20 = vpop.f32.mrf.mxu1 }
 0x187   : > { %7903 = vst [vmem:[#allocation94_spill] sm:$0xff] %v5513_v63  ;;  %v5537_v34 = vmul.f32 %v7907_v52, %v5277_v40  ;;  %v1258_v56 = vsel %vm1238_vm11, %v4705_v6, 0.0  ;;  %v1259_v47 = vsel %vm1239_vm12, %v4806_v9, 0.0  ;;  %3859 = vmatmul.msk.f32.gmra.mxu2 %vm837_vm14, %v5544_v44  ;;  %v5548_v4 = vsel %vm769_vm13, %v778_v24, %v684_v57  ;;  %v7912_v40 = vld [vmem:[#allocation17_spill] sm:$0xff]  ;;  %v7913_v24 = vld [vmem:[#allocation66_spill] sm:$0xff]  ;;  %v5573_v52 = vpop.f32.mrf.mxu2  ;;  %v7921_v63 = vld [vmem:[#allocation59_spill] sm:$0xff] }
 0x188   : > { %7906 = vst [vmem:[#allocation63_spill] sm:$0xff] %v5527_v39  ;;  %v1299_v59 = vsel %vm1279_vm15, %v4830_v54, 0.0  ;;  %3869 = vmatmul.msk.f32.gmra.mxu3 %vm837_vm14, %v5544_v44  ;;  %vm972_vm1 = vcmp.eq.s32.totalorder %v5481_v21, %v4682_v2  ;;  %vm1280_vm2 = vcmp.eq.s32.totalorder %v5548_v4, %v4904_v61  ;;  %v1554_v48 = vsel %vm1534_vm0, %v7912_v40, 0.0  ;;  %3879 = vmatmul.msk.f32.gmra.mxu0 %vm837_vm14, %v5544_v44 }
 0x189   : > { %7908 = vst [vmem:[#allocation64_spill] sm:$0xff] %v5537_v34  ;;  %v5565_v57 = vmul.f32 %v7913_v24, %v5279_v18  ;;  %v1316_v43 = vadd.f32 %v1298_v7, %v1258_v56  ;;  %vm1012_vm3 = vcmp.eq.s32.totalorder %v5481_v21, %v4913_v0  ;;  %vm973_vm4 = vcmp.eq.s32.totalorder %v5481_v21, %v4787_v51 }
 0x18a   : > { %7909 = vst [vmem:[#allocation65_spill] sm:$0xff] %v5544_v44  ;;  %vm1013_vm6 = vcmp.eq.s32.totalorder %v5481_v21, %v4917_v33  ;;  %vm1240_vm7 = vcmp.eq.s32.totalorder %v5548_v4, %v4685_v49  ;;  %v712_v18 = vmul.u32 18, %v711_v55  ;;  %v739_v24 = vadd.s32 %v738_v29, %v729_v23  ;;  %3889 = vmatmul.msk.f32.gmra.mxu1 %vm837_vm14, %v5544_v44  ;;  %v7918_v21 = vld [vmem:[#allocation36_spill] sm:$0xff] }
 0x18b   : > { %7910 = vst [vmem:[#allocation95_spill] sm:$0xff] %v5548_v4  ;;  %v5579_v7 = vadd.f32 %v1299_v59, %v1259_v47  ;;  %v992_v56 = vsel %vm972_vm1, %v4702_v36, 0.0  ;;  %v1300_v22 = vsel %vm1280_vm2, %v4724_v17, 0.0  ;;  %v5590_v39 = vadd.f32 %v1554_v48, %v1514_v38  ;;  %v7917_v47 = vld [vmem:[#allocation34_spill] sm:$0xff]  ;;  %v7920_v48 = vld [vmem:[#allocation76_spill] sm:$0xff] }
 0x18c   : > { %7911 = vst [vmem:[#allocation96_spill] sm:$0xff] %v5550_v20  ;;  %v1032_v55 = vsel %vm1012_vm3, %v4722_v14, 0.0  ;;  %v993_v23 = vsel %vm973_vm4, %v4797_v37, 0.0  ;;  %v740_v29 = vshrl.u32 %v739_v24, 4  ;;  %vm1495_vm8 = vcmp.eq.s32.totalorder %v7893_v8, %v7917_v47  ;;  %v5612_v17 = vld [vmem:[%s4405_s14 + $0x20] sm:$0xff] }
 0x18d   : > { %7914 = vst [vmem:[#allocation17_spill] sm:$0xff] %v5565_v57  ;;  %v5584_v57 = vpop.f32.mrf.mxu3  ;;  %v1033_v59 = vsel %vm1013_vm6, %v4827_v10, 0.0  ;;  %v1260_v44 = vsel %vm1240_vm7, %v4705_v6, 0.0  ;;  %v5600_v34 = vperm.slane %v7919_v60, 2  ;;  %vm1496_vm9 = vcmp.eq.s32.totalorder %v7921_v63, %v4688_v30 }
 0x18e   : > { %7915 = vst [vmem:[#allocation66_spill] sm:$0xff] %v5579_v7  ;;  %v1318_v38 = vadd.f32 %v1300_v22, %v1260_v44  ;;  %v5603_v7 = vsub.s32 %v7920_v48, %v712_v18  ;;  %v741_v20 = vmul.u32 18, %v740_v29  ;;  %v5607_v24 = vadd.f32 %v1032_v55, %v992_v56  ;;  %v1173_v26 = vpop.f32.mrf.mxu0  ;;  %v5619_v18 = vpop.f32.mrf.mxu1  ;;  %v7923_v55 = vld [vmem:[#allocation40_spill] sm:$0xff]  ;;  %v7924_v48 = vld [vmem:[#allocation67_spill] sm:$0xff] }
 0x18f   : > { %7916 = vst [vmem:[#allocation97_spill] sm:$0xff] %v5584_v57  ;;  %v1515_v57 = vsel %vm1495_vm8, %v7918_v21, 0.0  ;;  %vm1241_vm10 = vcmp.eq.s32.totalorder %v5548_v4, %v4790_v31  ;;  %3860 = vmatmul.msk.f32.gmra.mxu2 %vm837_vm14, %v5612_v17  ;;  %vm1535_vm11 = vcmp.eq.s32.totalorder %v7893_v8, %v5600_v34  ;;  %v1516_v22 = vsel %vm1496_vm9, %v7896_v46, 0.0 }
 0x190   : > { %7922 = vst [vmem:[#allocation34_spill] sm:$0xff] %v5612_v17  ;;  %v1336_v44 = vmul.f32 %v1318_v38, %v1173_v26  ;;  %3870 = vmatmul.msk.f32.gmra.mxu3 %vm837_vm14, %v5612_v17  ;;  %v742_v56 = vsub.s32 %v5299_v12, %v741_v20  ;;  %v1555_v29 = vsel %vm1535_vm11, %v7923_v55, 0.0  ;;  %vm1536_vm12 = vcmp.eq.s32.totalorder %v7921_v63, %v5486_v45  ;;  %v5638_v12 = vpop.f32.mrf.mxu2 }
 0x191   : > { %v1328_v31 = vmul.f32 %v7924_v48, %v5318_v5  ;;  %v5629_v60 = vadd.f32 %v1033_v59, %v993_v23  ;;  %vm1281_vm13 = vcmp.eq.s32.totalorder %v5548_v4, %v4907_v53  ;;  %v5633_v26 = vadd.f32 %v1555_v29, %v1515_v57  ;;  %3880 = vmatmul.msk.f32.gmra.mxu0 %vm837_vm14, %v5612_v17  ;;  %v7927_v29 = vld [vmem:[#allocation68_spill] sm:$0xff] }
 0x192   : > { %v1261_v38 = vsel %vm1241_vm10, %v4806_v9, 0.0  ;;  %vm974_vm15 = vcmp.eq.s32.totalorder %v5548_v4, %v4682_v2  ;;  %vm1014_vm0 = vcmp.eq.s32.totalorder %v5548_v4, %v4913_v0  ;;  %vm752_vm1 = vcmp.ne.s32.totalorder %v5603_v7, 0  ;;  %3890 = vmatmul.msk.f32.gmra.mxu1 %vm837_vm14, %v5612_v17  ;;  %3394 = vmatpush.msrb.mxu0 %v1336_v44  ;;  %v5702_v9 = vld [vmem:[%s4405_s14 + $0x28] sm:$0xff]  ;;  %v7940_v17 = vld [vmem:[#allocation74_spill] sm:$0xff] }
 0x193   : > { %7925 = vst [vmem:[#allocation36_spill] sm:$0xff] %v5629_v60  ;;  %v1334_v5 = vmul.f32 %v1316_v43, %v5539_v27  ;;  %vm761_vm2 = vcmp.lt.s32.totalorder %v5603_v7, 0  ;;  %v1556_v57 = vsel %vm1536_vm12, %v7912_v40, 0.0  ;;  %vm1497_vm3 = vcmp.eq.s32.totalorder %v7921_v63, %v7917_v47  ;;  %v7959_v60 = vld [vmem:[#allocation6_spill] sm:$0xff] }
 0x194   : > { %vm753_vm4 = vcmp.ne.s32.totalorder %v742_v56, 0  ;;  %vm762_vm6 = vcmp.lt.s32.totalorder %v742_v56, 0  ;;  %v5657_v23 = vadd.f32 %v1556_v57, %v1516_v22  ;;  %v1517_v27 = vsel %vm1497_vm3, %v7918_v21, 0.0  ;;  %v7929_v57 = vld [vmem:[#allocation69_spill] sm:$0xff]  ;;  %vm5685_vm8 = vmand %vm761_vm2, %vm752_vm1 }
 0x195   : > { %v5648_v20 = vpop.f32.mrf.mxu3  ;;  %v1332_v43 = vmul.f32 %v5421_v28, %v5454_v58  ;;  %v1301_v59 = vsel %vm1281_vm13, %v4830_v54, 0.0  ;;  %3395 = vmatpush.msrb.mxu0 %v1334_v5  ;;  %v1034_v44 = vsel %vm1014_vm0, %v4722_v14, 0.0  ;;  %v779_v22 = vadd.s32 18, %v5603_v7  ;;  %v7932_v54 = vld [vmem:[#allocation83_spill] sm:$0xff]  ;;  %7935 = vst [vmem:[#allocation69_spill] sm:$0xff] %v5702_v9  ;;  %vm5708_vm9 = vmand %vm762_vm6, %vm753_vm4 }
 0x196   : > { %7926 = vst [vmem:[#allocation76_spill] sm:$0xff] %v5648_v20  ;;  %v5673_v48 = vmul.f32 %v7927_v29, %v5330_v35  ;;  %v5677_v28 = vmul.f32 %v7929_v57, %v5346_v41  ;;  %vm975_vm7 = vcmp.eq.s32.totalorder %v5548_v4, %v4787_v51  ;;  %v780_v5 = vadd.s32 18, %v742_v56  ;;  %v5699_v57 = vpop.f32.mrf.mxu0  ;;  %v5721_v53 = vpop.f32.mrf.mxu1 }
 0x197   : > { %v5691_v35 = vmul.f32 %v7932_v54, %v5354_v16  ;;  %v1330_v41 = vmul.f32 %v5301_v1, %v5382_v13  ;;  %v994_v29 = vsel %vm974_vm15, %v4702_v36, 0.0  ;;  %3396 = vmatpush.msrb.mxu0 %v1332_v43  ;;  %7934 = vst [vmem:[#allocation68_spill] sm:$0xff] %v5699_v57  ;;  %3861 = vmatmul.msk.f32.gmra.mxu2 %vm837_vm14, %v5702_v9  ;;  %v5713_v1 = vperm.slane %v7897_v62, 3  ;;  %v7951_v57 = vld [vmem:[#allocation87_spill] sm:$0xff] }
 0x198   : > { %7928 = vst [vmem:[#allocation40_spill] sm:$0xff] %v5673_v48  ;;  %v5717_v16 = vmul.f32 %v5308_v15, %v5401_v32  ;;  %v5719_v13 = vadd.f32 %v1301_v59, %v1261_v38  ;;  %v1052_v43 = vadd.f32 %v1034_v44, %v994_v29  ;;  %3871 = vmatmul.msk.f32.gmra.mxu3 %vm837_vm14, %v5702_v9  ;;  %v5737_v15 = vsel %vm975_vm7, %v4797_v37, 0.0  ;;  %v7942_v38 = vld [vmem:[#allocation75_spill] sm:$0xff]  ;;  %v7944_v59 = vld [vmem:[#allocation77_spill] sm:$0xff] }
 0x199   : > { %7933 = vst [vmem:[#allocation67_spill] sm:$0xff] %v5691_v35  ;;  %v7941_v35 = vcvt.f32.s32 %v7940_v17  ;;  %v5731_v62 = vmul.f32 %v5312_v25, %v5419_v19  ;;  %vm1015_vm10 = vcmp.eq.s32.totalorder %v5548_v4, %v4917_v33  ;;  %v5744_v32 = vsel %vm5685_vm8, %v779_v22, %v5603_v7  ;;  %3397 = vmatpush.msrb.mxu0 %v1330_v41  ;;  %v910_v25 = vpop.f32.mrf.mxu2  ;;  %v7954_v4 = vld [vmem:[#allocation12_spill] sm:$0xff] }
 0x19a   : > { %7938 = vst [vmem:[#allocation83_spill] sm:$0xff] %v5717_v16  ;;  %3881 = vmatmul.msk.f32.gmra.mxu0 %vm837_vm14, %v5702_v9  ;;  %vm1016_vm11 = vcmp.eq.s32.totalorder %v5744_v32, %v4913_v0  ;;  %v5752_v19 = vsel %vm5708_vm9, %v780_v5, %v742_v56  ;;  %vm1537_vm12 = vcmp.eq.s32.totalorder %v7921_v63, %v5600_v34  ;;  %v7946_v5 = vld [vmem:[#allocation80_spill] sm:$0xff]  ;;  %v5790_v29 = vsel %vm1015_vm10, %v4827_v10, 0.0 }
 0x19b   : > { %7939 = vst [vmem:[#allocation98_spill] sm:$0xff] %v5721_v53  ;;  %v5727_v48 = vperm.slane %v7941_v35, 0  ;;  %vm2697_vm13 = vcmp.eq.s32.totalorder %v4281_v42, %v7942_v38  ;;  %3891 = vmatmul.msk.f32.gmra.mxu1 %vm837_vm14, %v5702_v9  ;;  %3398 = vmatpush.msrb.mxu0 %v1328_v31  ;;  %vm1018_vm15 = vcmp.eq.s32.totalorder %v5752_v19, %v4913_v0  ;;  %v1557_v56 = vsel %vm1537_vm12, %v7923_v55, 0.0  ;;  %v7945_v31 = vld [vmem:[#allocation79_spill] sm:$0xff]  ;;  %v7948_v53 = vld [vmem:[#allocation89_spill] sm:$0xff]  ;;  %v7949_v9 = vld [vmem:[#allocation84_spill] sm:$0xff] }
 0x19c   : > { %vm1800_vm0 = vcmp.eq.s32.totalorder %v7893_v8, %v5713_v1  ;;  %v2705_v44 = vsel %vm2697_vm13, %v7944_v59, 0.0  ;;  %vm976_vm1 = vcmp.eq.s32.totalorder %v5744_v32, %v4682_v2  ;;  %v5770_v22 = vadd.f32 %v1557_v56, %v1517_v27  ;;  %v7947_v56 = vld [vmem:[#allocation81_spill] sm:$0xff] }
 0x19d   : > { %v5760_v7 = vpop.f32.mrf.mxu3  ;;  %vm2713_vm2 = vcmp.eq.s32.totalorder %v4281_v42, %v5727_v48  ;;  %vm2963_vm3 = vcmp.eq.s32.totalorder %v4281_v42, %v7945_v31  ;;  %3399 = vmatpush.msrb.mxu0 %v5523_v11  ;;  %v1036_v58 = vsel %vm1016_vm11, %v4722_v14, 0.0  ;;  %vm978_vm4 = vcmp.eq.s32.totalorder %v5752_v19, %v4682_v2  ;;  %v7958_v2 = vld [vmem:[#allocation7_spill] sm:$0xff] }
 0x19e   : > { %7943 = vst [vmem:[#allocation74_spill] sm:$0xff] %v5760_v7  ;;  %v2721_v27 = vsel %vm2713_vm2, %v7946_v5, 0.0  ;;  %v2973_v41 = vperm.slane %v7941_v35, 1  ;;  %v1038_v11 = vsel %vm1018_vm15, %v4722_v14, 0.0  ;;  %v2971_v0 = vsel %vm2963_vm3, %v7947_v56, 0.0  ;;  %v5800_v17 = vpop.f32.mrf.mxu0  ;;  %v5803_v35 = vld [vmem:[%s4405_s14 + $0x30] sm:$0xff] }
 0x19f   : > { %v2727_v54 = vadd.f32 %v2721_v27, %v2705_v44  ;;  %v5796_v7 = vmul.f32 %v7949_v9, %v7948_v53  ;;  %v996_v16 = vsel %vm976_vm1, %v4702_v36, 0.0  ;;  %3400 = vmatpush.msrb.mxu0 %v7951_v57  ;;  %7952 = vst [vmem:[#allocation77_spill] sm:$0xff] %v5800_v17  ;;  %3862 = vmatmul.msk.f32.gmra.mxu2 %vm837_vm14, %v5803_v35  ;;  %v5810_v44 = vpop.f32.mrf.mxu1  ;;  %v998_v53 = vsel %vm978_vm4, %v4702_v36, 0.0  ;;  %v7956_v9 = vld [vmem:[#allocation18_spill] sm:$0xff] }
 0x1a0   : > { %7953 = vst [vmem:[#allocation79_spill] sm:$0xff] %v5803_v35  ;;  %vm1760_vm6 = vcmp.eq.s32.totalorder %v7893_v8, %v7954_v4  ;;  %vm2979_vm7 = vcmp.eq.s32.totalorder %v4281_v42, %v2973_v41  ;;  %v1054_v14 = vadd.f32 %v1036_v58, %v996_v16  ;;  %3872 = vmatmul.msk.f32.gmra.mxu3 %vm837_vm14, %v5803_v35  ;;  %v5822_v57 = vsel %vm1800_vm0, %v7956_v9, 0.0  ;;  %v7957_v27 = vld [vmem:[#allocation82_spill] sm:$0xff] }
 0x1a1   : > { %7950 = vst [vmem:[#allocation75_spill] sm:$0xff] %v5796_v7  ;;  %3925 = vmatpush.msk.msra.mxu1 %vm865_vm5, %v2727_v54  ;;  %v2987_v16 = vsel %vm2979_vm7, %v7957_v27, 0.0  ;;  %v1070_v58 = vmul.f32 %v1052_v43, %v5638_v12  ;;  %vm1242_vm8 = vcmp.eq.s32.totalorder %v5744_v32, %v4685_v49  ;;  %vm2695_vm9 = vcmp.eq.s32.totalorder %v7958_v2, %v7942_v38  ;;  %v913_v36 = vpop.f32.mrf.mxu2 }
 0x1a2   : > { %7955 = vst [vmem:[#allocation80_spill] sm:$0xff] %v5810_v44  ;;  %v1056_v44 = vadd.f32 %v1038_v11, %v998_v53  ;;  %v2993_v7 = vadd.f32 %v2987_v16, %v2971_v0  ;;  %3882 = vmatmul.msk.f32.gmra.mxu0 %vm837_vm14, %v5803_v35  ;;  %v2703_v17 = vsel %vm2695_vm9, %v7944_v59, 0.0  ;;  %vm2711_vm10 = vcmp.eq.s32.totalorder %v7958_v2, %v5727_v48 }
 0x1a3   : > { %vm2961_vm11 = vcmp.eq.s32.totalorder %v7958_v2, %v7945_v31  ;;  %vm2977_vm12 = vcmp.eq.s32.totalorder %v7958_v2, %v2973_v41  ;;  %3892 = vmatmul.msk.f32.gmra.mxu1 %vm837_vm14, %v5803_v35  ;;  %v2719_v11 = vsel %vm2711_vm10, %v7946_v5, 0.0  ;;  %v1072_v53 = vmul.f32 %v1054_v14, %v910_v25  ;;  %v5863_v14 = vld [vmem:[%s4405_s14 + $0x38] sm:$0xff] }
 0x1a4   : > { %v1074_v12 = vmul.f32 %v1056_v44, %v913_v36  ;;  %3945 = vmatpush.msk.msra.mxu3 %vm865_vm5, %v2993_v7  ;;  %v2969_v54 = vsel %vm2961_vm11, %v7947_v56, 0.0  ;;  %v2985_v0 = vsel %vm2977_vm12, %v7957_v27, 0.0  ;;  %v2725_v16 = vadd.f32 %v2719_v11, %v2703_v17  ;;  %7961 = vst [vmem:[#allocation81_spill] sm:$0xff] %v5863_v14  ;;  %v7963_v11 = vld [vmem:[#allocation58_spill] sm:$0xff] }
 0x1a5   : > { %v5841_v43 = vpop.f32.mrf.mxu3  ;;  %v2991_v20 = vadd.f32 %v2985_v0, %v2969_v54  ;;  %vm2693_vm13 = vcmp.eq.s32.totalorder %v7959_v60, %v7942_v38  ;;  %vm2709_vm15 = vcmp.eq.s32.totalorder %v7959_v60, %v5727_v48  ;;  %vm2959_vm0 = vcmp.eq.s32.totalorder %v7959_v60, %v7945_v31  ;;  %v7960_v38 = vld [vmem:[#allocation62_spill] sm:$0xff]  ;;  %v7964_v54 = vld [vmem:[#allocation91_spill] sm:$0xff] }
 0x1a6   : > { %3401 = vmatpush.msrb.mxu0 %v1074_v12  ;;  %v2701_v44 = vsel %vm2693_vm13, %v7944_v59, 0.0  ;;  %vm2975_vm1 = vcmp.eq.s32.totalorder %v7959_v60, %v2973_v41  ;;  %2792 = vmatpush.msra.mxu1 %v2725_v16  ;;  %v2717_v25 = vsel %vm2709_vm15, %v7946_v5, 0.0  ;;  %v2967_v7 = vsel %vm2959_vm0, %v7947_v56, 0.0  ;;  %v5860_v59 = vpop.f32.mrf.mxu0  ;;  %v7965_v16 = vld [vmem:[#allocation13_spill] sm:$0xff] }
 0x1a7   : > { %3058 = vmatpush.msra.mxu3 %v2991_v20  ;;  %v2983_v17 = vsel %vm2975_vm1, %v7957_v27, 0.0  ;;  %vm1498_vm2 = vcmp.eq.s32.totalorder %v7960_v38, %v4688_v30  ;;  %3863 = vmatmul.msk.f32.gmra.mxu2 %vm837_vm14, %v5863_v14  ;;  %v2723_v48 = vadd.f32 %v2717_v25, %v2701_v44  ;;  %vm1538_vm3 = vcmp.eq.s32.totalorder %v7960_v38, %v5486_v45  ;;  %v5872_v5 = vpop.f32.mrf.mxu1  ;;  %v7966_v44 = vld [vmem:[#allocation72_spill] sm:$0xff] }
 0x1a8   : > { %3402 = vmatpush.msrb.mxu0 %v1072_v53  ;;  %v2989_v31 = vadd.f32 %v2983_v17, %v2967_v7  ;;  %v1518_v20 = vsel %vm1498_vm2, %v7896_v46, 0.0  ;;  %vm1282_vm4 = vcmp.eq.s32.totalorder %v5744_v32, %v4904_v61  ;;  %7962 = vst [vmem:[#allocation89_spill] sm:$0xff] %v5872_v5  ;;  %3873 = vmatmul.msk.f32.gmra.mxu3 %vm837_vm14, %v5863_v14  ;;  %v1558_v41 = vsel %vm1538_vm3, %v7912_v40, 0.0 }
 0x1a9   : > { %vm1499_vm7 = vcmp.eq.s32.totalorder %v7960_v38, %v7917_v47  ;;  %vm1539_vm9 = vcmp.eq.s32.totalorder %v7960_v38, %v5600_v34  ;;  %v1068_v56 = vmul.f32 %v5607_v24, %v5573_v52  ;;  %2793 = vmatpush.msra.mxu1 %v2723_v48  ;;  %v5883_v27 = vadd.f32 %v1558_v41, %v1518_v20  ;;  %v1421_v24 = vpop.f32.mrf.mxu2 }
 0x1aa   : > { %3403 = vmatpush.msrb.mxu0 %v1070_v58  ;;  %v1519_v36 = vsel %vm1499_vm7, %v7918_v21, 0.0  ;;  %v1559_v12 = vsel %vm1539_vm9, %v7923_v55, 0.0  ;;  %v5889_v0 = vmul.f32 %v7964_v54, %v7963_v11  ;;  %v5893_v53 = vadd.f32 %v5790_v29, %v5737_v15  ;;  %3059 = vmatpush.msra.mxu3 %v2989_v31  ;;  %v7968_v31 = vld [vmem:[#allocation16_spill] sm:$0xff] }
 0x1ab   : > { %v1780_v52 = vsel %vm1760_vm6, %v7965_v16, 0.0  ;;  %3883 = vmatmul.msk.f32.gmra.mxu0 %vm837_vm14, %v5863_v14  ;;  %v5901_v58 = vadd.f32 %v1559_v12, %v1519_v36  ;;  %v5904_v25 = vperm.slane %v7966_v44, 1  ;;  %v1066_v7 = vmul.f32 %v5503_v3, %v5490_v50  ;;  %3893 = vmatmul.msk.f32.gmra.mxu1 %vm837_vm14, %v5863_v14  ;;  %v7972_v12 = vld [vmem:[#allocation71_spill] sm:$0xff] }
 0x1ac   : > { %v5909_v15 = vadd.f32 %v5822_v57, %v1780_v52  ;;  %v5914_v29 = vmul.f32 %v5590_v39, %v1421_v24  ;;  %3404 = vmatpush.msrb.mxu0 %v1068_v56  ;;  %v1262_v48 = vsel %vm1242_vm8, %v4705_v6, 0.0  ;;  %v1302_v3 = vsel %vm1282_vm4, %v7968_v31, 0.0  ;;  %v7970_v39 = vld [vmem:[#allocation78_spill] sm:$0xff]  ;;  %v7974_v52 = vld [vmem:[#allocation60_spill] sm:$0xff] }
 0x1ad   : > { %v1465_v17 = vpop.f32.mrf.mxu3  ;;  %vm1762_vm6 = vcmp.eq.s32.totalorder %v7921_v63, %v7954_v4  ;;  %vm977_vm10 = vcmp.eq.s32.totalorder %v5744_v32, %v4787_v51  ;;  %vm1500_vm11 = vcmp.eq.s32.totalorder %v7970_v39, %v4688_v30  ;;  %vm1540_vm8 = vcmp.eq.s32.totalorder %v7970_v39, %v5486_v45  ;;  %v5947_v56 = vld [vmem:[%s4405_s14 + $0x40] sm:$0xff] }
 0x1ae   : > { %7967 = vst [vmem:[#allocation84_spill] sm:$0xff] %v5914_v29  ;;  %v5925_v50 = vmul.f32 %v5633_v26, %v1465_v17  ;;  %3405 = vmatpush.msrb.mxu0 %v1066_v7  ;;  %vm1501_vm12 = vcmp.eq.s32.totalorder %v7970_v39, %v7917_v47  ;;  %vm1017_vm13 = vcmp.eq.s32.totalorder %v5744_v32, %v4917_v33  ;;  %v1520_v26 = vsel %vm1500_vm11, %v7896_v46, 0.0  ;;  %v5942_v41 = vpop.f32.mrf.mxu0  ;;  %v7975_v24 = vld [vmem:[#allocation94_spill] sm:$0xff] }
 0x1af   : > { %v1560_v57 = vsel %vm1540_vm8, %v7912_v40, 0.0  ;;  %v1521_v20 = vsel %vm1501_vm12, %v7918_v21, 0.0  ;;  %vm1802_vm15 = vcmp.eq.s32.totalorder %v7921_v63, %v5713_v1  ;;  %7971 = vst [vmem:[#allocation12_spill] sm:$0xff] %v5947_v56  ;;  %3864 = vmatmul.msk.f32.gmra.mxu2 %vm837_vm14, %v5947_v56  ;;  %vm1541_vm0 = vcmp.eq.s32.totalorder %v7970_v39, %v5600_v34 }
 0x1b0   : > { %7969 = vst [vmem:[#allocation87_spill] sm:$0xff] %v5925_v50  ;;  %3406 = vmatpush.msrb.mxu0 %v5731_v62  ;;  %v5952_v36 = vadd.f32 %v1560_v57, %v1520_v26  ;;  %v7973_v11 = vcvt.f32.s32 %v7972_v12  ;;  %v5962_v44 = vmul.f32 %v7975_v24, %v7974_v52  ;;  %v1320_v7 = vadd.f32 %v1302_v3, %v1262_v48  ;;  %v5968_v62 = vpop.f32.mrf.mxu1  ;;  %v7977_v57 = vld [vmem:[#allocation96_spill] sm:$0xff]  ;;  %v7978_v12 = vld [vmem:[#allocation66_spill] sm:$0xff] }
 0x1b1   : > { %v1782_v17 = vsel %vm1762_vm6, %v7965_v16, 0.0  ;;  %7976 = vst [vmem:[#allocation18_spill] sm:$0xff] %v5968_v62  ;;  %3874 = vmatmul.msk.f32.gmra.mxu3 %vm837_vm14, %v5947_v56  ;;  %v1561_v26 = vsel %vm1541_vm0, %v7923_v55, 0.0  ;;  %v997_v48 = vsel %vm977_vm10, %v4797_v37, 0.0  ;;  %vm1284_vm1 = vcmp.eq.s32.totalorder %v5752_v19, %v4904_v61 }
 0x1b2   : > { %v5958_v54 = vperm.slane %v7973_v11, 1  ;;  %v1335_v11 = vmul.f32 %v7978_v12, %v7977_v57  ;;  %3407 = vmatpush.msrb.mxu0 %v5677_v28  ;;  %v5982_v3 = vadd.f32 %v1561_v26, %v1521_v20  ;;  %v1337_v52 = vmul.f32 %v5719_v13, %v5619_v18  ;;  %v1424_v12 = vpop.f32.mrf.mxu2  ;;  %v7979_v28 = vld [vmem:[#allocation70_spill] sm:$0xff]  ;;  %v7981_v20 = vld [vmem:[#allocation64_spill] sm:$0xff]  ;;  %v7982_v26 = vld [vmem:[#allocation73_spill] sm:$0xff] }
 0x1b3   : > { %v1037_v24 = vsel %vm1017_vm13, %v4827_v10, 0.0  ;;  %v1822_v57 = vsel %vm1802_vm15, %v7956_v9, 0.0  ;;  %3884 = vmatmul.msk.f32.gmra.mxu0 %vm837_vm14, %v5947_v56  ;;  %vm2962_vm2 = vcmp.eq.s32.totalorder %v4281_v42, %v7979_v28  ;;  %vm1244_vm3 = vcmp.eq.s32.totalorder %v5752_v19, %v4685_v49  ;;  %3894 = vmatmul.msk.f32.gmra.mxu1 %vm837_vm14, %v5947_v56  ;;  %v7990_v56 = vld [vmem:[#allocation36_spill] sm:$0xff] }
 0x1b4   : > { %v6003_v18 = vmul.f32 %v5657_v23, %v1424_v12  ;;  %3408 = vmatpush.msrb.mxu0 %v7981_v20  ;;  %v2970_v50 = vsel %vm2962_vm2, %v7982_v26, 0.0  ;;  %vm2978_vm4 = vcmp.eq.s32.totalorder %v4281_v42, %v5958_v54  ;;  %v1304_v5 = vsel %vm1284_vm1, %v7968_v31, 0.0  ;;  %v7984_v23 = vld [vmem:[#allocation86_spill] sm:$0xff]  ;;  %v7985_v12 = vld [vmem:[#allocation11_spill] sm:$0xff] }
 0x1b5   : > { %v1468_v13 = vpop.f32.mrf.mxu3  ;;  %v2986_v29 = vsel %vm2978_vm4, %v5904_v25, 0.0  ;;  %vm1502_vm7 = vcmp.eq.s32.totalorder %v7984_v23, %v4688_v30  ;;  %vm1542_vm9 = vcmp.eq.s32.totalorder %v7984_v23, %v5486_v45  ;;  %vm1503_vm6 = vcmp.eq.s32.totalorder %v7984_v23, %v7917_v47 }
 0x1b6   : > { %7980 = vst [vmem:[#allocation82_spill] sm:$0xff] %v6003_v18  ;;  %v6014_v62 = vmul.f32 %v5770_v22, %v1468_v13  ;;  %3409 = vmatpush.msrb.mxu0 %v7985_v12  ;;  %v2992_v20 = vadd.f32 %v2986_v29, %v2970_v50  ;;  %v1522_v18 = vsel %vm1502_vm7, %v7896_v46, 0.0  ;;  %v1562_v42 = vsel %vm1542_vm9, %v7912_v40, 0.0  ;;  %v6031_v22 = vpop.f32.mrf.mxu0  ;;  %v7986_v29 = vld [vmem:[#allocation85_spill] sm:$0xff] }
 0x1b7   : > { %v1523_v61 = vsel %vm1503_vm6, %v7918_v21, 0.0  ;;  %vm1543_vm10 = vcmp.eq.s32.totalorder %v7984_v23, %v5600_v34  ;;  %vm2960_vm11 = vcmp.eq.s32.totalorder %v7958_v2, %v7979_v28  ;;  %3896 = vmatmul.msk.f32.vlgmr.msrb.gmra.mxu2 %vm837_vm14, %v7986_v29  ;;  %v6035_v31 = vadd.f32 %v1562_v42, %v1522_v18 }
 0x1b8   : > { %7983 = vst [vmem:[#allocation7_spill] sm:$0xff] %v6014_v62  ;;  %v1563_v50 = vsel %vm1543_vm10, %v7923_v55, 0.0  ;;  %v2968_v13 = vsel %vm2960_vm11, %v7982_v26, 0.0  ;;  %vm2976_vm8 = vcmp.eq.s32.totalorder %v7958_v2, %v5958_v54  ;;  %vm979_vm12 = vcmp.eq.s32.totalorder %v5752_v19, %v4787_v51  ;;  %v6045_v12 = vpop.f32.mrf.mxu1  ;;  %3935 = vmatpush.msk.msra.mxu2 %vm865_vm5, %v2992_v20  ;;  %v7989_v62 = vld [vmem:[#allocation97_spill] sm:$0xff] }
 0x1b9   : > { %7987 = vst [vmem:[#allocation6_spill] sm:$0xff] %v6035_v31  ;;  %vm1019_vm13 = vcmp.eq.s32.totalorder %v5752_v19, %v4917_v33  ;;  %3906 = vmatmul.msk.f32.vlgmr.msrb.gmra.mxu3 %vm837_vm14, %v7986_v29  ;;  %v6050_v18 = vadd.f32 %v1563_v50, %v1523_v61  ;;  %v2984_v42 = vsel %vm2976_vm8, %v5904_v25, 0.0  ;;  %v6055_v2 = vmul.f32 %v7990_v56, %v7989_v62  ;;  %v7991_v31 = vld [vmem:[#allocation76_spill] sm:$0xff] }
 0x1ba   : > { %7988 = vst [vmem:[#allocation58_spill] sm:$0xff] %v6045_v12  ;;  %v1055_v14 = vadd.f32 %v1037_v24, %v997_v48  ;;  %v1264_v35 = vsel %vm1244_vm3, %v4705_v6, 0.0  ;;  %3514 = vmatpush.msrb.mxu3 %v1337_v52  ;;  %v2990_v12 = vadd.f32 %v2984_v42, %v2968_v13  ;;  %v6063_v63 = vmul.f32 %v5893_v53, %v7991_v31  ;;  %v6069_v56 = vpop.f32.mrf.mxu2  ;;  %v7992_v62 = vld [vmem:[#allocation68_spill] sm:$0xff]  ;;  %v7997_v52 = vld [vmem:[#allocation74_spill] sm:$0xff] }
 0x1bb   : > { %v1322_v20 = vadd.f32 %v1304_v5, %v1264_v35  ;;  %v6065_v61 = vadd.f32 %v1822_v57, %v1782_v17  ;;  %3916 = vmatmul.msk.f32.vlgmr.msra.gmra.mxu0 %vm837_vm14, %v7986_v29  ;;  %vm2958_vm5 = vcmp.eq.s32.totalorder %v7959_v60, %v7979_v28  ;;  %v6074_v49 = vmul.f32 %v1320_v7, %v7992_v62  ;;  %v7995_v17 = vld [vmem:[#allocation83_spill] sm:$0xff]  ;;  %v8000_v31 = vld [vmem:[#allocation40_spill] sm:$0xff] }
 0x1bc   : > { %v999_v6 = vsel %vm979_vm12, %v4797_v37, 0.0  ;;  %v1039_v35 = vsel %vm1019_vm13, %v4827_v10, 0.0  ;;  %vm1764_vm15 = vcmp.eq.s32.totalorder %v7960_v38, %v7954_v4  ;;  %3926 = vmatmul.msk.f32.vlgmr.msra.gmra.mxu1 %vm837_vm14, %v7986_v29  ;;  %3515 = vmatpush.msrb.mxu3 %v1335_v11  ;;  %vm1804_vm0 = vcmp.eq.s32.totalorder %v7960_v38, %v5713_v1  ;;  %v7994_v10 = vld [vmem:[#allocation93_spill] sm:$0xff]  ;;  %v7996_v11 = vld [vmem:[#allocation88_spill] sm:$0xff] }
 0x1bd   : > { %v1471_v5 = vpop.f32.mrf.mxu3  ;;  %3014 = vmatpush.msra.mxu2 %v2990_v12  ;;  %v2966_v51 = vsel %vm2958_vm5, %v7982_v26, 0.0  ;;  %vm2974_vm1 = vcmp.eq.s32.totalorder %v7959_v60, %v5958_v54  ;;  %vm1504_vm2 = vcmp.eq.s32.totalorder %v7994_v10, %v4688_v30  ;;  %vm1544_vm3 = vcmp.eq.s32.totalorder %v7994_v10, %v5486_v45  ;;  %v7999_v26 = vld [vmem:[#allocation77_spill] sm:$0xff] }
 0x1be   : > { %v6091_v53 = vmul.f32 %v5901_v58, %v1471_v5  ;;  %3516 = vmatpush.msrb.mxu3 %v5889_v0  ;;  %v2982_v37 = vsel %vm2974_vm1, %v5904_v25, 0.0  ;;  %vm1505_vm4 = vcmp.eq.s32.totalorder %v7994_v10, %v7917_v47  ;;  %v1524_v58 = vsel %vm1504_vm2, %v7896_v46, 0.0  ;;  %v1696_v25 = vpop.f32.mrf.mxu0 }
 0x1bf   : > { %v2988_v33 = vadd.f32 %v2982_v37, %v2966_v51  ;;  %v1564_v7 = vsel %vm1544_vm3, %v7912_v40, 0.0  ;;  %v1525_v60 = vsel %vm1505_vm4, %v7918_v21, 0.0  ;;  %v1057_v54 = vadd.f32 %v1039_v35, %v999_v6  ;;  %3897 = vmatmul.msk.f32.gmra.mxu2 %vm837_vm14, %v7996_v11 }
 0x1c0   : > { %7993 = vst [vmem:[#allocation91_spill] sm:$0xff] %v6091_v53  ;;  %v1824_v0 = vsel %vm1804_vm0, %v7956_v9, 0.0  ;;  %3517 = vmatpush.msrb.mxu3 %v7995_v17  ;;  %v6111_v48 = vadd.f32 %v1564_v7, %v1524_v58  ;;  %vm1545_vm7 = vcmp.eq.s32.totalorder %v7994_v10, %v5600_v34  ;;  %v1073_v24 = vmul.f32 %v1055_v14, %v7997_v52  ;;  %v6118_v57 = vpop.f32.mrf.mxu1  ;;  %v8004_v58 = vld [vmem:[#allocation90_spill] sm:$0xff]  ;;  %v8005_v52 = vld [vmem:[#allocation9_spill] sm:$0xff] }
 0x1c1   : > { %vm1806_vm9 = vcmp.eq.s32.totalorder %v7970_v39, %v5713_v1  ;;  %7998 = vst [vmem:[#allocation13_spill] sm:$0xff] %v6118_v57  ;;  %3907 = vmatmul.msk.f32.gmra.mxu3 %vm837_vm14, %v7996_v11  ;;  %vm1808_vm6 = vcmp.eq.s32.totalorder %v7984_v23, %v5713_v1  ;;  %3015 = vmatpush.msra.mxu2 %v2988_v33  ;;  %v1565_v28 = vsel %vm1545_vm7, %v7923_v55, 0.0  ;;  %v1784_v14 = vsel %vm1764_vm15, %v7965_v16, 0.0 }
 0x1c2   : > { %v6126_v29 = vmul.f32 %v1322_v20, %v7999_v26  ;;  %vm1766_vm10 = vcmp.eq.s32.totalorder %v7970_v39, %v7954_v4  ;;  %3518 = vmatpush.msrb.mxu3 %v8000_v31  ;;  %v6135_v50 = vadd.f32 %v1565_v28, %v1525_v60  ;;  %v1075_v13 = vmul.f32 %v1057_v54, %v5841_v43  ;;  %v6140_v42 = vpop.f32.mrf.mxu2  ;;  %v8001_v20 = vld [vmem:[#allocation95_spill] sm:$0xff] }
 0x1c3   : > { %v1842_v12 = vadd.f32 %v1824_v0, %v1784_v14  ;;  %3917 = vmatmul.msk.f32.gmra.mxu0 %vm837_vm14, %v7996_v11  ;;  %vm1768_vm11 = vcmp.eq.s32.totalorder %v7984_v23, %v7954_v4  ;;  %vm1506_vm8 = vcmp.eq.s32.totalorder %v8001_v20, %v4688_v30  ;;  %v1826_v62 = vsel %vm1806_vm9, %v7956_v9, 0.0  ;;  %v8002_v43 = vld [vmem:[#allocation63_spill] sm:$0xff] }
 0x1c4   : > { %3927 = vmatmul.msk.f32.gmra.mxu1 %vm837_vm14, %v7996_v11  ;;  %3519 = vmatpush.msrb.mxu3 %v8002_v43  ;;  %v1828_v35 = vsel %vm1808_vm6, %v7956_v9, 0.0  ;;  %v1526_v5 = vsel %vm1506_vm8, %v7896_v46, 0.0  ;;  %vm1546_vm12 = vcmp.eq.s32.totalorder %v8001_v20, %v5486_v45  ;;  %v1786_v51 = vsel %vm1766_vm10, %v7965_v16, 0.0  ;;  %v8007_v43 = vld [vmem:[#allocation92_spill] sm:$0xff] }
 0x1c5   : > { %v1474_v6 = vpop.f32.mrf.mxu3  ;;  %v1566_v33 = vsel %vm1546_vm12, %v7912_v40, 0.0  ;;  %vm1507_vm13 = vcmp.eq.s32.totalorder %v8001_v20, %v7917_v47  ;;  %v1788_v7 = vsel %vm1768_vm11, %v7965_v16, 0.0  ;;  %vm1547_vm5 = vcmp.eq.s32.totalorder %v8001_v20, %v5600_v34 }
 0x1c6   : > { %v6165_v37 = vmul.f32 %v5982_v3, %v1474_v6  ;;  %3520 = vmatpush.msrb.mxu3 %v8004_v58  ;;  %v6172_v60 = vadd.f32 %v1566_v33, %v1526_v5  ;;  %v1527_v54 = vsel %vm1507_vm13, %v7918_v21, 0.0  ;;  %v6179_v3 = vmul.f32 %v5909_v15, %v5860_v59  ;;  %v1699_v31 = vpop.f32.mrf.mxu0 }
 0x1c7   : > { %v1844_v0 = vadd.f32 %v1826_v62, %v1786_v51  ;;  %v1846_v17 = vadd.f32 %v1828_v35, %v1788_v7  ;;  %v1567_v11 = vsel %vm1547_vm5, %v7923_v55, 0.0  ;;  %v6183_v28 = vperm.slane %v8005_v52, 0  ;;  %3898 = vmatmul.msk.f32.gmra.mxu2 %vm837_vm14, %v8007_v43 }
 0x1c8   : > { %8003 = vst [vmem:[#allocation72_spill] sm:$0xff] %v6165_v37  ;;  %v1858_v26 = vmul.f32 %v6065_v61, %v5942_v41  ;;  %v1860_v14 = vmul.f32 %v1842_v12, %v6031_v22  ;;  %3521 = vmatpush.msrb.mxu3 %v1075_v13  ;;  %v6190_v6 = vadd.f32 %v1567_v11, %v1527_v54  ;;  %v6192_v15 = vpop.f32.mrf.mxu1 }
 0x1c9   : > { %8006 = vst [vmem:[#allocation16_spill] sm:$0xff] %v6183_v28  ;;  %v1864_v59 = vmul.f32 %v1846_v17, %v1699_v31  ;;  %3908 = vmatmul.msk.f32.gmra.mxu3 %vm837_vm14, %v8007_v43  ;;  %vm1770_vm15 = vcmp.eq.s32.totalorder %v7994_v10, %v7954_v4  ;;  %vm1812_vm0 = vcmp.eq.s32.totalorder %v8001_v20, %v5713_v1 }
 0x1ca   : > { %8008 = vst [vmem:[#allocation78_spill] sm:$0xff] %v6192_v15  ;;  %vm1508_vm1 = vcmp.eq.s32.totalorder %v5744_v32, %v4688_v30  ;;  %3522 = vmatpush.msrb.mxu3 %v1073_v24  ;;  %vm1810_vm2 = vcmp.eq.s32.totalorder %v7994_v10, %v5713_v1  ;;  %vm1772_vm3 = vcmp.eq.s32.totalorder %v8001_v20, %v7954_v4  ;;  %v6211_v61 = vpop.f32.mrf.mxu2  ;;  %v1832_v13 = vsel %vm1812_vm0, %v7956_v9, 0.0 }
 0x1cb   : > { %v1528_v41 = vsel %vm1508_vm1, %v7896_v46, 0.0  ;;  %vm1548_vm4 = vcmp.eq.s32.totalorder %v5744_v32, %v5486_v45  ;;  %v1862_v22 = vmul.f32 %v1844_v0, %v1696_v25  ;;  %3918 = vmatmul.msk.f32.gmra.mxu0 %vm837_vm14, %v8007_v43  ;;  %3414 = vmatpush.msrb.mxu1 %v1864_v59  ;;  %vm1509_vm7 = vcmp.eq.s32.totalorder %v5744_v32, %v7917_v47 }
 0x1cc   : > { %v1568_v24 = vsel %vm1548_vm4, %v7912_v40, 0.0  ;;  %vm1549_vm9 = vcmp.eq.s32.totalorder %v5744_v32, %v5600_v34  ;;  %3928 = vmatmul.msk.f32.gmra.mxu1 %vm837_vm14, %v8007_v43  ;;  %3523 = vmatpush.msrb.mxu3 %v6063_v63  ;;  %v1529_v62 = vsel %vm1509_vm7, %v7918_v21, 0.0  ;;  %v6236_v63 = vsel %vm1770_vm15, %v7965_v16, 0.0  ;;  %v8021_v43 = vld [vmem:[#allocation43_spill] sm:$0xff] }
 0x1cd   : > { %v1477_v25 = vpop.f32.mrf.mxu3  ;;  %v6225_v12 = vadd.f32 %v1568_v24, %v1528_v41  ;;  %v1569_v35 = vsel %vm1549_vm9, %v7923_v55, 0.0  ;;  %3415 = vmatpush.msrb.mxu1 %v1862_v22  ;;  %8010 = vst [vmem:[#allocation60_spill] sm:$0xff] %v6236_v63  ;;  %v6242_v51 = vsel %vm1810_vm2, %v7956_v9, 0.0  ;;  %v6248_v58 = vmul.f32 %v5883_v27, %v6069_v56  ;;  %v8024_v24 = vld [vmem:[#allocation44_spill] sm:$0xff] }
 0x1ce   : > { %v6230_v5 = vmul.f32 %v6050_v18, %v1477_v25  ;;  %8011 = vst [vmem:[#allocation94_spill] sm:$0xff] %v6242_v51  ;;  %v6244_v33 = vadd.f32 %v1569_v35, %v1529_v62  ;;  %3524 = vmatpush.msrb.mxu3 %v6055_v2  ;;  %v1792_v18 = vsel %vm1772_vm3, %v7965_v16, 0.0  ;;  %vm1814_vm6 = vcmp.eq.s32.totalorder %v5744_v32, %v5713_v1  ;;  %v8013_v2 = vld [vmem:[#allocation15_spill] sm:$0xff]  ;;  %v6271_v0 = vpop.f32.mrf.mxu0  ;;  %v8026_v35 = vld [vmem:[#allocation45_spill] sm:$0xff] }
 0x1cf   : > { %vm1510_vm10 = vcmp.eq.s32.totalorder %v5752_v19, %v4688_v30  ;;  %3416 = vmatpush.msrb.mxu1 %v1860_v14  ;;  %v6259_v7 = vadd.f32 %v1832_v13, %v1792_v18  ;;  %vm1774_vm11 = vcmp.eq.s32.totalorder %v5744_v32, %v7954_v4  ;;  %v6265_v56 = vperm.slane %v8013_v2, 5  ;;  %8014 = vst [vmem:[#allocation66_spill] sm:$0xff] %v6271_v0  ;;  %v8015_v30 = vld [vmem:[#allocation65_spill] sm:$0xff] }
 0x1d0   : > { %8009 = vst [vmem:[#allocation71_spill] sm:$0xff] %v6230_v5  ;;  %v1530_v27 = vsel %vm1510_vm10, %v7896_v46, 0.0  ;;  %v6269_v54 = vmul.f32 %v5952_v36, %v6140_v42  ;;  %3525 = vmatpush.msrb.mxu3 %v5962_v44  ;;  %3899 = vmatmul.msk.f32.gmra.mxu2 %vm837_vm14, %v8015_v30  ;;  %vm1550_vm8 = vcmp.eq.s32.totalorder %v5752_v19, %v5486_v45  ;;  %v8016_v46 = vld [vmem:[#allocation38_spill] sm:$0xff]  ;;  %v6283_v11 = vpop.f32.mrf.mxu1  ;;  %v1834_v36 = vsel %vm1814_vm6, %v7956_v9, 0.0  ;;  %v8019_v14 = vld [vmem:[#allocation21_spill] sm:$0xff] }
 0x1d1   : > { %8012 = vst [vmem:[#allocation96_spill] sm:$0xff] %v6259_v7  ;;  %vm1511_vm12 = vcmp.eq.s32.totalorder %v5752_v19, %v7917_v47  ;;  %v6281_v17 = vperm.slane %v8016_v46, 5  ;;  %3417 = vmatpush.msrb.mxu1 %v1858_v26  ;;  %3909 = vmatmul.msk.f32.gmra.mxu3 %vm837_vm14, %v8015_v30  ;;  %v1570_v44 = vsel %vm1550_vm8, %v7912_v40, 0.0  ;;  %vm1551_vm13 = vcmp.eq.s32.totalorder %v5752_v19, %v5600_v34  ;;  %v8018_v47 = vld [vmem:[#allocation75_spill] sm:$0xff]  ;;  %v8020_v40 = vld [vmem:[#allocation22_spill] sm:$0xff] }
 0x1d2   : > { %8017 = vst [vmem:[#allocation70_spill] sm:$0xff] %v6283_v11  ;;  %v1531_v45 = vsel %vm1511_vm12, %v7918_v21, 0.0  ;;  %3526 = vmatpush.msrb.mxu3 %v8018_v47  ;;  %v1794_v42 = vsel %vm1774_vm11, %v7965_v16, 0.0  ;;  %v6300_v52 = vadd.f32 %v1570_v44, %v1530_v27  ;;  %v1571_v26 = vsel %vm1551_vm13, %v7923_v55, 0.0  ;;  %v6308_v21 = vpop.f32.mrf.mxu2  ;;  %v8022_v55 = vld [vmem:[#allocation67_spill] sm:$0xff]  ;;  %v8027_v27 = vld [vmem:[#allocation14_spill] sm:$0xff] }
 0x1d3   : > { %vm2292_vm5 = vcmp.eq.s32.totalorder %v7893_v8, %v8019_v14  ;;  %3919 = vmatmul.msk.f32.gmra.mxu0 %vm837_vm14, %v8015_v30  ;;  %3418 = vmatpush.msrb.mxu1 %v6179_v3  ;;  %v6310_v34 = vadd.f32 %v1571_v26, %v1531_v45  ;;  %vm2332_vm15 = vcmp.eq.s32.totalorder %v7893_v8, %v6265_v56  ;;  %v8023_v3 = vld [vmem:[#allocation23_spill] sm:$0xff]  ;;  %v6341_v47 = vperm.slane %v8013_v2, 4  ;;  %v8038_v5 = vld [vmem:[#allocation6_spill] sm:$0xff] }
 0x1d4   : > { %v2312_v31 = vsel %vm2292_vm5, %v8020_v40, 0.0  ;;  %vm2293_vm0 = vcmp.eq.s32.totalorder %v7893_v8, %v8021_v43  ;;  %3929 = vmatmul.msk.f32.gmra.mxu1 %vm837_vm14, %v8015_v30  ;;  %3527 = vmatpush.msrb.mxu3 %v8022_v55  ;;  %v6320_v41 = vadd.f32 %v1834_v36, %v1794_v42  ;;  %v2352_v22 = vsel %vm2332_vm15, %v8023_v3, 0.0  ;;  %v8028_v30 = vld [vmem:[#allocation17_spill] sm:$0xff]  ;;  %v8029_v44 = vld [vmem:[#allocation19_spill] sm:$0xff] }
 0x1d5   : > { %v1480_v59 = vpop.f32.mrf.mxu3  ;;  %v2313_v25 = vsel %vm2293_vm0, %v8024_v24, 0.0  ;;  %vm2333_vm1 = vcmp.eq.s32.totalorder %v7893_v8, %v6281_v17  ;;  %v6329_v62 = vadd.f32 %v2352_v22, %v2312_v31  ;;  %vm2026_vm2 = vcmp.eq.s32.totalorder %v7893_v8, %v8027_v27  ;;  %v8031_v42 = vld [vmem:[#allocation41_spill] sm:$0xff]  ;;  %v8032_v55 = vld [vmem:[#allocation59_spill] sm:$0xff] }
 0x1d6   : > { %v6327_v13 = vmul.f32 %v6135_v50, %v1480_v59  ;;  %v2353_v18 = vsel %vm2333_vm1, %v8026_v35, 0.0  ;;  %3528 = vmatpush.msrb.mxu3 %v8028_v30  ;;  %vm1776_vm3 = vcmp.eq.s32.totalorder %v5752_v19, %v7954_v4  ;;  %v2046_v45 = vsel %vm2026_vm2, %v8029_v44, 0.0  ;;  %v8030_v50 = vld [vmem:[#allocation37_spill] sm:$0xff]  ;;  %v6353_v59 = vpop.f32.mrf.mxu0 }
 0x1d7   : > { %v6337_v36 = vadd.f32 %v2353_v18, %v2313_v25  ;;  %vm2027_vm4 = vcmp.eq.s32.totalorder %v7893_v8, %v8030_v50  ;;  %v6347_v31 = vperm.slane %v8016_v46, 4  ;;  %vm2294_vm7 = vcmp.eq.s32.totalorder %v8032_v55, %v8019_v14  ;;  %8033 = vst [vmem:[#allocation73_spill] sm:$0xff] %v6353_v59  ;;  %v8034_v22 = vld [vmem:[#allocation61_spill] sm:$0xff]  ;;  %v8035_v25 = vld [vmem:[#allocation34_spill] sm:$0xff] }
 0x1d8   : > { %8025 = vst [vmem:[#allocation64_spill] sm:$0xff] %v6327_v13  ;;  %v2047_v26 = vsel %vm2027_vm4, %v8031_v42, 0.0  ;;  %vm2334_vm9 = vcmp.eq.s32.totalorder %v8032_v55, %v6265_v56  ;;  %3529 = vmatpush.msrb.mxu3 %v8034_v22  ;;  %3900 = vmatmul.msk.f32.gmra.mxu2 %vm837_vm14, %v8035_v25  ;;  %vm2066_vm6 = vcmp.eq.s32.totalorder %v7893_v8, %v6341_v47  ;;  %v2314_v18 = vsel %vm2294_vm7, %v8020_v40, 0.0  ;;  %v6364_v11 = vpop.f32.mrf.mxu1  ;;  %v8037_v22 = vld [vmem:[#allocation20_spill] sm:$0xff] }
 0x1d9   : > { %v2354_v30 = vsel %vm2334_vm9, %v8023_v3, 0.0  ;;  %vm2295_vm10 = vcmp.eq.s32.totalorder %v8032_v55, %v8021_v43  ;;  %8036 = vst [vmem:[#allocation86_spill] sm:$0xff] %v6364_v11  ;;  %3910 = vmatmul.msk.f32.gmra.mxu3 %vm837_vm14, %v8035_v25  ;;  %vm1816_vm11 = vcmp.eq.s32.totalorder %v5752_v19, %v5713_v1  ;;  %v2086_v53 = vsel %vm2066_vm6, %v8037_v22, 0.0  ;;  %v8039_v11 = vld [vmem:[#allocation42_spill] sm:$0xff] }
 0x1da   : > { %vm2067_vm8 = vcmp.eq.s32.totalorder %v7893_v8, %v6347_v31  ;;  %v6373_v37 = vadd.f32 %v2354_v30, %v2314_v18  ;;  %v6377_v13 = vmul.f32 %v8038_v5, %v6211_v61  ;;  %v6379_v57 = vadd.f32 %v2086_v53, %v2046_v45  ;;  %v6385_v7 = vpop.f32.mrf.mxu2 }
 0x1db   : > { %v2087_v15 = vsel %vm2067_vm8, %v8039_v11, 0.0  ;;  %v2315_v0 = vsel %vm2295_vm10, %v8024_v24, 0.0  ;;  %3920 = vmatmul.msk.f32.gmra.mxu0 %vm837_vm14, %v8035_v25  ;;  %vm2335_vm12 = vcmp.eq.s32.totalorder %v8032_v55, %v6281_v17  ;;  %vm2028_vm13 = vcmp.eq.s32.totalorder %v8032_v55, %v8027_v27 }
 0x1dc   : > { %v6387_v59 = vadd.f32 %v2087_v15, %v2047_v26  ;;  %vm2068_vm5 = vcmp.eq.s32.totalorder %v8032_v55, %v6341_v47  ;;  %3930 = vmatmul.msk.f32.gmra.mxu1 %vm837_vm14, %v8035_v25  ;;  %v1836_v61 = vsel %vm1816_vm11, %v7956_v9, 0.0  ;;  %v2355_v15 = vsel %vm2335_vm12, %v8026_v35, 0.0 }
 0x1dd   : > { %v1483_v53 = vpop.f32.mrf.mxu3  ;;  %v2048_v5 = vsel %vm2028_vm13, %v8029_v44, 0.0  ;;  %v2088_v45 = vsel %vm2068_vm5, %v8037_v22, 0.0  ;;  %v6407_v18 = vadd.f32 %v2355_v15, %v2315_v0  ;;  %vm2029_vm15 = vcmp.eq.s32.totalorder %v8032_v55, %v8030_v50 }
 0x1de   : > { %v6405_v26 = vmul.f32 %v6190_v6, %v1483_v53  ;;  %v6409_v30 = vadd.f32 %v2088_v45, %v2048_v5  ;;  %v2049_v25 = vsel %vm2029_vm15, %v8031_v42, 0.0  ;;  %vm2069_vm0 = vcmp.eq.s32.totalorder %v8032_v55, %v6347_v31  ;;  %v6425_v0 = vpop.f32.mrf.mxu0  ;;  %v8041_v53 = vld [vmem:[#allocation69_spill] sm:$0xff] }
 0x1df   : > { %vm2296_vm1 = vcmp.eq.s32.totalorder %v7960_v38, %v8019_v14  ;;  %vm2336_vm2 = vcmp.eq.s32.totalorder %v7960_v38, %v6265_v56  ;;  %v2089_v1 = vsel %vm2069_vm0, %v8039_v11, 0.0  ;;  %vm2297_vm4 = vcmp.eq.s32.totalorder %v7960_v38, %v8021_v43 }
 0x1e0   : > { %8040 = vst [vmem:[#allocation11_spill] sm:$0xff] %v6405_v26  ;;  %v2316_v9 = vsel %vm2296_vm1, %v8020_v40, 0.0  ;;  %v2356_v6 = vsel %vm2336_vm2, %v8023_v3, 0.0  ;;  %3901 = vmatmul.msk.f32.gmra.mxu2 %vm837_vm14, %v8041_v53  ;;  %v6429_v15 = vadd.f32 %v2089_v1, %v2049_v25  ;;  %v2317_v45 = vsel %vm2297_vm4, %v8024_v24, 0.0  ;;  %v6436_v26 = vpop.f32.mrf.mxu1 }
 0x1e1   : > { %v6431_v5 = vadd.f32 %v2356_v6, %v2316_v9  ;;  %vm2337_vm7 = vcmp.eq.s32.totalorder %v7960_v38, %v6281_v17  ;;  %8042 = vst [vmem:[#allocation85_spill] sm:$0xff] %v6436_v26  ;;  %3911 = vmatmul.msk.f32.gmra.mxu3 %vm837_vm14, %v8041_v53  ;;  %v1796_v51 = vsel %vm1776_vm3, %v7965_v16, 0.0  ;;  %vm2030_vm9 = vcmp.eq.s32.totalorder %v7960_v38, %v8027_v27 }
 0x1e2   : > { %v2357_v25 = vsel %vm2337_vm7, %v8026_v35, 0.0  ;;  %vm2070_vm6 = vcmp.eq.s32.totalorder %v7960_v38, %v6341_v47  ;;  %v6449_v1 = vadd.f32 %v1836_v61, %v1796_v51  ;;  %v2050_v6 = vsel %vm2030_vm9, %v8029_v44, 0.0  ;;  %v1442_v4 = vpop.f32.mrf.mxu2 }
 0x1e3   : > { %v6451_v9 = vadd.f32 %v2357_v25, %v2317_v45  ;;  %v2090_v26 = vsel %vm2070_vm6, %v8037_v22, 0.0  ;;  %3921 = vmatmul.msk.f32.gmra.mxu0 %vm837_vm14, %v8041_v53  ;;  %vm2031_vm3 = vcmp.eq.s32.totalorder %v7960_v38, %v8030_v50  ;;  %vm2071_vm10 = vcmp.eq.s32.totalorder %v7960_v38, %v6347_v31 }
 0x1e4   : > { %8043 = vst [vmem:[#allocation97_spill] sm:$0xff] %v6449_v1  ;;  %v6457_v16 = vadd.f32 %v2090_v26, %v2050_v6  ;;  %vm2298_vm11 = vcmp.eq.s32.totalorder %v7970_v39, %v8019_v14  ;;  %v6467_v51 = vmul.f32 %v6111_v48, %v6308_v21  ;;  %3931 = vmatmul.msk.f32.gmra.mxu1 %vm837_vm14, %v8041_v53  ;;  %v2051_v26 = vsel %vm2031_vm3, %v8031_v42, 0.0 }
 0x1e5   : > { %v1486_v61 = vpop.f32.mrf.mxu3  ;;  %v2091_v45 = vsel %vm2071_vm10, %v8039_v11, 0.0  ;;  %v2318_v25 = vsel %vm2298_vm11, %v8020_v40, 0.0  ;;  %vm2338_vm8 = vcmp.eq.s32.totalorder %v7970_v39, %v6265_v56  ;;  %vm2299_vm12 = vcmp.eq.s32.totalorder %v7970_v39, %v8021_v43 }
 0x1e6   : > { %8044 = vst [vmem:[#allocation36_spill] sm:$0xff] %v6457_v16  ;;  %v6475_v6 = vmul.f32 %v6244_v33, %v1486_v61  ;;  %v6477_v63 = vadd.f32 %v2091_v45, %v2051_v26  ;;  %v2358_v48 = vsel %vm2338_vm8, %v8023_v3, 0.0  ;;  %v2319_v21 = vsel %vm2299_vm12, %v8024_v24, 0.0  ;;  %v6495_v26 = vpop.f32.mrf.mxu0  ;;  %v8046_v45 = vld [vmem:[#allocation79_spill] sm:$0xff] }
 0x1e7   : > { %vm2339_vm13 = vcmp.eq.s32.totalorder %v7970_v39, %v6281_v17  ;;  %vm2032_vm5 = vcmp.eq.s32.totalorder %v7970_v39, %v8027_v27  ;;  %v6489_v33 = vadd.f32 %v2358_v48, %v2318_v25  ;;  %vm2072_vm15 = vcmp.eq.s32.totalorder %v7970_v39, %v6341_v47 }
 0x1e8   : > { %8045 = vst [vmem:[#allocation76_spill] sm:$0xff] %v6475_v6  ;;  %v2359_v53 = vsel %vm2339_vm13, %v8026_v35, 0.0  ;;  %v2052_v61 = vsel %vm2032_vm5, %v8029_v44, 0.0  ;;  %3902 = vmatmul.msk.f32.gmra.mxu2 %vm837_vm14, %v8046_v45  ;;  %v2092_v28 = vsel %vm2072_vm15, %v8037_v22, 0.0  ;;  %vm2033_vm0 = vcmp.eq.s32.totalorder %v7970_v39, %v8030_v50  ;;  %v6508_v48 = vpop.f32.mrf.mxu1 }
 0x1e9   : > { %v6499_v6 = vadd.f32 %v2359_v53, %v2319_v21  ;;  %vm2073_vm1 = vcmp.eq.s32.totalorder %v7970_v39, %v6347_v31  ;;  %v1602_v25 = vmul.f32 %v6172_v60, %v6385_v7  ;;  %8047 = vst [vmem:[#allocation68_spill] sm:$0xff] %v6508_v48  ;;  %3912 = vmatmul.msk.f32.gmra.mxu3 %vm837_vm14, %v8046_v45  ;;  %v2053_v21 = vsel %vm2033_vm0, %v8031_v42, 0.0 }
 0x1ea   : > { %v6512_v38 = vadd.f32 %v2092_v28, %v2052_v61  ;;  %v2093_v53 = vsel %vm2073_vm1, %v8039_v11, 0.0  ;;  %v1604_v16 = vmul.f32 %v6225_v12, %v1442_v4  ;;  %vm2300_vm2 = vcmp.eq.s32.totalorder %v7984_v23, %v8019_v14  ;;  %v1445_v60 = vpop.f32.mrf.mxu2 }
 0x1eb   : > { %v6517_v1 = vadd.f32 %v2093_v53, %v2053_v21  ;;  %vm2340_vm4 = vcmp.eq.s32.totalorder %v7984_v23, %v6265_v56  ;;  %3922 = vmatmul.msk.f32.gmra.mxu0 %vm837_vm14, %v8046_v45  ;;  %v2320_v28 = vsel %vm2300_vm2, %v8020_v40, 0.0  ;;  %vm2301_vm7 = vcmp.eq.s32.totalorder %v7984_v23, %v8021_v43 }
 0x1ec   : > { %v2360_v7 = vsel %vm2340_vm4, %v8023_v3, 0.0  ;;  %vm2341_vm9 = vcmp.eq.s32.totalorder %v7984_v23, %v6281_v17  ;;  %3932 = vmatmul.msk.f32.gmra.mxu1 %vm837_vm14, %v8046_v45  ;;  %v1606_v12 = vmul.f32 %v6300_v52, %v1445_v60  ;;  %v2321_v21 = vsel %vm2301_vm7, %v8024_v24, 0.0 }
 0x1ed   : > { %8048 = vst [vmem:[#allocation83_spill] sm:$0xff] %v6517_v1  ;;  %v1489_v4 = vpop.f32.mrf.mxu3  ;;  %v6534_v61 = vadd.f32 %v2360_v7, %v2320_v28  ;;  %v2361_v53 = vsel %vm2341_vm9, %v8026_v35, 0.0  ;;  %vm2034_vm6 = vcmp.eq.s32.totalorder %v7984_v23, %v8027_v27  ;;  %vm2074_vm3 = vcmp.eq.s32.totalorder %v7984_v23, %v6341_v47 }
 0x1ee   : > { %v6539_v48 = vmul.f32 %v6310_v34, %v1489_v4  ;;  %v6541_v1 = vadd.f32 %v2361_v53, %v2321_v21  ;;  %3419 = vmatpush.msrb.mxu1 %v1606_v12  ;;  %v2054_v52 = vsel %vm2034_vm6, %v8029_v44, 0.0  ;;  %v2094_v45 = vsel %vm2074_vm3, %v8037_v22, 0.0  ;;  %v6559_v7 = vpop.f32.mrf.mxu0  ;;  %v8050_v12 = vld [vmem:[#allocation81_spill] sm:$0xff] }
 0x1ef   : > { %vm2035_vm10 = vcmp.eq.s32.totalorder %v7984_v23, %v8030_v50  ;;  %vm2075_vm11 = vcmp.eq.s32.totalorder %v7984_v23, %v6347_v31  ;;  %v6553_v34 = vadd.f32 %v2094_v45, %v2054_v52  ;;  %vm2302_vm8 = vcmp.eq.s32.totalorder %v7994_v10, %v8019_v14 }
 0x1f0   : > { %8049 = vst [vmem:[#allocation88_spill] sm:$0xff] %v6539_v48  ;;  %v2055_v60 = vsel %vm2035_vm10, %v8031_v42, 0.0  ;;  %v2095_v28 = vsel %vm2075_vm11, %v8039_v11, 0.0  ;;  %3903 = vmatmul.msk.f32.gmra.mxu2 %vm837_vm14, %v8050_v12  ;;  %3420 = vmatpush.msrb.mxu1 %v1604_v16  ;;  %v2322_v21 = vsel %vm2302_vm8, %v8020_v40, 0.0  ;;  %vm2342_vm12 = vcmp.eq.s32.totalorder %v7994_v10, %v6265_v56  ;;  %v2263_v52 = vpop.f32.mrf.mxu1 }
 0x1f1   : > { %v6563_v4 = vadd.f32 %v2095_v28, %v2055_v60  ;;  %vm2303_vm13 = vcmp.eq.s32.totalorder %v7994_v10, %v8021_v43  ;;  %v6572_v53 = vmul.f32 %v6320_v41, %v6425_v0  ;;  %3913 = vmatmul.msk.f32.gmra.mxu3 %vm837_vm14, %v8050_v12  ;;  %v2362_v16 = vsel %vm2342_vm12, %v8023_v3, 0.0 }
 0x1f2   : > { %v2323_v45 = vsel %vm2303_vm13, %v8024_v24, 0.0  ;;  %vm2343_vm5 = vcmp.eq.s32.totalorder %v7994_v10, %v6281_v17  ;;  %v6581_v60 = vmul.f32 %v6337_v36, %v2263_v52  ;;  %3421 = vmatpush.msrb.mxu1 %v1602_v25  ;;  %v6583_v28 = vadd.f32 %v2362_v16, %v2322_v21  ;;  %v1953_v0 = vpop.f32.mrf.mxu2 }
 0x1f3   : > { %8051 = vst [vmem:[#allocation74_spill] sm:$0xff] %v6563_v4  ;;  %v2363_v41 = vsel %vm2343_vm5, %v8026_v35, 0.0  ;;  %vm2036_vm15 = vcmp.eq.s32.totalorder %v7994_v10, %v8027_v27  ;;  %3923 = vmatmul.msk.f32.gmra.mxu0 %vm837_vm14, %v8050_v12  ;;  %vm2076_vm0 = vcmp.eq.s32.totalorder %v7994_v10, %v6341_v47  ;;  %vm2037_vm1 = vcmp.eq.s32.totalorder %v7994_v10, %v8030_v50 }
 0x1f4   : > { %8052 = vst [vmem:[#allocation77_spill] sm:$0xff] %v6572_v53  ;;  %v6590_v4 = vadd.f32 %v2363_v41, %v2323_v45  ;;  %v2056_v48 = vsel %vm2036_vm15, %v8029_v44, 0.0  ;;  %3933 = vmatmul.msk.f32.gmra.mxu1 %vm837_vm14, %v8050_v12  ;;  %v6600_v36 = vmul.f32 %v6379_v57, %v1953_v0  ;;  %v2096_v21 = vsel %vm2076_vm0, %v8037_v22, 0.0  ;;  %v8056_v0 = vld [vmem:[#allocation12_spill] sm:$0xff] }
 0x1f5   : > { %8053 = vst [vmem:[#allocation40_spill] sm:$0xff] %v6581_v60  ;;  %v1997_v25 = vpop.f32.mrf.mxu3  ;;  %v2057_v52 = vsel %vm2037_vm1, %v8031_v42, 0.0  ;;  %vm2077_vm2 = vcmp.eq.s32.totalorder %v7994_v10, %v6347_v31  ;;  %3422 = vmatpush.msrb.mxu1 %v6467_v51  ;;  %v6610_v45 = vadd.f32 %v2096_v21, %v2056_v48  ;;  %vm2304_vm4 = vcmp.eq.s32.totalorder %v8001_v20, %v8019_v14 }
 0x1f6   : > { %8054 = vst [vmem:[#allocation63_spill] sm:$0xff] %v6600_v36  ;;  %v6607_v16 = vmul.f32 %v6387_v59, %v1997_v25  ;;  %v2097_v12 = vsel %vm2077_vm2, %v8039_v11, 0.0  ;;  %v2324_v41 = vsel %vm2304_vm4, %v8020_v40, 0.0  ;;  %vm2344_vm7 = vcmp.eq.s32.totalorder %v8001_v20, %v6265_v56  ;;  %v2222_v48 = vpop.f32.mrf.mxu0 }
 0x1f7   : > { %v6615_v57 = vadd.f32 %v2097_v12, %v2057_v52  ;;  %vm2305_vm9 = vcmp.eq.s32.totalorder %v8001_v20, %v8021_v43  ;;  %3423 = vmatpush.msrb.mxu1 %v6377_v13  ;;  %v2364_v59 = vsel %vm2344_vm7, %v8023_v3, 0.0  ;;  %vm2345_vm6 = vcmp.eq.s32.totalorder %v8001_v20, %v6281_v17 }
 0x1f8   : > { %8055 = vst [vmem:[#allocation90_spill] sm:$0xff] %v6607_v16  ;;  %v2325_v51 = vsel %vm2305_vm9, %v8024_v24, 0.0  ;;  %vm2038_vm3 = vcmp.eq.s32.totalorder %v8001_v20, %v8027_v27  ;;  %3904 = vmatmul.msk.f32.gmra.mxu2 %vm837_vm14, %v8056_v0  ;;  %v6631_v25 = vadd.f32 %v2364_v59, %v2324_v41  ;;  %v2365_v21 = vsel %vm2345_vm6, %v8026_v35, 0.0  ;;  %v2266_v12 = vpop.f32.mrf.mxu1 }
 0x1f9   : > { %v2058_v13 = vsel %vm2038_vm3, %v8029_v44, 0.0  ;;  %vm2078_vm10 = vcmp.eq.s32.totalorder %v8001_v20, %v6341_v47  ;;  %v6638_v52 = vmul.f32 %v6373_v37, %v2222_v48  ;;  %3914 = vmatmul.msk.f32.gmra.mxu3 %vm837_vm14, %v8056_v0  ;;  %3424 = vmatpush.msrb.mxu1 %v6269_v54  ;;  %v6643_v16 = vadd.f32 %v2365_v21, %v2325_v51 }
 0x1fa   : > { %v2098_v41 = vsel %vm2078_vm10, %v8037_v22, 0.0  ;;  %vm2039_vm11 = vcmp.eq.s32.totalorder %v8001_v20, %v8030_v50  ;;  %v6649_v59 = vmul.f32 %v6407_v18, %v2266_v12  ;;  %vm2079_vm8 = vcmp.eq.s32.totalorder %v8001_v20, %v6347_v31  ;;  %v1956_v54 = vpop.f32.mrf.mxu2 }
 0x1fb   : > { %v6651_v60 = vadd.f32 %v2098_v41, %v2058_v13  ;;  %v2059_v37 = vsel %vm2039_vm11, %v8031_v42, 0.0  ;;  %3924 = vmatmul.msk.f32.gmra.mxu0 %vm837_vm14, %v8056_v0  ;;  %3425 = vmatpush.msrb.mxu1 %v6248_v58  ;;  %v2099_v51 = vsel %vm2079_vm8, %v8039_v11, 0.0  ;;  %vm2306_vm12 = vcmp.eq.s32.totalorder %v5744_v32, %v8019_v14  ;;  %v8059_v41 = vld [vmem:[#allocation82_spill] sm:$0xff] }
 0x1fc   : > { %8057 = vst [vmem:[#allocation9_spill] sm:$0xff] %v6649_v59  ;;  %vm2346_vm13 = vcmp.eq.s32.totalorder %v5744_v32, %v6265_v56  ;;  %vm2307_vm5 = vcmp.eq.s32.totalorder %v5744_v32, %v8021_v43  ;;  %3934 = vmatmul.msk.f32.gmra.mxu1 %vm837_vm14, %v8056_v0  ;;  %v6669_v18 = vmul.f32 %v6409_v30, %v1956_v54  ;;  %v2326_v21 = vsel %vm2306_vm12, %v8020_v40, 0.0 }
 0x1fd   : > { %v2000_v48 = vpop.f32.mrf.mxu3  ;;  %v6671_v58 = vadd.f32 %v2099_v51, %v2059_v37  ;;  %v2366_v13 = vsel %vm2346_vm13, %v8023_v3, 0.0  ;;  %3426 = vmatpush.msrb.mxu1 %v8059_v41  ;;  %v2327_v0 = vsel %vm2307_vm5, %v8024_v24, 0.0  ;;  %vm2347_vm15 = vcmp.eq.s32.totalorder %v5744_v32, %v6281_v17 }
 0x1fe   : > { %v6676_v12 = vmul.f32 %v6429_v15, %v2000_v48  ;;  %v6679_v59 = vadd.f32 %v2366_v13, %v2326_v21  ;;  %v2367_v30 = vsel %vm2347_vm15, %v8026_v35, 0.0  ;;  %vm2040_vm0 = vcmp.eq.s32.totalorder %v5744_v32, %v8027_v27  ;;  %v8060_v15 = vld [vmem:[#allocation84_spill] sm:$0xff]  ;;  %v2225_v21 = vpop.f32.mrf.mxu0  ;;  %v4072_v13 = vld [vmem:[%s4405_s14] sm:$0xff] }
 0x1ff   : > { %vm2080_vm1 = vcmp.eq.s32.totalorder %v5744_v32, %v6341_v47  ;;  %vm2041_vm2 = vcmp.eq.s32.totalorder %v5744_v32, %v8030_v50  ;;  %3427 = vmatpush.msrb.mxu1 %v8060_v15  ;;  %v6692_v37 = vadd.f32 %v2367_v30, %v2327_v0  ;;  %v2060_v54 = vsel %vm2040_vm0, %v8029_v44, 0.0 }
 0x200   : > { %8058 = vst [vmem:[#allocation92_spill] sm:$0xff] %v6676_v12  ;;  %v2100_v51 = vsel %vm2080_vm1, %v8037_v22, 0.0  ;;  %v2061_v48 = vsel %vm2041_vm2, %v8031_v42, 0.0  ;;  %3936 = vmatmul.msk.f32.vlgmr.msra.gmra.mxu2 %vm837_vm14, %v4072_v13  ;;  %vm2081_vm4 = vcmp.eq.s32.totalorder %v5744_v32, %v6347_v31  ;;  %vm2308_vm7 = vcmp.eq.s32.totalorder %v5752_v19, %v8019_v14  ;;  %v2269_v30 = vpop.f32.mrf.mxu1 }
 0x201   : > { %v6699_v41 = vadd.f32 %v2100_v51, %v2060_v54  ;;  %vm2348_vm9 = vcmp.eq.s32.totalorder %v5752_v19, %v6265_v56  ;;  %v2392_v0 = vmul.f32 %v6431_v5, %v2225_v21  ;;  %3946 = vmatmul.msk.f32.vlgmr.msra.gmra.mxu3 %vm837_vm14, %v4072_v13  ;;  %3428 = vmatpush.msrb.mxu1 %v6126_v29  ;;  %v2101_v15 = vsel %vm2081_vm4, %v8039_v11, 0.0 }
 0x202   : > { %v2328_v54 = vsel %vm2308_vm7, %v8020_v40, 0.0  ;;  %v2368_v51 = vsel %vm2348_vm9, %v8023_v3, 0.0  ;;  %v6714_v12 = vmul.f32 %v6451_v9, %v2269_v30  ;;  %v6716_v14 = vadd.f32 %v2101_v15, %v2061_v48  ;;  %v1959_v29 = vpop.f32.mrf.mxu2  ;;  %v8065_v9 = vld [vmem:[#allocation49_spill] sm:$0xff]  ;;  %v8070_v15 = vld [vmem:[#allocation27_spill] sm:$0xff] }
 0x203   : > { %v6718_v53 = vadd.f32 %v2368_v51, %v2328_v54  ;;  %vm2309_vm6 = vcmp.eq.s32.totalorder %v5752_v19, %v8021_v43  ;;  %3434 = vmatpush.msra.mxu0 %v2392_v0  ;;  %3429 = vmatpush.msrb.mxu1 %v6074_v49  ;;  %vm2349_vm3 = vcmp.eq.s32.totalorder %v5752_v19, %v6281_v17  ;;  %v8069_v0 = vld [vmem:[#allocation31_spill] sm:$0xff] }
 0x204   : > { %8061 = vst [vmem:[#allocation15_spill] sm:$0xff] %v6714_v12  ;;  %v2329_v56 = vsel %vm2309_vm6, %v8024_v24, 0.0  ;;  %vm2042_vm10 = vcmp.eq.s32.totalorder %v5752_v19, %v8027_v27  ;;  %vm2082_vm11 = vcmp.eq.s32.totalorder %v5752_v19, %v6341_v47  ;;  %v2388_v40 = vmul.f32 %v6329_v62, %v6559_v7  ;;  %v8064_v47 = vld [vmem:[#allocation30_spill] sm:$0xff]  ;;  %v4073_v7 = vld [vmem:[%s4405_s14 + $0x8] sm:$0xff] }
 0x205   : > { %v2003_v3 = vpop.f32.mrf.mxu3  ;;  %v2369_v43 = vsel %vm2349_vm3, %v8026_v35, 0.0  ;;  %v2062_v49 = vsel %vm2042_vm10, %v8029_v44, 0.0  ;;  %v2102_v5 = vsel %vm2082_vm11, %v8037_v22, 0.0  ;;  %3435 = vmatpush.msra.mxu0 %v6638_v52  ;;  %vm2043_vm8 = vcmp.eq.s32.totalorder %v5752_v19, %v8030_v50  ;;  %v8063_v35 = vld [vmem:[#allocation29_spill] sm:$0xff]  ;;  %v8066_v52 = vld [vmem:[#allocation50_spill] sm:$0xff] }
 0x206   : > { %v6737_v17 = vmul.f32 %v6477_v63, %v2003_v3  ;;  %v6739_v24 = vadd.f32 %v2369_v43, %v2329_v56  ;;  %v6741_v27 = vadd.f32 %v2102_v5, %v2062_v49  ;;  %v2063_v62 = vsel %vm2043_vm8, %v8031_v42, 0.0  ;;  %v2228_v42 = vpop.f32.mrf.mxu0  ;;  %v8073_v5 = vld [vmem:[#allocation46_spill] sm:$0xff] }
 0x207   : > { %vm2083_vm12 = vcmp.eq.s32.totalorder %v5752_v19, %v6347_v31  ;;  %vm2824_vm13 = vcmp.eq.s32.totalorder %v7893_v8, %v8063_v35  ;;  %v6751_v44 = vperm.slane %v8013_v2, 7  ;;  %3436 = vmatpush.msra.mxu0 %v2388_v40  ;;  %vm2825_vm5 = vcmp.eq.s32.totalorder %v7893_v8, %v8065_v9  ;;  %v8072_v40 = vld [vmem:[#allocation51_spill] sm:$0xff] }
 0x208   : > { %8062 = vst [vmem:[#allocation65_spill] sm:$0xff] %v6737_v17  ;;  %v2103_v63 = vsel %vm2083_vm12, %v8039_v11, 0.0  ;;  %v2844_v22 = vsel %vm2824_vm13, %v8064_v47, 0.0  ;;  %v6758_v50 = vperm.slane %v8016_v46, 7  ;;  %3937 = vmatmul.msk.f32.gmra.mxu2 %vm837_vm14, %v4073_v7  ;;  %v2845_v48 = vsel %vm2825_vm5, %v8066_v52, 0.0  ;;  %v8067_v11 = vld [vmem:[#allocation24_spill] sm:$0xff]  ;;  %v2272_v13 = vpop.f32.mrf.mxu1 }
 0x209   : > { %v6762_v31 = vadd.f32 %v2103_v63, %v2063_v62  ;;  %vm2864_vm15 = vcmp.eq.s32.totalorder %v7893_v8, %v6751_v44  ;;  %vm2558_vm0 = vcmp.eq.s32.totalorder %v7893_v8, %v8067_v11  ;;  %v6770_v21 = vmul.f32 %v6489_v33, %v2228_v42  ;;  %3947 = vmatmul.msk.f32.gmra.mxu3 %vm837_vm14, %v4073_v7 }
 0x20a   : > { %v2884_v30 = vsel %vm2864_vm15, %v8069_v0, 0.0  ;;  %vm2865_vm1 = vcmp.eq.s32.totalorder %v7893_v8, %v6758_v50  ;;  %v2578_v54 = vsel %vm2558_vm0, %v8070_v15, 0.0  ;;  %v6778_v51 = vmul.f32 %v6499_v6, %v2272_v13  ;;  %v1962_v43 = vpop.f32.mrf.mxu2  ;;  %v8074_v6 = vld [vmem:[#allocation97_spill] sm:$0xff] }
 0x20b   : > { %8068 = vst [vmem:[#allocation75_spill] sm:$0xff] %v6770_v21  ;;  %v6780_v56 = vadd.f32 %v2884_v30, %v2844_v22  ;;  %v2885_v3 = vsel %vm2865_vm1, %v8072_v40, 0.0  ;;  %v6784_v33 = vperm.slane %v8013_v2, 6  ;;  %vm2559_vm2 = vcmp.eq.s32.totalorder %v7893_v8, %v8073_v5  ;;  %v8077_v2 = vld [vmem:[#allocation47_spill] sm:$0xff]  ;;  %v8079_v30 = vld [vmem:[#allocation28_spill] sm:$0xff] }
 0x20c   : > { %8071 = vst [vmem:[#allocation21_spill] sm:$0xff] %v6778_v51  ;;  %v6786_v49 = vadd.f32 %v2885_v3, %v2845_v48  ;;  %v6791_v62 = vperm.slane %v8016_v46, 6  ;;  %vm2826_vm4 = vcmp.eq.s32.totalorder %v8032_v55, %v8063_v35  ;;  %v6797_v63 = vmul.f32 %v8074_v6, %v6495_v26  ;;  %v8078_v48 = vld [vmem:[#allocation36_spill] sm:$0xff] }
 0x20d   : > { %v6799_v22 = vpop.f32.mrf.mxu3  ;;  %vm2598_vm7 = vcmp.eq.s32.totalorder %v7893_v8, %v6784_v33  ;;  %v2579_v42 = vsel %vm2559_vm2, %v8077_v2, 0.0  ;;  %v2846_v7 = vsel %vm2826_vm4, %v8064_v47, 0.0  ;;  %v6806_v13 = vmul.f32 %v8078_v48, %v1959_v29  ;;  %v8080_v6 = vld [vmem:[#allocation48_spill] sm:$0xff] }
 0x20e   : > { %8075 = vst [vmem:[#allocation22_spill] sm:$0xff] %v6797_v63  ;;  %v2618_v3 = vsel %vm2598_vm7, %v8079_v30, 0.0  ;;  %vm2599_vm9 = vcmp.eq.s32.totalorder %v7893_v8, %v6791_v62  ;;  %vm2866_vm6 = vcmp.eq.s32.totalorder %v8032_v55, %v6751_v44  ;;  %vm2827_vm3 = vcmp.eq.s32.totalorder %v8032_v55, %v8065_v9  ;;  %v2231_v12 = vpop.f32.mrf.mxu0  ;;  %v4074_v21 = vld [vmem:[%s4405_s14 + $0x10] sm:$0xff] }
 0x20f   : > { %8076 = vst [vmem:[#allocation43_spill] sm:$0xff] %v6799_v22  ;;  %v6813_v26 = vadd.f32 %v2618_v3, %v2578_v54  ;;  %v2619_v51 = vsel %vm2599_vm9, %v8080_v6, 0.0  ;;  %v2886_v17 = vsel %vm2866_vm6, %v8069_v0, 0.0  ;;  %v2847_v48 = vsel %vm2827_vm3, %v8066_v52, 0.0 }
 0x210   : > { %v6819_v22 = vadd.f32 %v2619_v51, %v2579_v42  ;;  %v6821_v29 = vadd.f32 %v2886_v17, %v2846_v7  ;;  %vm2867_vm10 = vcmp.eq.s32.totalorder %v8032_v55, %v6758_v50  ;;  %3938 = vmatmul.msk.f32.gmra.mxu2 %vm837_vm14, %v4074_v21  ;;  %vm2560_vm11 = vcmp.eq.s32.totalorder %v8032_v55, %v8067_v11  ;;  %v2275_v51 = vpop.f32.mrf.mxu1 }
 0x211   : > { %v2887_v54 = vsel %vm2867_vm10, %v8072_v40, 0.0  ;;  %vm2600_vm8 = vcmp.eq.s32.totalorder %v8032_v55, %v6784_v33  ;;  %vm2561_vm12 = vcmp.eq.s32.totalorder %v8032_v55, %v8073_v5  ;;  %v6836_v17 = vmul.f32 %v6534_v61, %v2231_v12  ;;  %3948 = vmatmul.msk.f32.gmra.mxu3 %vm837_vm14, %v4074_v21  ;;  %v8083_v21 = vld [vmem:[#allocation62_spill] sm:$0xff] }
 0x212   : > { %v6839_v42 = vadd.f32 %v2887_v54, %v2847_v48  ;;  %v2580_v7 = vsel %vm2560_vm11, %v8070_v15, 0.0  ;;  %v2620_v3 = vsel %vm2600_vm8, %v8079_v30, 0.0  ;;  %v6844_v46 = vmul.f32 %v6541_v1, %v2275_v51  ;;  %v1965_v61 = vpop.f32.mrf.mxu2 }
 0x213   : > { %8081 = vst [vmem:[#allocation67_spill] sm:$0xff] %v6836_v17  ;;  %v6846_v63 = vadd.f32 %v2620_v3, %v2580_v7  ;;  %v2581_v36 = vsel %vm2561_vm12, %v8077_v2, 0.0  ;;  %vm2601_vm13 = vcmp.eq.s32.totalorder %v8032_v55, %v6791_v62  ;;  %vm2828_vm5 = vcmp.eq.s32.totalorder %v8083_v21, %v8063_v35 }
 0x214   : > { %8082 = vst [vmem:[#allocation23_spill] sm:$0xff] %v6844_v46  ;;  %v2621_v12 = vsel %vm2601_vm13, %v8080_v6, 0.0  ;;  %vm2868_vm15 = vcmp.eq.s32.totalorder %v8083_v21, %v6751_v44  ;;  %vm2829_vm0 = vcmp.eq.s32.totalorder %v8083_v21, %v8065_v9  ;;  %v6859_v1 = vmul.f32 %v6512_v38, %v1962_v43 }
 0x215   : > { %v6861_v48 = vpop.f32.mrf.mxu3  ;;  %v6863_v54 = vadd.f32 %v2621_v12, %v2581_v36  ;;  %v2848_v51 = vsel %vm2828_vm5, %v8064_v47, 0.0  ;;  %v2888_v7 = vsel %vm2868_vm15, %v8069_v0, 0.0  ;;  %v6868_v3 = vmul.f32 %v6553_v34, %v1965_v61 }
 0x216   : > { %8084 = vst [vmem:[#allocation44_spill] sm:$0xff] %v6861_v48  ;;  %v6870_v46 = vadd.f32 %v2888_v7, %v2848_v51  ;;  %v2849_v17 = vsel %vm2829_vm0, %v8066_v52, 0.0  ;;  %vm2869_vm1 = vcmp.eq.s32.totalorder %v8083_v21, %v6758_v50  ;;  %vm2562_vm2 = vcmp.eq.s32.totalorder %v8083_v21, %v8067_v11  ;;  %v4075_v51 = vld [vmem:[%s4405_s14 + $0x18] sm:$0xff] }
 0x217   : > { %v2889_v38 = vsel %vm2869_vm1, %v8072_v40, 0.0  ;;  %vm2602_vm4 = vcmp.eq.s32.totalorder %v8083_v21, %v6784_v33  ;;  %vm2563_vm7 = vcmp.eq.s32.totalorder %v8083_v21, %v8073_v5  ;;  %v2582_v36 = vsel %vm2562_vm2, %v8070_v15, 0.0  ;;  %v2234_v12 = vpop.f32.mrf.mxu0 }
 0x218   : > { %8085 = vst [vmem:[#allocation45_spill] sm:$0xff] %v6870_v46  ;;  %v6882_v34 = vadd.f32 %v2889_v38, %v2849_v17  ;;  %v2622_v43 = vsel %vm2602_vm4, %v8079_v30, 0.0  ;;  %v2583_v61 = vsel %vm2563_vm7, %v8077_v2, 0.0  ;;  %3939 = vmatmul.msk.f32.gmra.mxu2 %vm837_vm14, %v4075_v51  ;;  %vm2603_vm9 = vcmp.eq.s32.totalorder %v8083_v21, %v6791_v62  ;;  %v2278_v38 = vpop.f32.mrf.mxu1 }
 0x219   : > { %v6889_v7 = vadd.f32 %v2622_v43, %v2582_v36  ;;  %vm2830_vm6 = vcmp.eq.s32.totalorder %v7970_v39, %v8063_v35  ;;  %vm2870_vm3 = vcmp.eq.s32.totalorder %v7970_v39, %v6751_v44  ;;  %v6898_v17 = vmul.f32 %v6583_v28, %v2234_v12  ;;  %3949 = vmatmul.msk.f32.gmra.mxu3 %vm837_vm14, %v4075_v51 }
 0x21a   : > { %8086 = vst [vmem:[#allocation14_spill] sm:$0xff] %v6882_v34  ;;  %v2623_v34 = vsel %vm2603_vm9, %v8080_v6, 0.0  ;;  %v2850_v36 = vsel %vm2830_vm6, %v8064_v47, 0.0  ;;  %v2890_v43 = vsel %vm2870_vm3, %v8069_v0, 0.0  ;;  %v6905_v46 = vmul.f32 %v6590_v4, %v2278_v38  ;;  %v1968_v28 = vpop.f32.mrf.mxu2 }
 0x21b   : > { %8087 = vst [vmem:[#allocation17_spill] sm:$0xff] %v6889_v7  ;;  %v6907_v48 = vadd.f32 %v2623_v34, %v2583_v61  ;;  %v6909_v7 = vadd.f32 %v2890_v43, %v2850_v36  ;;  %vm2831_vm10 = vcmp.eq.s32.totalorder %v7970_v39, %v8065_v9  ;;  %vm2871_vm11 = vcmp.eq.s32.totalorder %v7970_v39, %v6758_v50 }
 0x21c   : > { %8088 = vst [vmem:[#allocation19_spill] sm:$0xff] %v6898_v17  ;;  %v2851_v12 = vsel %vm2831_vm10, %v8066_v52, 0.0  ;;  %vm2564_vm8 = vcmp.eq.s32.totalorder %v7970_v39, %v8067_v11  ;;  %vm2604_vm12 = vcmp.eq.s32.totalorder %v7970_v39, %v6784_v33  ;;  %v6921_v4 = vmul.f32 %v6610_v45, %v1968_v28 }
 0x21d   : > { %8089 = vst [vmem:[#allocation37_spill] sm:$0xff] %v6905_v46  ;;  %v2012_v34 = vpop.f32.mrf.mxu3  ;;  %v2891_v61 = vsel %vm2871_vm11, %v8072_v40, 0.0  ;;  %v2584_v51 = vsel %vm2564_vm8, %v8070_v15, 0.0  ;;  %v2624_v38 = vsel %vm2604_vm12, %v8079_v30, 0.0  ;;  %vm2565_vm13 = vcmp.eq.s32.totalorder %v7970_v39, %v8073_v5 }
 0x21e   : > { %8090 = vst [vmem:[#allocation41_spill] sm:$0xff] %v6909_v7  ;;  %v6927_v36 = vmul.f32 %v6615_v57, %v2012_v34  ;;  %v6929_v43 = vadd.f32 %v2891_v61, %v2851_v12  ;;  %v6931_v46 = vadd.f32 %v2624_v38, %v2584_v51  ;;  %v2585_v45 = vsel %vm2565_vm13, %v8077_v2, 0.0  ;;  %v4076_v61 = vld [vmem:[%s4405_s14 + $0x20] sm:$0xff] }
 0x21f   : > { %vm2605_vm5 = vcmp.eq.s32.totalorder %v7970_v39, %v6791_v62  ;;  %vm2832_vm15 = vcmp.eq.s32.totalorder %v7984_v23, %v8063_v35  ;;  %vm2872_vm0 = vcmp.eq.s32.totalorder %v7984_v23, %v6751_v44  ;;  %vm2833_vm1 = vcmp.eq.s32.totalorder %v7984_v23, %v8065_v9  ;;  %v2237_v34 = vpop.f32.mrf.mxu0 }
 0x220   : > { %8091 = vst [vmem:[#allocation59_spill] sm:$0xff] %v6927_v36  ;;  %v2625_v57 = vsel %vm2605_vm5, %v8080_v6, 0.0  ;;  %v2852_v28 = vsel %vm2832_vm15, %v8064_v47, 0.0  ;;  %v2892_v12 = vsel %vm2872_vm0, %v8069_v0, 0.0  ;;  %3940 = vmatmul.msk.f32.gmra.mxu2 %vm837_vm14, %v4076_v61  ;;  %vm2873_vm2 = vcmp.eq.s32.totalorder %v7984_v23, %v6758_v50  ;;  %v2281_v36 = vpop.f32.mrf.mxu1 }
 0x221   : > { %8092 = vst [vmem:[#allocation61_spill] sm:$0xff] %v6929_v43  ;;  %v6949_v51 = vadd.f32 %v2625_v57, %v2585_v45  ;;  %v6951_v38 = vadd.f32 %v2892_v12, %v2852_v28  ;;  %v2853_v43 = vsel %vm2833_vm1, %v8066_v52, 0.0  ;;  %v6957_v7 = vmul.f32 %v6631_v25, %v2237_v34  ;;  %3950 = vmatmul.msk.f32.gmra.mxu3 %vm837_vm14, %v4076_v61 }
 0x222   : > { %v2893_v17 = vsel %vm2873_vm2, %v8072_v40, 0.0  ;;  %vm2566_vm4 = vcmp.eq.s32.totalorder %v7984_v23, %v8067_v11  ;;  %vm2606_vm7 = vcmp.eq.s32.totalorder %v7984_v23, %v6784_v33  ;;  %v6966_v45 = vmul.f32 %v6643_v16, %v2281_v36  ;;  %v1971_v12 = vpop.f32.mrf.mxu2 }
 0x223   : > { %8093 = vst [vmem:[#allocation34_spill] sm:$0xff] %v6951_v38  ;;  %v6968_v57 = vadd.f32 %v2893_v17, %v2853_v43  ;;  %v2586_v28 = vsel %vm2566_vm4, %v8070_v15, 0.0  ;;  %v2626_v25 = vsel %vm2606_vm7, %v8079_v30, 0.0  ;;  %vm2567_vm9 = vcmp.eq.s32.totalorder %v7984_v23, %v8073_v5 }
 0x224   : > { %8094 = vst [vmem:[#allocation20_spill] sm:$0xff] %v6957_v7  ;;  %v6972_v34 = vadd.f32 %v2626_v25, %v2586_v28  ;;  %vm2607_vm6 = vcmp.eq.s32.totalorder %v7984_v23, %v6791_v62  ;;  %vm2834_vm3 = vcmp.eq.s32.totalorder %v7994_v10, %v8063_v35  ;;  %v6981_v16 = vmul.f32 %v6651_v60, %v1971_v12 }
 0x225   : > { %8095 = vst [vmem:[#allocation6_spill] sm:$0xff] %v6966_v45  ;;  %v2015_v17 = vpop.f32.mrf.mxu3  ;;  %v2587_v36 = vsel %vm2567_vm9, %v8077_v2, 0.0  ;;  %v2627_v43 = vsel %vm2607_vm6, %v8080_v6, 0.0  ;;  %v2854_v61 = vsel %vm2834_vm3, %v8064_v47, 0.0  ;;  %vm2874_vm10 = vcmp.eq.s32.totalorder %v7994_v10, %v6751_v44  ;;  %v4077_v45 = vld [vmem:[%s4405_s14 + $0x28] sm:$0xff] }
 0x226   : > { %8096 = vst [vmem:[#allocation42_spill] sm:$0xff] %v6968_v57  ;;  %v6987_v28 = vmul.f32 %v6671_v58, %v2015_v17  ;;  %v6989_v25 = vadd.f32 %v2627_v43, %v2587_v36  ;;  %vm2835_vm11 = vcmp.eq.s32.totalorder %v7994_v10, %v8065_v9  ;;  %v2894_v60 = vsel %vm2874_vm10, %v8069_v0, 0.0 }
 0x227   : > { %v2855_v12 = vsel %vm2835_vm11, %v8066_v52, 0.0  ;;  %vm2875_vm8 = vcmp.eq.s32.totalorder %v7994_v10, %v6758_v50  ;;  %vm2568_vm12 = vcmp.eq.s32.totalorder %v7994_v10, %v8067_v11  ;;  %v7001_v58 = vadd.f32 %v2894_v60, %v2854_v61 }
 0x228   : > { %8097 = vst [vmem:[#allocation69_spill] sm:$0xff] %v6987_v28  ;;  %v2895_v17 = vsel %vm2875_vm8, %v8072_v40, 0.0  ;;  %v2588_v36 = vsel %vm2568_vm12, %v8070_v15, 0.0  ;;  %vm2608_vm13 = vcmp.eq.s32.totalorder %v7994_v10, %v6784_v33  ;;  %v2240_v43 = vpop.f32.mrf.mxu0  ;;  %3941 = vmatmul.msk.f32.gmra.mxu2 %vm837_vm14, %v4077_v45  ;;  %vm2569_vm5 = vcmp.eq.s32.totalorder %v7994_v10, %v8073_v5  ;;  %v2284_v60 = vpop.f32.mrf.mxu1 }
 0x229   : > { %8098 = vst [vmem:[#allocation79_spill] sm:$0xff] %v7001_v58  ;;  %v7009_v57 = vadd.f32 %v2895_v17, %v2855_v12  ;;  %v2628_v38 = vsel %vm2608_vm13, %v8079_v30, 0.0  ;;  %vm2609_vm15 = vcmp.eq.s32.totalorder %v7994_v10, %v6791_v62  ;;  %v7017_v61 = vmul.f32 %v6679_v59, %v2240_v43  ;;  %3951 = vmatmul.msk.f32.gmra.mxu3 %vm837_vm14, %v4077_v45 }
 0x22a   : > { %v7020_v28 = vadd.f32 %v2628_v38, %v2588_v36  ;;  %v2589_v58 = vsel %vm2569_vm5, %v8077_v2, 0.0  ;;  %v2629_v12 = vsel %vm2609_vm15, %v8080_v6, 0.0  ;;  %v7025_v17 = vmul.f32 %v6692_v37, %v2284_v60  ;;  %v1974_v59 = vpop.f32.mrf.mxu2 }
 0x22b   : > { %8099 = vst [vmem:[#allocation81_spill] sm:$0xff] %v7009_v57  ;;  %v7027_v57 = vadd.f32 %v2629_v12, %v2589_v58  ;;  %vm2836_vm0 = vcmp.eq.s32.totalorder %v8001_v20, %v8063_v35  ;;  %vm2876_vm1 = vcmp.eq.s32.totalorder %v8001_v20, %v6751_v44  ;;  %vm2837_vm2 = vcmp.eq.s32.totalorder %v8001_v20, %v8065_v9 }
 0x22c   : > { %8100 = vst [vmem:[#allocation12_spill] sm:$0xff] %v7025_v17  ;;  %v2856_v45 = vsel %vm2836_vm0, %v8064_v47, 0.0  ;;  %v2896_v38 = vsel %vm2876_vm1, %v8069_v0, 0.0  ;;  %vm2877_vm4 = vcmp.eq.s32.totalorder %v8001_v20, %v6758_v50  ;;  %v2136_v37 = vmul.f32 %v6699_v41, %v1974_v59 }
 0x22d   : > { %v2018_v58 = vpop.f32.mrf.mxu3  ;;  %v7040_v36 = vadd.f32 %v2896_v38, %v2856_v45  ;;  %v2857_v43 = vsel %vm2837_vm2, %v8066_v52, 0.0  ;;  %v2897_v60 = vsel %vm2877_vm4, %v8072_v40, 0.0  ;;  %vm2570_vm7 = vcmp.eq.s32.totalorder %v8001_v20, %v8067_v11 }
 0x22e   : > { %v7045_v12 = vmul.f32 %v6716_v14, %v2018_v58  ;;  %v7047_v17 = vadd.f32 %v2897_v60, %v2857_v43  ;;  %vm2610_vm9 = vcmp.eq.s32.totalorder %v8001_v20, %v6784_v33  ;;  %v2590_v41 = vsel %vm2570_vm7, %v8070_v15, 0.0  ;;  %v4078_v43 = vld [vmem:[%s4405_s14 + $0x30] sm:$0xff] }
 0x22f   : > { %8101 = vst [vmem:[#allocation82_spill] sm:$0xff] %v7040_v36  ;;  %v2630_v59 = vsel %vm2610_vm9, %v8079_v30, 0.0  ;;  %vm2571_vm6 = vcmp.eq.s32.totalorder %v8001_v20, %v8073_v5  ;;  %vm2611_vm3 = vcmp.eq.s32.totalorder %v8001_v20, %v6791_v62  ;;  %vm2838_vm10 = vcmp.eq.s32.totalorder %v5744_v32, %v8063_v35 }
 0x230   : > { %8102 = vst [vmem:[#allocation84_spill] sm:$0xff] %v7045_v12  ;;  %v7059_v14 = vadd.f32 %v2630_v59, %v2590_v41  ;;  %v2591_v45 = vsel %vm2571_vm6, %v8077_v2, 0.0  ;;  %v2631_v38 = vsel %vm2611_vm3, %v8080_v6, 0.0  ;;  %v2243_v58 = vpop.f32.mrf.mxu0  ;;  %3942 = vmatmul.msk.f32.gmra.mxu2 %vm837_vm14, %v4078_v43  ;;  %vm2878_vm11 = vcmp.eq.s32.totalorder %v5744_v32, %v6751_v44  ;;  %v2287_v59 = vpop.f32.mrf.mxu1 }
 0x231   : > { %8103 = vst [vmem:[#allocation29_spill] sm:$0xff] %v7047_v17  ;;  %v7067_v60 = vadd.f32 %v2631_v38, %v2591_v45  ;;  %v2858_v17 = vsel %vm2838_vm10, %v8064_v47, 0.0  ;;  %vm2839_vm8 = vcmp.eq.s32.totalorder %v5744_v32, %v8065_v9  ;;  %v7075_v41 = vmul.f32 %v6718_v53, %v2243_v58  ;;  %3952 = vmatmul.msk.f32.gmra.mxu3 %vm837_vm14, %v4078_v43 }
 0x232   : > { %v2898_v12 = vsel %vm2878_vm11, %v8069_v0, 0.0  ;;  %v2859_v36 = vsel %vm2839_vm8, %v8066_v52, 0.0  ;;  %vm2879_vm12 = vcmp.eq.s32.totalorder %v5744_v32, %v6758_v50  ;;  %v7083_v45 = vmul.f32 %v6739_v24, %v2287_v59  ;;  %v1977_v53 = vpop.f32.mrf.mxu2 }
 0x233   : > { %v7085_v38 = vadd.f32 %v2898_v12, %v2858_v17  ;;  %v2899_v7 = vsel %vm2879_vm12, %v8072_v40, 0.0  ;;  %vm2572_vm13 = vcmp.eq.s32.totalorder %v5744_v32, %v8067_v11  ;;  %vm2612_vm5 = vcmp.eq.s32.totalorder %v5744_v32, %v6784_v33 }
 0x234   : > { %8104 = vst [vmem:[#allocation30_spill] sm:$0xff] %v7083_v45  ;;  %v7090_v58 = vadd.f32 %v2899_v7, %v2859_v36  ;;  %v2592_v43 = vsel %vm2572_vm13, %v8070_v15, 0.0  ;;  %vm2573_vm15 = vcmp.eq.s32.totalorder %v5744_v32, %v8073_v5  ;;  %v2138_v24 = vmul.f32 %v6741_v27, %v1977_v53 }
 0x235   : > { %v2021_v17 = vpop.f32.mrf.mxu3  ;;  %v2632_v12 = vsel %vm2612_vm5, %v8079_v30, 0.0  ;;  %v2593_v59 = vsel %vm2573_vm15, %v8077_v2, 0.0  ;;  %vm2613_vm0 = vcmp.eq.s32.totalorder %v5744_v32, %v6791_v62  ;;  %vm2840_vm1 = vcmp.eq.s32.totalorder %v5752_v19, %v8063_v35 }
 0x236   : > { %v7103_v7 = vmul.f32 %v6762_v31, %v2021_v17  ;;  %v7105_v36 = vadd.f32 %v2632_v12, %v2592_v43  ;;  %v2633_v45 = vsel %vm2613_vm0, %v8080_v6, 0.0  ;;  %3437 = vmatpush.msra.mxu0 %v2138_v24  ;;  %v2860_v53 = vsel %vm2840_vm1, %v8064_v47, 0.0 }
 0x237   : > { %v7110_v27 = vadd.f32 %v2633_v45, %v2593_v59  ;;  %vm2880_vm2 = vcmp.eq.s32.totalorder %v5752_v19, %v6751_v44  ;;  %vm2841_vm4 = vcmp.eq.s32.totalorder %v5752_v19, %v8065_v9  ;;  %vm2881_vm7 = vcmp.eq.s32.totalorder %v5752_v19, %v6758_v50  ;;  %v4079_v45 = vld [vmem:[%s4405_s14 + $0x38] sm:$0xff]  ;;  %v8110_v59 = vld [vmem:[#allocation10_spill] sm:$0xff] }
 0x238   : > { %v2900_v31 = vsel %vm2880_vm2, %v8069_v0, 0.0  ;;  %v2861_v43 = vsel %vm2841_vm4, %v8066_v52, 0.0  ;;  %vm2574_vm9 = vcmp.eq.s32.totalorder %v5752_v19, %v8067_v11  ;;  %v2751_v35 = vpop.f32.mrf.mxu0  ;;  %3943 = vmatmul.msk.f32.gmra.mxu2 %vm837_vm14, %v4079_v45  ;;  %3438 = vmatpush.msra.mxu0 %v2136_v37  ;;  %v2901_v44 = vsel %vm2881_vm7, %v8072_v40, 0.0 }
 0x239   : > { %v7125_v47 = vadd.f32 %v2900_v31, %v2860_v53  ;;  %v2594_v9 = vsel %vm2574_vm9, %v8070_v15, 0.0  ;;  %vm2614_vm6 = vcmp.eq.s32.totalorder %v5752_v19, %v6784_v33  ;;  %v2920_v52 = vmul.f32 %v6780_v56, %v2751_v35  ;;  %v2795_v50 = vpop.f32.mrf.mxu1  ;;  %3953 = vmatmul.msk.f32.gmra.mxu3 %vm837_vm14, %v4079_v45  ;;  %v4080_v45 = vld [vmem:[%s4405_s14 + $0x40] sm:$0xff]  ;;  %s4101_s14 = scalar_lea.hbm %s7664_s5, 32 }
 0x23a   : > { %v7133_v11 = vadd.f32 %v2901_v44, %v2861_v43  ;;  %v2634_v0 = vsel %vm2614_vm6, %v8079_v30, 0.0  ;;  %vm2575_vm3 = vcmp.eq.s32.totalorder %v5752_v19, %v8073_v5  ;;  %v7139_v37 = vmul.f32 %v6786_v49, %v2795_v50  ;;  %3439 = vmatpush.msra.mxu0 %v6981_v16  ;;  %v2485_v56 = vpop.f32.mrf.mxu2  ;;  %v8106_v30 = vld [vmem:[#allocation52_spill] sm:$0xff]  ;;  %v8108_v16 = vld [vmem:[#allocation53_spill] sm:$0xff]  ;;  %v8112_v43 = vld [vmem:[#allocation55_spill] sm:$0xff]  ;;  %p4103_p2 = scmp.lt.s32.totalorder %s4101_s14, %s4097_s21 }
 0x23b   : > { %v7142_v15 = vadd.f32 %v2634_v0, %v2594_v9  ;;  %v2595_v40 = vsel %vm2575_vm3, %v8077_v2, 0.0  ;;  %vm2615_vm10 = vcmp.eq.s32.totalorder %v5752_v19, %v6791_v62  ;;  %3454 = vmatpush.msra.mxu1 %v2920_v52  ;;  %vm3090_vm11 = vcmp.eq.s32.totalorder %v7893_v8, %v8106_v30  ;;  %v8107_v5 = vld [vmem:[#allocation8_spill] sm:$0xff] }
 0x23c   : > { %8105 = vst [vmem:[#allocation49_spill] sm:$0xff] %v7139_v37  ;;  %v2635_v33 = vsel %vm2615_vm10, %v8080_v6, 0.0  ;;  %v7151_v24 = vperm.slane %v8107_v5, 0  ;;  %vm3092_vm8 = vcmp.eq.s32.totalorder %v8032_v55, %v8106_v30  ;;  %v7156_v49 = vmul.f32 %v6813_v26, %v2485_v56  ;;  %3440 = vmatpush.msra.mxu0 %v6921_v4  ;;  %v8111_v26 = vld [vmem:[#allocation54_spill] sm:$0xff]  ;;  %v8113_v44 = vld [vmem:[#allocation56_spill] sm:$0xff]  ;;  %p4104_p3 = por %p4103_p2, %p4102_p1 }
 0x23d   : > { %v2529_v2 = vpop.f32.mrf.mxu3  ;;  %v7159_v62 = vadd.f32 %v2635_v33, %v2595_v40  ;;  %v3110_v17 = vsel %vm3090_vm11, %v8108_v16, 0.0  ;;  %v3112_v6 = vsel %vm3092_vm8, %v8108_v16, 0.0  ;;  %v7169_v53 = vperm.slane %v8110_v59, 0  ;;  %v8114_v52 = vld [vmem:[#allocation16_spill] sm:$0xff] }
 0x23e   : > { %v7164_v12 = vmul.f32 %v6819_v22, %v2529_v2  ;;  %vm3130_vm12 = vcmp.eq.s32.totalorder %v7893_v8, %v7151_v24  ;;  %vm3132_vm13 = vcmp.eq.s32.totalorder %v8032_v55, %v7151_v24  ;;  %3441 = vmatpush.msra.mxu0 %v6868_v3  ;;  %vm3094_vm5 = vcmp.eq.s32.totalorder %v8083_v21, %v8106_v30  ;;  %p4105_p5 = pnand %p4104_p3, %p4100_p0 }
 0x23f   : > { %v3150_v4 = vsel %vm3130_vm12, %v8111_v26, 0.0  ;;  %v3152_v31 = vsel %vm3132_vm13, %v8111_v26, 0.0  ;;  %vm3134_vm15 = vcmp.eq.s32.totalorder %v8083_v21, %v7151_v24  ;;  %vm3091_vm0 = vcmp.eq.s32.totalorder %v7893_v8, %v8112_v43 }
 0x240   : > { %8109 = vst [vmem:[#allocation50_spill] sm:$0xff] %v7164_v12  ;;  %v7180_v22 = vadd.f32 %v3150_v4, %v3110_v17  ;;  %vm3131_vm1 = vcmp.eq.s32.totalorder %v7893_v8, %v7169_v53  ;;  %v7186_v35 = vadd.f32 %v3152_v31, %v3112_v6  ;;  %v2754_v3 = vpop.f32.mrf.mxu0  ;;  %3944 = vmatmul.msk.f32.gmra.mxu2 %vm837_vm14, %v4080_v45  ;;  %v3111_v9 = vsel %vm3091_vm0, %v8113_v44, 0.0 }
 0x241   : > { %3442 = vmatpush.msra.mxu0 %v6859_v1  ;;  %v3151_v50 = vsel %vm3131_vm1, %v8114_v52, 0.0  ;;  %vm3093_vm2 = vcmp.eq.s32.totalorder %v8032_v55, %v8112_v43  ;;  %vm3133_vm4 = vcmp.eq.s32.totalorder %v8032_v55, %v7169_v53  ;;  %v7198_v0 = vmul.f32 %v6821_v29, %v2754_v3  ;;  %v2798_v40 = vpop.f32.mrf.mxu1  ;;  %3954 = vmatmul.msk.f32.gmra.mxu3 %vm837_vm14, %v4080_v45 }
 0x242   : > { %v7201_v56 = vadd.f32 %v3151_v50, %v3111_v9  ;;  %v3113_v1 = vsel %vm3093_vm2, %v8113_v44, 0.0  ;;  %v3153_v33 = vsel %vm3133_vm4, %v8114_v52, 0.0  ;;  %v7206_v5 = vmul.f32 %v6839_v42, %v2798_v40  ;;  %v2488_v6 = vpop.f32.mrf.mxu2 }
 0x243   : > { %8115 = vst [vmem:[#allocation24_spill] sm:$0xff] %v7198_v0  ;;  %3443 = vmatpush.msra.mxu0 %v6806_v13  ;;  %v7209_v2 = vadd.f32 %v3153_v33, %v3113_v1  ;;  %v3114_v29 = vsel %vm3094_vm5, %v8108_v16, 0.0  ;;  %v3154_v17 = vsel %vm3134_vm15, %v8111_v26, 0.0  ;;  %vm3095_vm14 = vcmp.eq.s32.totalorder %v8083_v21, %v8112_v43  ;;  %v8119_v33 = vld [vmem:[#allocation22_spill] sm:$0xff] }
 0x244   : > { %8116 = vst [vmem:[#allocation31_spill] sm:$0xff] %v7206_v5  ;;  %v7219_v59 = vadd.f32 %v3154_v17, %v3114_v29  ;;  %vm3135_vm7 = vcmp.eq.s32.totalorder %v8083_v21, %v7169_v53  ;;  %vm3096_vm9 = vcmp.eq.s32.totalorder %v7970_v39, %v8106_v30  ;;  %v7228_v13 = vmul.f32 %v6846_v63, %v2488_v6  ;;  %v8118_v63 = vld [vmem:[#allocation63_spill] sm:$0xff]  ;;  %v8120_v6 = vld [vmem:[#allocation60_spill] sm:$0xff] }
 0x245   : > { %v2532_v42 = vpop.f32.mrf.mxu3  ;;  %3444 = vmatpush.msra.mxu0 %v6669_v18  ;;  %v3115_v4 = vsel %vm3095_vm14, %v8113_v44, 0.0  ;;  %v3155_v31 = vsel %vm3135_vm7, %v8114_v52, 0.0  ;;  %v3116_v3 = vsel %vm3096_vm9, %v8108_v16, 0.0  ;;  %vm3136_vm6 = vcmp.eq.s32.totalorder %v7970_v39, %v7151_v24 }
 0x246   : > { %v7235_v45 = vmul.f32 %v6863_v54, %v2532_v42  ;;  %v7237_v9 = vadd.f32 %v3155_v31, %v3115_v4  ;;  %vm3097_vm3 = vcmp.eq.s32.totalorder %v7970_v39, %v8112_v43  ;;  %v3156_v18 = vsel %vm3136_vm6, %v8111_v26, 0.0  ;;  %v8121_v42 = vld [vmem:[#allocation94_spill] sm:$0xff] }
 0x247   : > { %3445 = vmatpush.msra.mxu0 %v8118_v63  ;;  %v3117_v50 = vsel %vm3097_vm3, %v8113_v44, 0.0  ;;  %vm3137_vm10 = vcmp.eq.s32.totalorder %v7970_v39, %v7169_v53  ;;  %vm3098_vm11 = vcmp.eq.s32.totalorder %v7984_v23, %v8106_v30  ;;  %v7250_v54 = vadd.f32 %v3156_v18, %v3116_v3  ;;  %v8122_v18 = vld [vmem:[#allocation73_spill] sm:$0xff] }
 0x248   : > { %8117 = vst [vmem:[#allocation27_spill] sm:$0xff] %v7235_v45  ;;  %v3157_v40 = vsel %vm3137_vm10, %v8114_v52, 0.0  ;;  %v3118_v1 = vsel %vm3098_vm11, %v8108_v16, 0.0  ;;  %vm3138_vm8 = vcmp.eq.s32.totalorder %v7984_v23, %v7151_v24  ;;  %vm3099_vm12 = vcmp.eq.s32.totalorder %v7984_v23, %v8112_v43 }
 0x249   : > { %3446 = vmatpush.msra.mxu0 %v8119_v33  ;;  %v7257_v29 = vadd.f32 %v3157_v40, %v3117_v50  ;;  %v3158_v17 = vsel %vm3138_vm8, %v8111_v26, 0.0  ;;  %vm3139_vm13 = vcmp.eq.s32.totalorder %v7984_v23, %v7169_v53  ;;  %v1848_v4 = vadd.f32 %v8121_v42, %v8120_v6  ;;  %v8123_v50 = vld [vmem:[#allocation96_spill] sm:$0xff]  ;;  %v8124_v33 = vld [vmem:[#allocation77_spill] sm:$0xff]  ;;  %v8125_v42 = vld [vmem:[#allocation66_spill] sm:$0xff] }
 0x24a   : > { %v7266_v31 = vadd.f32 %v3158_v17, %v3118_v1  ;;  %v3119_v3 = vsel %vm3099_vm12, %v8113_v44, 0.0  ;;  %v3159_v63 = vsel %vm3139_vm13, %v8114_v52, 0.0  ;;  %v1868_v40 = vmul.f32 %v8123_v50, %v8122_v18  ;;  %v7279_v6 = vpop.f32.mrf.mxu2 }
 0x24b   : > { %3447 = vmatpush.msra.mxu0 %v8124_v33  ;;  %v7273_v12 = vadd.f32 %v3159_v63, %v3119_v3  ;;  %vm3100_vm5 = vcmp.eq.s32.totalorder %v7994_v10, %v8106_v30  ;;  %vm3140_vm15 = vcmp.eq.s32.totalorder %v7994_v10, %v7151_v24  ;;  %vm3101_vm0 = vcmp.eq.s32.totalorder %v7994_v10, %v8112_v43 }
 0x24c   : > { %v3120_v1 = vsel %vm3100_vm5, %v8108_v16, 0.0  ;;  %v3160_v17 = vsel %vm3140_vm15, %v8111_v26, 0.0  ;;  %vm3141_vm1 = vcmp.eq.s32.totalorder %v7994_v10, %v7169_v53  ;;  %v1866_v3 = vmul.f32 %v1848_v4, %v8125_v42 }
 0x24d   : > { %v2535_v63 = vpop.f32.mrf.mxu3  ;;  %3448 = vmatpush.msra.mxu0 %v1868_v40  ;;  %v7288_v18 = vadd.f32 %v3160_v17, %v3120_v1  ;;  %v3121_v50 = vsel %vm3101_vm0, %v8113_v44, 0.0  ;;  %v3161_v33 = vsel %vm3141_vm1, %v8114_v52, 0.0  ;;  %vm3102_vm2 = vcmp.eq.s32.totalorder %v8001_v20, %v8106_v30 }
 0x24e   : > { %v7293_v45 = vmul.f32 %v6907_v48, %v2535_v63  ;;  %v7295_v37 = vadd.f32 %v3161_v33, %v3121_v50  ;;  %vm3142_vm4 = vcmp.eq.s32.totalorder %v8001_v20, %v7151_v24  ;;  %v3122_v4 = vsel %vm3102_vm2, %v8108_v16, 0.0 }
 0x24f   : > { %3449 = vmatpush.msra.mxu0 %v1866_v3  ;;  %v3162_v40 = vsel %vm3142_vm4, %v8111_v26, 0.0  ;;  %vm3103_vm14 = vcmp.eq.s32.totalorder %v8001_v20, %v8112_v43  ;;  %vm3143_vm7 = vcmp.eq.s32.totalorder %v8001_v20, %v7169_v53  ;;  %vm3104_vm9 = vcmp.eq.s32.totalorder %v5744_v32, %v8106_v30 }
 0x250   : > { %8126 = vst [vmem:[#allocation51_spill] sm:$0xff] %v7293_v45  ;;  %v7307_v48 = vadd.f32 %v3162_v40, %v3122_v4  ;;  %v3123_v1 = vsel %vm3103_vm14, %v8113_v44, 0.0  ;;  %v3163_v17 = vsel %vm3143_vm7, %v8114_v52, 0.0  ;;  %v3124_v3 = vsel %vm3104_vm9, %v8108_v16, 0.0 }
 0x251   : > { %v7313_v42 = vadd.f32 %v3163_v17, %v3123_v1  ;;  %vm3144_vm6 = vcmp.eq.s32.totalorder %v5744_v32, %v7151_v24  ;;  %vm3105_vm3 = vcmp.eq.s32.totalorder %v5744_v32, %v8112_v43  ;;  %vm3145_vm10 = vcmp.eq.s32.totalorder %v5744_v32, %v7169_v53 }
 0x252   : > { %v3164_v63 = vsel %vm3144_vm6, %v8111_v26, 0.0  ;;  %v3125_v50 = vsel %vm3105_vm3, %v8113_v44, 0.0  ;;  %v3165_v4 = vsel %vm3145_vm10, %v8114_v52, 0.0  ;;  %vm3106_vm11 = vcmp.eq.s32.totalorder %v5752_v19, %v8106_v30 }
 0x253   : > { %v7324_v33 = vadd.f32 %v3164_v63, %v3124_v3  ;;  %v2494_v40 = vpop.f32.mrf.mxu2  ;;  %v7329_v1 = vadd.f32 %v3165_v4, %v3125_v50  ;;  %v3126_v17 = vsel %vm3106_vm11, %v8108_v16, 0.0  ;;  %vm3146_vm8 = vcmp.eq.s32.totalorder %v5752_v19, %v7151_v24 }
 0x254   : > { %vm3107_vm12 = vcmp.eq.s32.totalorder %v5752_v19, %v8112_v43  ;;  %v3166_v3 = vsel %vm3146_vm8, %v8111_v26, 0.0  ;;  %vm3147_vm13 = vcmp.eq.s32.totalorder %v5752_v19, %v7169_v53 }
 0x255   : > { %v2538_v45 = vpop.f32.mrf.mxu3  ;;  %v3127_v63 = vsel %vm3107_vm12, %v8113_v44, 0.0  ;;  %v7343_v50 = vadd.f32 %v3166_v3, %v3126_v17  ;;  %v3167_v16 = vsel %vm3147_vm13, %v8114_v52, 0.0  ;;  %vm3390_vm12 = vcmask 64512  }
 0x256   : > { %v7341_v30 = vmul.f32 %v6949_v51, %v2538_v45  ;;  %v7346_v4 = vadd.f32 %v3167_v16, %v3127_v63 }
 0x258   : > { %8127 = vst [vmem:[#allocation46_spill] sm:$0xff] %v7341_v30 }
 0x25b   : > { %v2497_v24 = vpop.f32.mrf.mxu2 }
 0x25d   : > { %v2541_v5 = vpop.f32.mrf.mxu3 }
 0x25e   : > { %v7349_v43 = vmul.f32 %v6989_v25, %v2541_v5 }
 0x260   : > { %8128 = vst [vmem:[#allocation97_spill] sm:$0xff] %v7349_v43 }
 0x263   : > { %v2500_v26 = vpop.f32.mrf.mxu2 }
 0x265   : > { %v2544_v0 = vpop.f32.mrf.mxu3 }
 0x266   : > { %v7352_v44 = vmul.f32 %v7027_v57, %v2544_v0  ;;  %v7367_v57 = vld [vmem:[%s7663_s4 + $0x8] sm:$0xff] }
 0x267   : > { %3430 = vmatmul.f32.vlgmr.msrb.gmra.mxu1 %v7367_v57 }
 0x268   : > { %8129 = vst [vmem:[#allocation47_spill] sm:$0xff] %v7352_v44 }
 0x26b   : > { %v2503_v53 = vpop.f32.mrf.mxu2 }
 0x26d   : > { %v2547_v10 = vpop.f32.mrf.mxu3 }
 0x26e   : > { %v7355_v51 = vmul.f32 %v7067_v60, %v2547_v10  ;;  %v2666_v60 = vmul.f32 %v7059_v14, %v2503_v53  ;;  %v8133_v14 = vld [vmem:[#allocation17_spill] sm:$0xff] }
 0x26f   : > { %v2658_v53 = vmul.f32 %v8133_v14, %v7279_v6  ;;  %v8137_v6 = vld [vmem:[#allocation26_spill] sm:$0xff] }
 0x270   : > { %8130 = vst [vmem:[#allocation36_spill] sm:$0xff] %v7355_v51  ;;  %v8144_v14 = vld [vmem:[#allocation78_spill] sm:$0xff]  ;;  %v8163_v51 = vld [vmem:[#allocation7_spill] sm:$0xff] }
 0x273   : > { %v2506_v45 = vpop.f32.mrf.mxu2 }
 0x274   : > { %v2668_v10 = vmul.f32 %v7105_v36, %v2506_v45  ;;  %v2660_v36 = vmul.f32 %v6931_v46, %v2494_v40  ;;  %v7394_v45 = vpop.f32.mrf.mxu0  ;;  %v7396_v46 = vpop.f32.mrf.mxu1  ;;  %v7400_v40 = vperm.slane %v8137_v6, 3 }
 0x275   : > { %v2550_v17 = vpop.f32.mrf.mxu3  ;;  %8136 = vst [vmem:[#allocation62_spill] sm:$0xff] %v7396_v46 }
 0x276   : > { %v7358_v52 = vmul.f32 %v7110_v27, %v2550_v17  ;;  %v2664_v27 = vmul.f32 %v7020_v28, %v2500_v26  ;;  %8138 = vst [vmem:[#allocation52_spill] sm:$0xff] %v7400_v40 }
 0x278   : > { %8131 = vst [vmem:[#allocation28_spill] sm:$0xff] %v7358_v52 }
 0x27b   : > { %v2509_v3 = vpop.f32.mrf.mxu2 }
 0x27c   : > { %v2670_v63 = vmul.f32 %v7142_v15, %v2509_v3  ;;  %v8139_v3 = vld [vmem:[#allocation32_spill] sm:$0xff] }
 0x27d   : > { %v2553_v25 = vpop.f32.mrf.mxu3 }
 0x27e   : > { %v7362_v5 = vmul.f32 %v7159_v62, %v2553_v25  ;;  %3455 = vmatpush.msra.mxu1 %v2670_v63  ;;  %v2662_v62 = vmul.f32 %v6972_v34, %v2497_v24  ;;  %v8134_v34 = vld [vmem:[#allocation25_spill] sm:$0xff]  ;;  %v8135_v24 = vld [vmem:[#allocation38_spill] sm:$0xff]  ;;  %v7403_v63 = vperm.slane %v8139_v3, 3 }
 0x27f   : > { %v8146_v3 = vld [vmem:[#allocation13_spill] sm:$0xff] }
 0x280   : > { %8132 = vst [vmem:[#allocation48_spill] sm:$0xff] %v7362_v5  ;;  %3456 = vmatpush.msra.mxu1 %v2668_v10  ;;  %v8141_v10 = vld [vmem:[#allocation20_spill] sm:$0xff] }
 0x281   : > { %8140 = vst [vmem:[#allocation8_spill] sm:$0xff] %v7403_v63  ;;  %v8164_v5 = vld [vmem:[#allocation80_spill] sm:$0xff] }
 0x282   : > { %3457 = vmatpush.msra.mxu1 %v2666_v60 }
 0x283   : > { %v3017_v15 = vpop.f32.mrf.mxu2 }
 0x284   : > { %v7375_v0 = vmul.f32 %v7180_v22, %v3017_v15  ;;  %3458 = vmatpush.msra.mxu1 %v2664_v27  ;;  %v7389_v22 = vperm.slane %v8134_v34, 3  ;;  %v7433_v27 = vpop.f32.mrf.mxu0 }
 0x285   : > { %v3061_v16 = vpop.f32.mrf.mxu3 }
 0x286   : > { %v7378_v17 = vmul.f32 %v7201_v56, %v3061_v16  ;;  %3459 = vmatpush.msra.mxu1 %v2662_v62  ;;  %v7392_v56 = vperm.slane %v8135_v24, 3  ;;  %vm1769_vm5 = vcmp.eq.s32.totalorder %v7984_v23, %v7389_v22  ;;  %vm1767_vm0 = vcmp.eq.s32.totalorder %v7970_v39, %v7389_v22  ;;  %v8143_v16 = vld [vmem:[#allocation67_spill] sm:$0xff] }
 0x287   : > { %vm1765_vm2 = vcmp.eq.s32.totalorder %v8083_v21, %v7389_v22  ;;  %vm1763_vm14 = vcmp.eq.s32.totalorder %v8032_v55, %v7389_v22  ;;  %vm1761_vm9 = vcmp.eq.s32.totalorder %v7893_v8, %v7389_v22  ;;  %v8145_v24 = vld [vmem:[#allocation75_spill] sm:$0xff]  ;;  %vm1777_vm13 = vcmp.eq.s32.totalorder %v5752_v19, %v7389_v22 }
 0x288   : > { %3460 = vmatpush.msra.mxu1 %v2660_v36  ;;  %vm1809_vm15 = vcmp.eq.s32.totalorder %v7984_v23, %v7392_v56  ;;  %vm1807_vm1 = vcmp.eq.s32.totalorder %v7970_v39, %v7392_v56  ;;  %vm1805_vm4 = vcmp.eq.s32.totalorder %v8083_v21, %v7392_v56  ;;  %v1787_v23 = vsel %vm1767_vm0, %v7400_v40, 0.0  ;;  %v7437_v21 = vpop.f32.mrf.mxu1 }
 0x289   : > { %v1827_v39 = vsel %vm1807_vm1, %v7403_v63, 0.0  ;;  %vm1803_vm7 = vcmp.eq.s32.totalorder %v8032_v55, %v7392_v56  ;;  %v1785_v15 = vsel %vm1765_vm2, %v7400_v40, 0.0  ;;  %v1825_v62 = vsel %vm1805_vm4, %v7403_v63, 0.0 }
 0x28a   : > { %3461 = vmatpush.msra.mxu1 %v2658_v53  ;;  %vm1801_vm6 = vcmp.eq.s32.totalorder %v7893_v8, %v7392_v56  ;;  %v1845_v36 = vadd.f32 %v1827_v39, %v1787_v23  ;;  %v1783_v53 = vsel %vm1763_vm14, %v7400_v40, 0.0  ;;  %v1823_v34 = vsel %vm1803_vm7, %v7403_v63, 0.0  ;;  %v8147_v39 = vld [vmem:[#allocation58_spill] sm:$0xff] }
 0x28b   : > { %v7383_v28 = vpop.f32.mrf.mxu2  ;;  %v1843_v6 = vadd.f32 %v1825_v62, %v1785_v15  ;;  %v1841_v23 = vadd.f32 %v1823_v34, %v1783_v53  ;;  %v3222_v15 = vld [vmem:[%s7663_s4] sm:$0xff]  ;;  %v8149_v62 = vld [vmem:[#allocation89_spill] sm:$0xff]  ;;  %vm1815_vm0 = vcmp.eq.s32.totalorder %v5744_v32, %v7392_v56 }
 0x28c   : > { %3462 = vmatpush.msra.mxu1 %v7228_v13  ;;  %v1789_v13 = vsel %vm1769_vm5, %v7400_v40, 0.0  ;;  %3410 = vmatmul.f32.vlgmr.msrb.gmra.mxu0 %v3222_v15  ;;  %vm1817_vm5 = vcmp.eq.s32.totalorder %v5752_v19, %v7392_v56 }
 0x28d   : > { %v7385_v26 = vpop.f32.mrf.mxu3  ;;  %3530 = vmatmul.f32.vlgmr.msrb.gmra.mxu3 %v3222_v15  ;;  %v8157_v15 = vld [vmem:[#allocation57_spill] sm:$0xff] }
 0x28e   : > { %3463 = vmatpush.msra.mxu1 %v7156_v49  ;;  %vm1285_vm10 = vcmp.eq.s32.totalorder %v5752_v19, %v8157_v15  ;;  %vm1283_vm8 = vcmp.eq.s32.totalorder %v5744_v32, %v8157_v15 }
 0x290   : > { %3464 = vmatpush.msra.mxu1 %v7075_v41  ;;  %v1829_v41 = vsel %vm1809_vm15, %v7403_v63, 0.0  ;;  %vm1775_vm15 = vcmp.eq.s32.totalorder %v5744_v32, %v7389_v22 }
 0x291   : > { %v1847_v60 = vadd.f32 %v1829_v41, %v1789_v13  ;;  %v1863_v13 = vmul.f32 %v1845_v36, %v8146_v3  ;;  %v7469_v3 = vld [vmem:[%s7663_s4 + $0x18] sm:$0xff] }
 0x292   : > { %3465 = vmatpush.msra.mxu1 %v7017_v61  ;;  %v8142_v61 = vld [vmem:[#allocation19_spill] sm:$0xff]  ;;  %8151 = vst [vmem:[#allocation53_spill] sm:$0xff] %v7469_v3 }
 0x293   : > { %v7415_v49 = vpop.f32.mrf.mxu2  ;;  %v1865_v55 = vmul.f32 %v1847_v60, %v8144_v14  ;;  %v1861_v60 = vmul.f32 %v1843_v6, %v8147_v39  ;;  %v8148_v14 = vld [vmem:[#allocation18_spill] sm:$0xff]  ;;  %v8150_v6 = vld [vmem:[#allocation88_spill] sm:$0xff] }
 0x294   : > { %3466 = vmatpush.msra.mxu1 %v8141_v10  ;;  %v1781_v10 = vsel %vm1761_vm9, %v7400_v40, 0.0  ;;  %v1859_v30 = vmul.f32 %v1841_v23, %v8148_v14  ;;  %v8155_v39 = vld [vmem:[#allocation64_spill] sm:$0xff]  ;;  %v8156_v14 = vld [vmem:[#allocation33_spill] sm:$0xff] }
 0x295   : > { %v7419_v25 = vpop.f32.mrf.mxu3  ;;  %vm1245_vm3 = vcmp.eq.s32.totalorder %v5752_v19, %v8156_v14  ;;  %vm1243_vm11 = vcmp.eq.s32.totalorder %v5744_v32, %v8156_v14  ;;  %v8191_v32 = vld [vmem:[#allocation65_spill] sm:$0xff] }
 0x296   : > { %3467 = vmatpush.msra.mxu1 %v8142_v61  ;;  %v1821_v61 = vsel %vm1801_vm6, %v7403_v63, 0.0  ;;  %v8166_v63 = vld [vmem:[#allocation98_spill] sm:$0xff] }
 0x298   : > { %3468 = vmatpush.msra.mxu1 %v8143_v16  ;;  %v1839_v16 = vadd.f32 %v1821_v61, %v1781_v10  ;;  %v8154_v10 = vld [vmem:[#allocation11_spill] sm:$0xff] }
 0x29a   : > { %3469 = vmatpush.msra.mxu1 %v8145_v24  ;;  %v1857_v36 = vmul.f32 %v1839_v16, %v8149_v62  ;;  %v7463_v24 = vpop.f32.mrf.mxu1  ;;  %v8158_v62 = vld [vmem:[#allocation71_spill] sm:$0xff] }
 0x29b   : > { %v7449_v41 = vpop.f32.mrf.mxu2  ;;  %3470 = vmatmul.f32.vlgmr.msra.gmra.mxu1 %v7469_v3  ;;  %v8162_v3 = vld [vmem:[#allocation91_spill] sm:$0xff] }
 0x29c   : > { %3534 = vmatpush.msrb.mxu1 %v1865_v55  ;;  %v7461_v55 = vpop.f32.mrf.mxu0 }
 0x29d   : > { %v7453_v8 = vpop.f32.mrf.mxu3 }
 0x29e   : > { %3535 = vmatpush.msrb.mxu1 %v1863_v13  ;;  %v8152_v13 = vld [vmem:[#allocation76_spill] sm:$0xff] }
 0x2a0   : > { %3536 = vmatpush.msrb.mxu1 %v1861_v60 }
 0x2a2   : > { %3537 = vmatpush.msrb.mxu1 %v1859_v30  ;;  %v7476_v30 = vld [vmem:[%s7663_s4 + $0x10] sm:$0xff]  ;;  %v7483_v60 = vpop.f32.mrf.mxu1 }
 0x2a3   : > { %v3029_v53 = vpop.f32.mrf.mxu2  ;;  %8153 = vst [vmem:[#allocation10_spill] sm:$0xff] %v7476_v30  ;;  %3450 = vmatmul.f32.vlgmr.msra.gmra.mxu0 %v7476_v30 }
 0x2a4   : > { %3538 = vmatpush.msrb.mxu1 %v1857_v36  ;;  %v7480_v61 = vpop.f32.mrf.mxu0  ;;  %v8159_v36 = vld [vmem:[#allocation72_spill] sm:$0xff] }
 0x2a5   : > { %v3073_v34 = vpop.f32.mrf.mxu3 }
 0x2a6   : > { %3539 = vmatpush.msrb.mxu1 %v8150_v6  ;;  %v8160_v6 = vld [vmem:[#allocation35_spill] sm:$0xff] }
 0x2a7   : > { %v1263_v30 = vsel %vm1243_vm11, %v8160_v6, 0.0 }
 0x2a8   : > { %3540 = vmatpush.msrb.mxu1 %v8152_v13  ;;  %v1265_v13 = vsel %vm1245_vm3, %v8160_v6, 0.0 }
 0x2aa   : > { %3541 = vmatpush.msrb.mxu1 %v8154_v10  ;;  %v8161_v10 = vld [vmem:[#allocation39_spill] sm:$0xff]  ;;  %v2813_v46 = vpop.f32.mrf.mxu1 }
 0x2ab   : > { %v3032_v23 = vpop.f32.mrf.mxu2  ;;  %v1303_v43 = vsel %vm1283_vm8, %v8161_v10, 0.0 }
 0x2ac   : > { %3542 = vmatpush.msrb.mxu1 %v8155_v39  ;;  %v1305_v39 = vsel %vm1285_vm10, %v8161_v10, 0.0  ;;  %v1321_v52 = vadd.f32 %v1303_v43, %v1263_v30  ;;  %v2769_v20 = vpop.f32.mrf.mxu0  ;;  %v8179_v10 = vld [vmem:[#allocation59_spill] sm:$0xff] }
 0x2ad   : > { %v3076_v16 = vpop.f32.mrf.mxu3  ;;  %v1323_v44 = vadd.f32 %v1305_v39, %v1265_v13 }
 0x2ae   : > { %3543 = vmatpush.msrb.mxu1 %v8158_v62  ;;  %v1339_v40 = vmul.f32 %v1321_v52, %v8166_v63  ;;  %v3196_v52 = vmul.f32 %v7288_v18, %v3032_v23  ;;  %v3193_v18 = vmul.f32 %v7257_v29, %v7453_v8  ;;  %v8171_v8 = vld [vmem:[#allocation84_spill] sm:$0xff]  ;;  %v8178_v23 = vld [vmem:[#allocation34_spill] sm:$0xff] }
 0x2af   : > { %v1341_v15 = vmul.f32 %v1323_v44, %v8164_v5 }
 0x2b0   : > { %3544 = vmatpush.msrb.mxu1 %v8159_v36  ;;  %v8165_v36 = vld [vmem:[#allocation87_spill] sm:$0xff] }
 0x2b2   : > { %3545 = vmatpush.msrb.mxu1 %v8162_v3  ;;  %v2816_v30 = vpop.f32.mrf.mxu1 }
 0x2b3   : > { %v3035_v62 = vpop.f32.mrf.mxu2 }
 0x2b4   : > { %3546 = vmatpush.msrb.mxu1 %v8163_v51  ;;  %v3198_v43 = vmul.f32 %v7307_v48, %v3035_v62  ;;  %v2772_v44 = vpop.f32.mrf.mxu0  ;;  %v3192_v48 = vmul.f32 %v7250_v54, %v7449_v41  ;;  %v3188_v54 = vmul.f32 %v7186_v35, %v7383_v28  ;;  %v8182_v62 = vld [vmem:[#allocation83_spill] sm:$0xff] }
 0x2b5   : > { %v3079_v14 = vpop.f32.mrf.mxu3  ;;  %v2934_v28 = vmul.f32 %v7085_v38, %v2772_v44  ;;  %v8173_v38 = vld [vmem:[#allocation79_spill] sm:$0xff]  ;;  %v8189_v44 = vld [vmem:[#allocation14_spill] sm:$0xff] }
 0x2b6   : > { %3547 = vmatpush.msrb.mxu1 %v8165_v36  ;;  %v3199_v5 = vmul.f32 %v7313_v42, %v3079_v14  ;;  %v8184_v36 = vld [vmem:[#allocation61_spill] sm:$0xff] }
 0x2b8   : > { %3548 = vmatpush.msrb.mxu1 %v1341_v15  ;;  %v8183_v15 = vld [vmem:[#allocation41_spill] sm:$0xff] }
 0x2ba   : > { %3549 = vmatpush.msrb.mxu1 %v1339_v40  ;;  %v3197_v40 = vmul.f32 %v7295_v37, %v3076_v16  ;;  %v2819_v41 = vpop.f32.mrf.mxu1  ;;  %v2928_v16 = vmul.f32 %v8178_v23, %v7461_v55  ;;  %v2926_v55 = vmul.f32 %v8183_v15, %v7433_v27  ;;  %v8218_v23 = vld [vmem:[#allocation53_spill] sm:$0xff] }
 0x2bb   : > { %3550 = vmatmul.f32.vlgmr.msrb.gmra.mxu1 %v7367_v57  ;;  %v3038_v3 = vpop.f32.mrf.mxu2  ;;  %v3194_v57 = vmul.f32 %v7266_v31, %v3029_v53  ;;  %v3190_v31 = vmul.f32 %v7219_v59, %v7415_v49  ;;  %v8168_v59 = vld [vmem:[#allocation9_spill] sm:$0xff]  ;;  %v8169_v49 = vld [vmem:[#allocation40_spill] sm:$0xff]  ;;  %v2937_v35 = vmul.f32 %v7133_v11, %v2819_v41  ;;  %v3227_v11 = vld [vmem:[%s7663_s4 + $0x28] sm:$0xff] }
 0x2bc   : > { %v3200_v6 = vmul.f32 %v7324_v33, %v3038_v3  ;;  %v3195_v33 = vmul.f32 %v7273_v12, %v3073_v34  ;;  %v3191_v12 = vmul.f32 %v7237_v9, %v7419_v25  ;;  %v2775_v29 = vpop.f32.mrf.mxu0  ;;  %v8177_v34 = vld [vmem:[#allocation74_spill] sm:$0xff]  ;;  %v2927_v3 = vmul.f32 %v8184_v36, %v7437_v21 }
 0x2bd   : > { %v3082_v13 = vpop.f32.mrf.mxu3  ;;  %v2936_v9 = vmul.f32 %v7125_v47, %v2775_v29  ;;  %v8172_v47 = vld [vmem:[#allocation29_spill] sm:$0xff]  ;;  %v8188_v21 = vld [vmem:[#allocation62_spill] sm:$0xff] }
 0x2be   : > { %v3201_v51 = vmul.f32 %v7329_v1, %v3082_v13  ;;  %3474 = vmatpush.msrb.mxu2 %v3200_v6  ;;  %v2933_v53 = vmul.f32 %v8172_v47, %v2813_v46  ;;  %v8186_v13 = vld [vmem:[#allocation52_spill] sm:$0xff]  ;;  %v8207_v47 = vld [vmem:[#allocation10_spill] sm:$0xff] }
 0x2bf   : > { %v1797_v27 = vsel %vm1777_vm13, %v8186_v13, 0.0 }
 0x2c0   : > { %3594 = vmatpush.msra.mxu3 %v3201_v51  ;;  %3475 = vmatpush.msrb.mxu2 %v3198_v43  ;;  %v8187_v51 = vld [vmem:[#allocation8_spill] sm:$0xff] }
 0x2c1   : > { %v1837_v43 = vsel %vm1817_vm5, %v8187_v51, 0.0  ;;  %v1835_v19 = vsel %vm1815_vm0, %v8187_v51, 0.0 }
 0x2c2   : > { %3595 = vmatpush.msra.mxu3 %v3199_v5  ;;  %3476 = vmatpush.msrb.mxu2 %v3196_v52  ;;  %v2925_v5 = vmul.f32 %v8189_v44, %v8188_v21  ;;  %v3226_v52 = vld [vmem:[%s7663_s4 + $0x20] sm:$0xff] }
 0x2c3   : > { %v3041_v1 = vpop.f32.mrf.mxu2 }
 0x2c4   : > { %3596 = vmatpush.msra.mxu3 %v3197_v40  ;;  %v3202_v42 = vmul.f32 %v7343_v50, %v3041_v1  ;;  %3477 = vmatpush.msrb.mxu2 %v3194_v57  ;;  %v8167_v50 = vld [vmem:[#allocation15_spill] sm:$0xff]  ;;  %v8192_v40 = vld [vmem:[#allocation93_spill] sm:$0xff]  ;;  %v1855_v57 = vadd.f32 %v1837_v43, %v1797_v27  ;;  %v8194_v1 = vld [vmem:[#allocation24_spill] sm:$0xff] }
 0x2c5   : > { %v3085_v63 = vpop.f32.mrf.mxu3  ;;  %vm1771_vm4 = vcmp.eq.s32.totalorder %v8192_v40, %v7389_v22  ;;  %vm1811_vm14 = vcmp.eq.s32.totalorder %v8192_v40, %v7392_v56 }
 0x2c6   : > { %v3203_v37 = vmul.f32 %v7346_v4, %v3085_v63  ;;  %3597 = vmatpush.msra.mxu3 %v3195_v33  ;;  %3478 = vmatpush.msrb.mxu2 %v3192_v48  ;;  %v3189_v4 = vmul.f32 %v7209_v2, %v7385_v26  ;;  %v2935_v2 = vmul.f32 %v7090_v58, %v2816_v30  ;;  %v8170_v26 = vld [vmem:[#allocation82_spill] sm:$0xff]  ;;  %v8175_v58 = vld [vmem:[#allocation81_spill] sm:$0xff]  ;;  %v8190_v30 = vld [vmem:[#allocation95_spill] sm:$0xff] }
 0x2c7   : > { %3509 = vmatpush.msrb.mxu0 %v3202_v42  ;;  %v2932_v25 = vmul.f32 %v8170_v26, %v2769_v20  ;;  %v2931_v20 = vmul.f32 %v8175_v58, %v7483_v60  ;;  %v8181_v60 = vld [vmem:[#allocation43_spill] sm:$0xff]  ;;  %vm1773_vm1 = vcmp.eq.s32.totalorder %v8190_v30, %v7389_v22  ;;  %vm1813_vm2 = vcmp.eq.s32.totalorder %v8190_v30, %v7392_v56  ;;  %v8193_v33 = vld [vmem:[#allocation92_spill] sm:$0xff]  ;;  %v8198_v22 = vld [vmem:[#allocation90_spill] sm:$0xff] }
 0x2c8   : > { %3598 = vmatpush.msra.mxu3 %v3193_v18  ;;  %3629 = vmatpush.msra.mxu1 %v3203_v37  ;;  %v2129_v14 = vmul.f32 %v8182_v62, %v8181_v60  ;;  %v1793_v48 = vsel %vm1773_vm1, %v8186_v13, 0.0  ;;  %v1833_v42 = vsel %vm1813_vm2, %v8187_v51, 0.0  ;;  %v8195_v63 = vld [vmem:[#allocation31_spill] sm:$0xff]  ;;  %v8196_v18 = vld [vmem:[#allocation49_spill] sm:$0xff]  ;;  %v1791_v56 = vsel %vm1771_vm4, %v8186_v13, 0.0  ;;  %v8213_v58 = vld [vmem:[#allocation12_spill] sm:$0xff] }
 0x2c9   : > { %3554 = vmatpush.msra.mxu0 %v8167_v50  ;;  %3479 = vmatpush.msrb.mxu2 %v3190_v31  ;;  %v8197_v31 = vld [vmem:[#allocation68_spill] sm:$0xff]  ;;  %v1851_v29 = vadd.f32 %v1833_v42, %v1793_v48 }
 0x2ca   : > { %3599 = vmatpush.msra.mxu3 %v3191_v12  ;;  %3955 = vmatmul.msk.f32.vlgmr.msrb.gmra.mxu0 %vm3390_vm12, %v3227_v11  ;;  %v1873_v12 = vmul.f32 %v1855_v57, %v8197_v31  ;;  %v8199_v50 = vld [vmem:[#allocation48_spill] sm:$0xff] }
 0x2cb   : > { %3555 = vmatpush.msra.mxu0 %v8168_v59  ;;  %3480 = vmatpush.msrb.mxu2 %v3188_v54  ;;  %v1831_v54 = vsel %vm1811_vm14, %v8187_v51, 0.0  ;;  %v8201_v59 = vld [vmem:[#allocation28_spill] sm:$0xff] }
 0x2cc   : > { %3600 = vmatpush.msra.mxu3 %v3189_v4  ;;  %3956 = vmatmul.msk.f32.vlgmr.msra.gmra.mxu1 %vm3390_vm12, %v3227_v11  ;;  %v8200_v4 = vld [vmem:[#allocation85_spill] sm:$0xff]  ;;  %v8209_v11 = vld [vmem:[#allocation51_spill] sm:$0xff] }
 0x2cd   : > { %3556 = vmatpush.msra.mxu0 %v8169_v49  ;;  %3481 = vmatpush.msrb.mxu2 %v7375_v0  ;;  %v8174_v0 = vld [vmem:[#allocation69_spill] sm:$0xff]  ;;  %v8202_v49 = vld [vmem:[#allocation86_spill] sm:$0xff] }
 0x2ce   : > { %3601 = vmatpush.msra.mxu3 %v7378_v17  ;;  %v8176_v17 = vld [vmem:[#allocation44_spill] sm:$0xff] }
 0x2cf   : > { %3557 = vmatpush.msra.mxu0 %v7103_v7  ;;  %3482 = vmatpush.msrb.mxu2 %v2936_v9  ;;  %v2930_v7 = vmul.f32 %v8173_v38, %v7480_v61  ;;  %v2131_v46 = vmul.f32 %v8177_v34, %v8176_v17  ;;  %v8180_v61 = vld [vmem:[#allocation42_spill] sm:$0xff]  ;;  %v1849_v9 = vadd.f32 %v1831_v54, %v1791_v56  ;;  %v8210_v38 = vld [vmem:[#allocation27_spill] sm:$0xff]  ;;  %v8215_v17 = vld [vmem:[#allocation37_spill] sm:$0xff] }
 0x2d0   : > { %3602 = vmatpush.msra.mxu3 %v2937_v35  ;;  %v2929_v39 = vmul.f32 %v8180_v61, %v7463_v24  ;;  %v8185_v24 = vld [vmem:[#allocation45_spill] sm:$0xff]  ;;  %v1869_v35 = vmul.f32 %v1851_v29, %v8202_v49  ;;  %v8216_v34 = vld [vmem:[#allocation23_spill] sm:$0xff] }
 0x2d1   : > { %3558 = vmatpush.msra.mxu0 %v8171_v8  ;;  %3483 = vmatpush.msrb.mxu2 %v2934_v28  ;;  %v2924_v6 = vmul.f32 %v8185_v24, %v7394_v45  ;;  %v1795_v45 = vsel %vm1775_vm15, %v8186_v13, 0.0  ;;  %v8203_v28 = vld [vmem:[#allocation36_spill] sm:$0xff]  ;;  %v8206_v8 = vld [vmem:[#allocation97_spill] sm:$0xff] }
 0x2d2   : > { %3603 = vmatpush.msra.mxu3 %v2935_v2  ;;  %v1853_v37 = vadd.f32 %v1835_v19, %v1795_v45  ;;  %v8204_v2 = vld [vmem:[#allocation70_spill] sm:$0xff] }
 0x2d3   : > { %3559 = vmatpush.msra.mxu0 %v8174_v0  ;;  %3484 = vmatpush.msrb.mxu2 %v2932_v25  ;;  %v1867_v26 = vmul.f32 %v1849_v9, %v8204_v2  ;;  %v8205_v25 = vld [vmem:[#allocation47_spill] sm:$0xff]  ;;  %v8212_v0 = vld [vmem:[#allocation30_spill] sm:$0xff] }
 0x2d4   : > { %3604 = vmatpush.msra.mxu3 %v2933_v53  ;;  %v1871_v41 = vmul.f32 %v1853_v37, %v8200_v4  ;;  %v8208_v53 = vld [vmem:[#allocation46_spill] sm:$0xff] }
 0x2d5   : > { %3560 = vmatpush.msra.mxu0 %v8179_v10  ;;  %3485 = vmatpush.msrb.mxu2 %v2930_v7  ;;  %v8211_v7 = vld [vmem:[#allocation50_spill] sm:$0xff] }
 0x2d6   : > { %3605 = vmatpush.msra.mxu3 %v2931_v20  ;;  %v8214_v20 = vld [vmem:[#allocation6_spill] sm:$0xff] }
 0x2d7   : > { %3561 = vmatpush.msra.mxu0 %v2131_v46  ;;  %3486 = vmatpush.msrb.mxu2 %v2928_v16  ;;  %v8217_v46 = vld [vmem:[#allocation21_spill] sm:$0xff] }
 0x2d8   : > { %3606 = vmatpush.msra.mxu3 %v2929_v39 }
 0x2d9   : > { %3562 = vmatpush.msra.mxu0 %v2129_v14  ;;  %3487 = vmatpush.msrb.mxu2 %v2926_v55 }
 0x2da   : > { %3607 = vmatpush.msra.mxu3 %v2927_v3 }
 0x2db   : > { %3563 = vmatpush.msra.mxu0 %v8191_v32  ;;  %3488 = vmatpush.msrb.mxu2 %v2924_v6 }
 0x2dc   : > { %3608 = vmatpush.msra.mxu3 %v2925_v5 }
 0x2dd   : > { %3564 = vmatpush.msra.mxu0 %v8193_v33  ;;  %3489 = vmatpush.msrb.mxu2 %v8194_v1 }
 0x2de   : > { %3609 = vmatpush.msra.mxu3 %v8195_v63  ;;  %3490 = vmatmul.f32.vlgmr.msrb.gmra.mxu2 %v3226_v52 }
 0x2df   : > { %3574 = vmatpush.msra.mxu2 %v8196_v18  ;;  %3565 = vmatpush.msra.mxu0 %v8198_v22 }
 0x2e0   : > { %3610 = vmatmul.f32.vlgmr.msra.gmra.mxu3 %v3226_v52 }
 0x2e1   : > { %3575 = vmatpush.msra.mxu2 %v8199_v50  ;;  %3566 = vmatpush.msra.mxu0 %v1873_v12 }
 0x2e3   : > { %3576 = vmatpush.msra.mxu2 %v8201_v59  ;;  %3567 = vmatpush.msra.mxu0 %v1871_v41 }
 0x2e4   : > { %v3431_v10 = vpop.f32.mrf.mxu1 }
 0x2e5   : > { %3577 = vmatpush.msra.mxu2 %v8203_v28  ;;  %3568 = vmatpush.msra.mxu0 %v1869_v35 }
 0x2e7   : > { %3578 = vmatpush.msra.mxu2 %v8205_v25  ;;  %3569 = vmatpush.msra.mxu0 %v1867_v26 }
 0x2e8   : > { %3570 = vmatmul.f32.vlgmr.msra.gmra.mxu0 %v8207_v47 }
 0x2e9   : > { %3579 = vmatpush.msra.mxu2 %v8206_v8 }
 0x2eb   : > { %3580 = vmatpush.msra.mxu2 %v8208_v53 }
 0x2ed   : > { %3581 = vmatpush.msra.mxu2 %v8209_v11 }
 0x2ef   : > { %3582 = vmatpush.msra.mxu2 %v8210_v38 }
 0x2f1   : > { %3583 = vmatpush.msra.mxu2 %v8211_v7 }
 0x2f3   : > { %3584 = vmatpush.msra.mxu2 %v8212_v0 }
 0x2f5   : > { %3585 = vmatpush.msra.mxu2 %v8213_v58 }
 0x2f7   : > { %3586 = vmatpush.msra.mxu2 %v8214_v20 }
 0x2f9   : > { %3587 = vmatpush.msra.mxu2 %v8215_v17 }
 0x2fb   : > { %3588 = vmatpush.msra.mxu2 %v8216_v34 }
 0x2fd   : > { %3589 = vmatpush.msra.mxu2 %v8217_v46 }
 0x2fe   : > { %3590 = vmatmul.f32.vlgmr.msra.gmra.mxu2 %v8218_v23 }
 0x309   : > { %v3411_v16 = vpop.f32.mrf.mxu0 }
 0x30a   : > { %v3432_v61 = vadd.f32 %v3431_v10, %v3411_v16 }
 0x310   : > { %v3531_v24 = vpop.f32.mrf.mxu3 }
 0x318   : > { %v3471_v62 = vpop.f32.mrf.mxu1 }
 0x320   : > { %v3451_v39 = vpop.f32.mrf.mxu0 }
 0x321   : > { %v3452_v60 = vadd.f32 %v3451_v39, %v3432_v61 }
 0x323   : > { %v3472_v14 = vadd.f32 %v3471_v62, %v3452_v60 }
 0x338   : > { %v3551_v6 = vpop.f32.mrf.mxu1 }
 0x339   : > { %v3552_v13 = vadd.f32 %v3551_v6, %v3531_v24 }
 0x347   : > { %v3511_v55 = vpop.f32.mrf.mxu0 }
 0x349   : > { %v3631_v5 = vpop.f32.mrf.mxu1 }
 0x361   : > { %v3491_v15 = vpop.f32.mrf.mxu2 }
 0x362   : > { %v3492_v36 = vadd.f32 %v3491_v15, %v3472_v14 }
 0x363   : > { %v3611_v21 = vpop.f32.mrf.mxu3 }
 0x364   : > { %v3512_v3 = vadd.f32 %v3511_v55, %v3492_v36 }
 0x365   : > { %v3571_v27 = vpop.f32.mrf.mxu0 }
 0x366   : > { %3634 = vst [vmem:[%s273_s24] sm:$0xff] %v3512_v3  ;;  %v3572_v51 = vadd.f32 %v3571_v27, %v3552_v13 }
 0x381   : > { %v3591_v43 = vpop.f32.mrf.mxu2 }
 0x382   : > { %v3592_v44 = vadd.f32 %v3591_v43, %v3572_v51 }
 0x384   : > { %v3612_v30 = vadd.f32 %v3611_v21, %v3592_v44 }
 0x386   : > { %v3632_v32 = vadd.f32 %v3631_v5, %v3612_v30 }
 0x388   : > { %3635 = vst [vmem:[%s273_s24 + $0x8] sm:$0xff] %v3632_v32 }
 0x389   : > { %4108 = shalt.err (!%p4105_p5)
}
 0x38a   : > { %4007 = dma.vmem_to_hbm [thread:$0]  (%p4232_p4), %s3653_s9, 256, %s3655_s10, %s3637_s11  }
 0x38b PF: > { %p4013_p6 = scmp.ge.s32.totalorder %s4159_s23, 2  ;;  %s3666_s16 = sand.u32 1, %s4139_s18  }
 0x38c   : > { %s3667_s24 = scalar_lea.sflag [#allocation4], %s3666_s16 }
 0x38d   : > { %p4010_p7 = pnand %p4013_p6, %p4239_p8 }
 0x38f   : > { %p4011_p9 = pneg %p4010_p7 }
 0x391   : > { %4134 = dma.done.wait (%p4011_p9), %s3667_s24, 256  }
 0x392   : > { %4136 = vsyncadd (%p4011_p9), %s3667_s24, 4294967040  ;;  %s18_s23 = sadd.s32 1, %s4159_s23   ;;  %s8219_s18 = smov %s4143_s19 }
 0x393   : > { %p15_p10 = scmp.ge.s32.totalorder %s18_s23, 4   ;;  %s8220_s19 = smov %s4147_s20 }
 0x394   : > { %s8221_s20 = smov %s4245_s6  ;;  %s8222_s21 = smov %s4155_s22 }
 0x395   : > { %s8223_s22 = smov %s8225_s26  ;;  %17 = sbr.rel (!%p15_p10) target bundleno = 4 (0x4), region = 81 }
 0x39a   :  { %3673 = vsyncpa [#allocation4], 1 }
 0x39b   :  { %3675 = vsyncpa [#allocation4 + $0x1], 1 }

</bundles_post_ra>
